<compile_context>
chip_gen: v7x
topology: tpu7x:2x2x1
jax: 0.10.0
libtpu: 0.0.40
codegen_flags: <defaults>
</compile_context>

<pallas_src>
import functools

import jax
import jax.numpy as jnp
from jax import lax
from jax.experimental import pallas as pl
from jax.experimental.pallas import tpu as pltpu


# ----------------------------------------------------------------------------
# pass 1: tap-packed conv + partial BN statistics
# ----------------------------------------------------------------------------
def _conv_pass1_kernel(x_ref, w_ref, y_ref, stats_ref, packed_ref, *,
                       KH, KW, Cin, RB, Wout, stride):
    """grid = (N, Cpad//CBLK, Hout//RB)  ("parallel","parallel","arbitrary")

    x_ref      : (1, Hp, Wp, Cin)       bf16   full padded image (per n)
    w_ref      : (KH*KW*Cin, CBLK)      bf16   tap-major weight slab (chan blk)
    y_ref      : (1, RB*Wout, CBLK)     bf16   conv output row band (pre-BN)
    stats_ref  : (1, 2, CBLK)           f32    [sum ; sum-sq] per image/chan blk
    packed_ref : (RB, Wout, KH*KW*Cin)  bf16   VMEM-scratch packed (im2col) LHS
    """
    r = pl.program_id(2)

    @pl.when(r == 0)
    def _():
        stats_ref[...] = jnp.zeros_like(stats_ref)

    # Input-row offset of this output row band.
    row0 = pl.multiple_of(r * RB * stride, RB * stride)

    # Pack all KH*KW taps of this row band into the scratch LHS
    # (im2col lives in VMEM only; nothing extra is read from HBM).
    for dy in range(KH):
        for dx in range(KW):
            if stride == 1:
                win = x_ref[0, pl.ds(row0 + dy, RB), dx:dx + Wout, :]
            else:
                win = x_ref[0,
                            pl.ds(row0 + dy, RB, stride=stride),
                            pl.ds(dx, Wout, stride=stride), :]
            tap = dy * KW + dx
            packed_ref[:, :, tap * Cin:(tap + 1) * Cin] = win

    # One MXU matmul with K = KH*KW*Cin instead of KH*KW matmuls with K = Cin.
    lhs = packed_ref[...].reshape(RB * Wout, KH * KW * Cin)
    acc = jnp.dot(lhs, w_ref[...], preferred_element_type=jnp.float32)

    y_ref[0] = acc.astype(y_ref.dtype)
    # Partial sums for training-mode BatchNorm, accumulated across row bands.
    # TODO(synk): switch to a centered/Welford accumulation if E[x^2]-E[x]^2
    # cancellation ever matters for very large N*H*W.
    stats_ref[0, 0:1, :] += jnp.sum(acc, axis=0, keepdims=True)
    stats_ref[0, 1:2, :] += jnp.sum(acc * acc, axis=0, keepdims=True)


# ----------------------------------------------------------------------------
# pass 2: folded BN scale/shift + LeakyReLU, written directly in NCHW layout
# ----------------------------------------------------------------------------
def _bn_act_to_nchw_kernel(y_ref, scale_ref, shift_ref, out_ref, *,
                           negative_slope, apply_act, cout):
    """y_ref (1, TM, Cpad) bf16 -> out_ref (1, Cout, TM): scale/shift, act,
    transpose in-kernel so the consumer gets NCHW with a free reshape."""
    z = y_ref[0].astype(jnp.float32) * scale_ref[...] + shift_ref[...]
    if apply_act:
        z = jnp.where(z >= 0, z, negative_slope * z)
    zt = jnp.transpose(z)                    # (Cpad, TM), XLU transpose
    out_ref[0] = zt[:cout, :].astype(out_ref.dtype)


# ----------------------------------------------------------------------------
# helpers
# ----------------------------------------------------------------------------
def _vmem_limit_bytes():
    """~75% of physical VMEM, capped at 100 MiB (=> ~48 MiB on v7x, 96 MiB on
    v5e/v6e)."""
    try:
        cap = int(pltpu.get_tpu_info().vmem_capacity_bytes)
    except Exception:
        cap = 128 * 1024 * 1024
    return int(min(cap * 3 // 4, 100 * 1024 * 1024))


def _pick_rb(Hout, Wout, target_rows=256):
    """Largest row-band height RB that divides Hout with RB*Wout <= target and
    RB*Wout a multiple of 8; falls back to RB = Hout (band == whole image,
    which is always a legal block since it equals the full H*W dim)."""
    rb_max = min(Hout, max(1, target_rows // max(1, Wout)))
    for cand in range(rb_max, 0, -1):
        if Hout % cand == 0 and (cand * Wout) % 8 == 0:
            return cand
    return Hout


# ----------------------------------------------------------------------------
# wrapper
# ----------------------------------------------------------------------------
def conv_forward(x_nchw, weight, gamma, beta, bias=None, *,
                 kernel_size=3, stride=1, bn_act=True,
                 eps=1e-5, negative_slope=0.1, out_dtype=jnp.float32):
    """Forward pass of the PyTorch `Conv` module using Pallas TPU kernels.

    Pass `out_dtype=jnp.bfloat16` for a fused/bf16 consumer to halve pass-2
    HBM write traffic; default f32 matches the PyTorch module's semantics.
    """
    N, Cin, H, W = x_nchw.shape
    Cout = weight.shape[0]
    KH = KW = kernel_size
    padding = {3: 1, 5: 2, 7: 3, 9: 4}.get(kernel_size, 0)   # matches the spec
    Hout = (H + 2 * padding - KH) // stride + 1
    Wout = (W + 2 * padding - KW) // stride + 1
    Hp, Wp = H + 2 * padding, W + 2 * padding
    HW = Hout * Wout
    Cpad = max(128, ((Cout + 127) // 128) * 128)             # lane-dense chans
    CBLK = 256 if Cpad % 256 == 0 else 128                   # MXU-width blocks
    Kpk = KH * KW * Cin                                      # packed K dim
    RB = _pick_rb(Hout, Wout)
    CHUNK_M = RB * Wout
    vmem_limit = _vmem_limit_bytes()

    # --- layout glue: cast to bf16 FIRST, then transpose + pad (cheaper) ----
    # TODO(synk): external API stays PyTorch NCHW; in a fused pipeline the
    # NCHW->NHWC transpose should be pushed onto the producer.
    x = jnp.transpose(x_nchw.astype(jnp.bfloat16), (0, 2, 3, 1))
    xp = jnp.pad(x, ((0, 0), (padding, padding), (padding, padding), (0, 0)))

    # (Cout, Cin, KH, KW) -> tap-major (KH*KW*Cin, Cpad), zero-padded channels,
    # matching the packing order of the scratch LHS (tap-major, Cin-minor).
    w = jnp.transpose(weight.astype(jnp.bfloat16), (2, 3, 1, 0))  # KH,KW,Cin,Co
    w = w.reshape(Kpk, Cout)
    w = jnp.pad(w, ((0, 0), (0, Cpad - Cout)))

    # ---------------- pass 1: tap-packed conv + partial stats ---------------
    # TODO(synk): for very large single-image inputs, sub-tile H with a manual
    # halo DMA (pl.ANY + pltpu.make_async_copy); overlapping (halo'd) input
    # blocks are not expressible with a plain BlockSpec, so the input block
    # here is the whole padded image per n (row bands are read from it).
    kernel1 = functools.partial(_conv_pass1_kernel, KH=KH, KW=KW, Cin=Cin,
                                RB=RB, Wout=Wout, stride=stride)
    flops1 = 2 * N * HW * Kpk * Cpad
    bytes1 = xp.size * 2 + w.size * 2 + N * HW * Cpad * 2 + N * 2 * Cpad * 4
    y_conv, stats = pl.pallas_call(
        kernel1,
        out_shape=(jax.ShapeDtypeStruct((N, HW, Cpad), jnp.bfloat16),
                   jax.ShapeDtypeStruct((N, 2, Cpad), jnp.float32)),
        grid_spec=pltpu.PrefetchScalarGridSpec(
            num_scalar_prefetch=0,
            grid=(N, Cpad // CBLK, Hout // RB),
            in_specs=[
                pl.BlockSpec((1, Hp, Wp, Cin), lambda n, c, r: (n, 0, 0, 0)),
                pl.BlockSpec((Kpk, CBLK), lambda n, c, r: (0, c)),
            ],
            out_specs=[
                pl.BlockSpec((1, CHUNK_M, CBLK), lambda n, c, r: (n, r, c)),
                pl.BlockSpec((1, 2, CBLK), lambda n, c, r: (n, 0, c)),
            ],
            scratch_shapes=[pltpu.VMEM((RB, Wout, Kpk), jnp.bfloat16)],
        ),
        compiler_params=pltpu.CompilerParams(
            dimension_semantics=("parallel", "parallel", "arbitrary"),
            vmem_limit_bytes=vmem_limit),
        cost_estimate=pl.CostEstimate(flops=flops1, transcendentals=0,
                                      bytes_accessed=bytes1),
    )(xp, w)

    # ---- tiny per-channel glue: fold BN (batch stats) into scale/shift -----
    if bn_act:
        count = N * HW
        ssum = jnp.sum(stats[:, 0, :], axis=0)
        ssq = jnp.sum(stats[:, 1, :], axis=0)
        mean = ssum / count
        var = jnp.maximum(ssq / count - mean * mean, 0.0)
        g = jnp.pad(gamma.astype(jnp.float32), (0, Cpad - Cout))
        b = jnp.pad(beta.astype(jnp.float32), (0, Cpad - Cout))
        scale = g * lax.rsqrt(var + eps)
        shift = b - mean * scale
    else:
        bb = (jnp.zeros((Cout,), jnp.float32) if bias is None
              else bias.astype(jnp.float32))
        scale = jnp.ones((Cpad,), jnp.float32)
        shift = jnp.pad(bb, (0, Cpad - Cout))
    scale = scale.reshape(1, Cpad)
    shift = shift.reshape(1, Cpad)

    # ---------- pass 2: scale/shift + LeakyReLU, output directly NCHW -------
    TM = HW if HW <= 2048 else 2048          # 2048 is a multiple of 128 and 8
    kernel2 = functools.partial(_bn_act_to_nchw_kernel,
                                negative_slope=negative_slope,
                                apply_act=bn_act, cout=Cout)
    out_itemsize = jnp.dtype(out_dtype).itemsize
    out_flat = pl.pallas_call(
        kernel2,
        out_shape=jax.ShapeDtypeStruct((N, Cout, HW), out_dtype),
        grid_spec=pl.GridSpec(
            grid=(N, pl.cdiv(HW, TM)),
            in_specs=[
                pl.BlockSpec((1, TM, Cpad), lambda n, t: (n, t, 0)),
                pl.BlockSpec((1, Cpad), lambda n, t: (0, 0)),
                pl.BlockSpec((1, Cpad), lambda n, t: (0, 0)),
            ],
            out_specs=pl.BlockSpec((1, Cout, TM), lambda n, t: (n, 0, t)),
        ),
        compiler_params=pltpu.CompilerParams(
            dimension_semantics=("parallel", "parallel"),
            vmem_limit_bytes=vmem_limit),
        cost_estimate=pl.CostEstimate(
            flops=4 * N * HW * Cpad, transcendentals=0,
            bytes_accessed=(N * HW * Cpad * 2 + N * Cout * HW * out_itemsize
                            + 2 * Cpad * 4)),
    )(y_conv, scale, shift)

    # Free metadata reshape (already NCHW, real channels only).
    return out_flat.reshape(N, Cout, Hout, Wout)


if __name__ == "__main__":
    key = jax.random.PRNGKey(0)
    k1, k2, k3, k4 = jax.random.split(key, 4)

    # Small shapes consistent with the module: NCHW, Cin=4 -> Cout=8, 3x3.
    N, Cin, H, W = 2, 4, 16, 16
    Cout, ks = 8, 3

    x = jax.random.normal(k1, (N, Cin, H, W), jnp.float32)
    fan_in = Cin * ks * ks
    weight = jax.random.normal(k2, (Cout, Cin, ks, ks), jnp.float32) / jnp.sqrt(fan_in)
    gamma = 1.0 + 0.1 * jax.random.normal(k3, (Cout,), jnp.float32)
    beta = 0.1 * jax.random.normal(k4, (Cout,), jnp.float32)

    fwd = jax.jit(functools.partial(conv_forward, kernel_size=ks, stride=1,
                                    bn_act=True))
    out = jax.block_until_ready(fwd(x, weight, gamma, beta))

    # Pure-JAX f32 reference: conv -> training-mode BN -> LeakyReLU(0.1).
    y = lax.conv_general_dilated(x, weight, (1, 1), ((1, 1), (1, 1)),
                                 dimension_numbers=("NCHW", "OIHW", "NCHW"),
                                 precision=lax.Precision.HIGHEST)
    mean = jnp.mean(y, axis=(0, 2, 3), keepdims=True)
    var = jnp.mean((y - mean) ** 2, axis=(0, 2, 3), keepdims=True)
    yn = (y - mean) * lax.rsqrt(var + 1e-5) \
        * gamma.reshape(1, Cout, 1, 1) + beta.reshape(1, Cout, 1, 1)
    ref = jnp.where(yn >= 0, yn, 0.1 * yn)

    assert out.shape == ref.shape == (N, Cout, H, W)
    err = float(jnp.max(jnp.abs(out - ref)))
    # bf16 MXU feed + bf16 conv intermediate -> loosened tolerance vs f32 ref.
    assert err < 5e-2, err
    print("KERNEL_OK")
</pallas_src>

<mosaic_0001>
module attributes {stable_mosaic.version = 11 : i64} {
  func.func @_conv_pass1_kernel(%arg0: i32, %arg1: i32, %arg2: i32, %arg3: memref<1x18x18x4xbf16, #tpu.memory_space<vmem>>, %arg4: memref<36x128xbf16, #tpu.memory_space<vmem>>, %arg5: memref<1x256x128xbf16, #tpu.memory_space<vmem>>, %arg6: memref<1x2x128xf32, #tpu.memory_space<vmem>>, %arg7: memref<16x16x36xbf16, #tpu.memory_space<vmem>>) attributes {dimension_semantics = [#tpu.dimension_semantics<parallel>, #tpu.dimension_semantics<parallel>, #tpu.dimension_semantics<arbitrary>], iteration_bounds = array<i64: 2, 1, 1>, scalar_prefetch = 0 : i64, scratch_operands = 1 : i64, tpu.core_type = #tpu.core_type<tc>, window_params = [{transform_indices = @transform_0, window_bounds = array<i64: 1, 18, 18, 4>}, {transform_indices = @transform_1, window_bounds = array<i64: 36, 128>}, {transform_indices = @transform_2, window_bounds = array<i64: 1, 256, 128>}, {transform_indices = @transform_3, window_bounds = array<i64: 1, 2, 128>}]} {
    %c0_i32 = arith.constant 0 : i32
    %0 = arith.cmpi eq, %arg2, %c0_i32 : i32
    %1 = arith.extui %0 : i1 to i32
    %c0_i32_0 = arith.constant 0 : i32
    %2 = arith.cmpi ne, %1, %c0_i32_0 : i32
    scf.if %2 {
      %cst_74 = arith.constant 0.000000e+00 : f32
      %76 = vector.broadcast %cst_74 : f32 to vector<1x2x128xf32>
      %c0_75 = arith.constant 0 : index
      %c0_76 = arith.constant 0 : index
      %c0_77 = arith.constant 0 : index
      %77 = vector.load %arg6[%c0_75, %c0_76, %c0_77] : memref<1x2x128xf32, #tpu.memory_space<vmem>>, vector<1x2x128xf32>
      tpu.vector_store %arg6[%c0_75, %c0_76, %c0_77], %76 {strides = array<i32>} : memref<1x2x128xf32, #tpu.memory_space<vmem>>, vector<1x2x128xf32>,
    } else {
    }
    %c16_i32 = arith.constant 16 : i32
    %3 = arith.muli %arg2, %c16_i32 : i32
    %c1_i32 = arith.constant 1 : i32
    %4 = arith.muli %3, %c1_i32 : i32
    %5 = tpu.assume_multiple %4, 16 : i32
    %c0_i32_1 = arith.constant 0 : i32
    %6 = arith.addi %5, %c0_i32_1 : i32
    %c0 = arith.constant 0 : index
    %7 = arith.index_cast %6 : i32 to index
    %c0_2 = arith.constant 0 : index
    %c0_3 = arith.constant 0 : index
    %8 = vector.load %arg3[%c0, %7, %c0_2, %c0_3] : memref<1x18x18x4xbf16, #tpu.memory_space<vmem>>, vector<1x16x16x4xbf16>
    %9 = vector.shape_cast %8 : vector<1x16x16x4xbf16> to vector<16x16x4xbf16>
    %c0_4 = arith.constant 0 : index
    %c0_5 = arith.constant 0 : index
    %c0_6 = arith.constant 0 : index
    %10 = vector.load %arg7[%c0_4, %c0_5, %c0_6] : memref<16x16x36xbf16, #tpu.memory_space<vmem>>, vector<16x16x4xbf16>
    tpu.vector_store %arg7[%c0_4, %c0_5, %c0_6], %9 {strides = array<i32>} : memref<16x16x36xbf16, #tpu.memory_space<vmem>>, vector<16x16x4xbf16>,
    %c0_i32_7 = arith.constant 0 : i32
    %11 = arith.addi %5, %c0_i32_7 : i32
    %c0_8 = arith.constant 0 : index
    %12 = arith.index_cast %11 : i32 to index
    %c1 = arith.constant 1 : index
    %c0_9 = arith.constant 0 : index
    %13 = vector.load %arg3[%c0_8, %12, %c1, %c0_9] : memref<1x18x18x4xbf16, #tpu.memory_space<vmem>>, vector<1x16x16x4xbf16>
    %14 = vector.shape_cast %13 : vector<1x16x16x4xbf16> to vector<16x16x4xbf16>
    %c0_10 = arith.constant 0 : index
    %c0_11 = arith.constant 0 : index
    %c4 = arith.constant 4 : index
    %15 = vector.load %arg7[%c0_10, %c0_11, %c4] : memref<16x16x36xbf16, #tpu.memory_space<vmem>>, vector<16x16x4xbf16>
    tpu.vector_store %arg7[%c0_10, %c0_11, %c4], %14 {strides = array<i32>} : memref<16x16x36xbf16, #tpu.memory_space<vmem>>, vector<16x16x4xbf16>,
    %c0_i32_12 = arith.constant 0 : i32
    %16 = arith.addi %5, %c0_i32_12 : i32
    %c0_13 = arith.constant 0 : index
    %17 = arith.index_cast %16 : i32 to index
    %c2 = arith.constant 2 : index
    %c0_14 = arith.constant 0 : index
    %18 = vector.load %arg3[%c0_13, %17, %c2, %c0_14] : memref<1x18x18x4xbf16, #tpu.memory_space<vmem>>, vector<1x16x16x4xbf16>
    %19 = vector.shape_cast %18 : vector<1x16x16x4xbf16> to vector<16x16x4xbf16>
    %c0_15 = arith.constant 0 : index
    %c0_16 = arith.constant 0 : index
    %c8 = arith.constant 8 : index
    %20 = vector.load %arg7[%c0_15, %c0_16, %c8] : memref<16x16x36xbf16, #tpu.memory_space<vmem>>, vector<16x16x4xbf16>
    tpu.vector_store %arg7[%c0_15, %c0_16, %c8], %19 {strides = array<i32>} : memref<16x16x36xbf16, #tpu.memory_space<vmem>>, vector<16x16x4xbf16>,
    %c1_i32_17 = arith.constant 1 : i32
    %21 = arith.addi %5, %c1_i32_17 : i32
    %c0_18 = arith.constant 0 : index
    %22 = arith.index_cast %21 : i32 to index
    %c0_19 = arith.constant 0 : index
    %c0_20 = arith.constant 0 : index
    %23 = vector.load %arg3[%c0_18, %22, %c0_19, %c0_20] : memref<1x18x18x4xbf16, #tpu.memory_space<vmem>>, vector<1x16x16x4xbf16>
    %24 = vector.shape_cast %23 : vector<1x16x16x4xbf16> to vector<16x16x4xbf16>
    %c0_21 = arith.constant 0 : index
    %c0_22 = arith.constant 0 : index
    %c12 = arith.constant 12 : index
    %25 = vector.load %arg7[%c0_21, %c0_22, %c12] : memref<16x16x36xbf16, #tpu.memory_space<vmem>>, vector<16x16x4xbf16>
    tpu.vector_store %arg7[%c0_21, %c0_22, %c12], %24 {strides = array<i32>} : memref<16x16x36xbf16, #tpu.memory_space<vmem>>, vector<16x16x4xbf16>,
    %c1_i32_23 = arith.constant 1 : i32
    %26 = arith.addi %5, %c1_i32_23 : i32
    %c0_24 = arith.constant 0 : index
    %27 = arith.index_cast %26 : i32 to index
    %c1_25 = arith.constant 1 : index
    %c0_26 = arith.constant 0 : index
    %28 = vector.load %arg3[%c0_24, %27, %c1_25, %c0_26] : memref<1x18x18x4xbf16, #tpu.memory_space<vmem>>, vector<1x16x16x4xbf16>
    %29 = vector.shape_cast %28 : vector<1x16x16x4xbf16> to vector<16x16x4xbf16>
    %c0_27 = arith.constant 0 : index
    %c0_28 = arith.constant 0 : index
    %c16 = arith.constant 16 : index
    %30 = vector.load %arg7[%c0_27, %c0_28, %c16] : memref<16x16x36xbf16, #tpu.memory_space<vmem>>, vector<16x16x4xbf16>
    tpu.vector_store %arg7[%c0_27, %c0_28, %c16], %29 {strides = array<i32>} : memref<16x16x36xbf16, #tpu.memory_space<vmem>>, vector<16x16x4xbf16>,
    %c1_i32_29 = arith.constant 1 : i32
    %31 = arith.addi %5, %c1_i32_29 : i32
    %c0_30 = arith.constant 0 : index
    %32 = arith.index_cast %31 : i32 to index
    %c2_31 = arith.constant 2 : index
    %c0_32 = arith.constant 0 : index
    %33 = vector.load %arg3[%c0_30, %32, %c2_31, %c0_32] : memref<1x18x18x4xbf16, #tpu.memory_space<vmem>>, vector<1x16x16x4xbf16>
    %34 = vector.shape_cast %33 : vector<1x16x16x4xbf16> to vector<16x16x4xbf16>
    %c0_33 = arith.constant 0 : index
    %c0_34 = arith.constant 0 : index
    %c20 = arith.constant 20 : index
    %35 = vector.load %arg7[%c0_33, %c0_34, %c20] : memref<16x16x36xbf16, #tpu.memory_space<vmem>>, vector<16x16x4xbf16>
    tpu.vector_store %arg7[%c0_33, %c0_34, %c20], %34 {strides = array<i32>} : memref<16x16x36xbf16, #tpu.memory_space<vmem>>, vector<16x16x4xbf16>,
    %c2_i32 = arith.constant 2 : i32
    %36 = arith.addi %5, %c2_i32 : i32
    %c0_35 = arith.constant 0 : index
    %37 = arith.index_cast %36 : i32 to index
    %c0_36 = arith.constant 0 : index
    %c0_37 = arith.constant 0 : index
    %38 = vector.load %arg3[%c0_35, %37, %c0_36, %c0_37] : memref<1x18x18x4xbf16, #tpu.memory_space<vmem>>, vector<1x16x16x4xbf16>
    %39 = vector.shape_cast %38 : vector<1x16x16x4xbf16> to vector<16x16x4xbf16>
    %c0_38 = arith.constant 0 : index
    %c0_39 = arith.constant 0 : index
    %c24 = arith.constant 24 : index
    %40 = vector.load %arg7[%c0_38, %c0_39, %c24] : memref<16x16x36xbf16, #tpu.memory_space<vmem>>, vector<16x16x4xbf16>
    tpu.vector_store %arg7[%c0_38, %c0_39, %c24], %39 {strides = array<i32>} : memref<16x16x36xbf16, #tpu.memory_space<vmem>>, vector<16x16x4xbf16>,
    %c2_i32_40 = arith.constant 2 : i32
    %41 = arith.addi %5, %c2_i32_40 : i32
    %c0_41 = arith.constant 0 : index
    %42 = arith.index_cast %41 : i32 to index
    %c1_42 = arith.constant 1 : index
    %c0_43 = arith.constant 0 : index
    %43 = vector.load %arg3[%c0_41, %42, %c1_42, %c0_43] : memref<1x18x18x4xbf16, #tpu.memory_space<vmem>>, vector<1x16x16x4xbf16>
    %44 = vector.shape_cast %43 : vector<1x16x16x4xbf16> to vector<16x16x4xbf16>
    %c0_44 = arith.constant 0 : index
    %c0_45 = arith.constant 0 : index
    %c28 = arith.constant 28 : index
    %45 = vector.load %arg7[%c0_44, %c0_45, %c28] : memref<16x16x36xbf16, #tpu.memory_space<vmem>>, vector<16x16x4xbf16>
    tpu.vector_store %arg7[%c0_44, %c0_45, %c28], %44 {strides = array<i32>} : memref<16x16x36xbf16, #tpu.memory_space<vmem>>, vector<16x16x4xbf16>,
    %c2_i32_46 = arith.constant 2 : i32
    %46 = arith.addi %5, %c2_i32_46 : i32
    %c0_47 = arith.constant 0 : index
    %47 = arith.index_cast %46 : i32 to index
    %c2_48 = arith.constant 2 : index
    %c0_49 = arith.constant 0 : index
    %48 = vector.load %arg3[%c0_47, %47, %c2_48, %c0_49] : memref<1x18x18x4xbf16, #tpu.memory_space<vmem>>, vector<1x16x16x4xbf16>
    %49 = vector.shape_cast %48 : vector<1x16x16x4xbf16> to vector<16x16x4xbf16>
    %c0_50 = arith.constant 0 : index
    %c0_51 = arith.constant 0 : index
    %c32 = arith.constant 32 : index
    %50 = vector.load %arg7[%c0_50, %c0_51, %c32] : memref<16x16x36xbf16, #tpu.memory_space<vmem>>, vector<16x16x4xbf16>
    tpu.vector_store %arg7[%c0_50, %c0_51, %c32], %49 {strides = array<i32>} : memref<16x16x36xbf16, #tpu.memory_space<vmem>>, vector<16x16x4xbf16>,
    %c0_52 = arith.constant 0 : index
    %c0_53 = arith.constant 0 : index
    %c0_54 = arith.constant 0 : index
    %51 = vector.load %arg7[%c0_52, %c0_53, %c0_54] : memref<16x16x36xbf16, #tpu.memory_space<vmem>>, vector<16x16x36xbf16>
    %52 = vector.shape_cast %51 : vector<16x16x36xbf16> to vector<256x36xbf16>
    %c0_55 = arith.constant 0 : index
    %c0_56 = arith.constant 0 : index
    %53 = vector.load %arg4[%c0_55, %c0_56] : memref<36x128xbf16, #tpu.memory_space<vmem>>, vector<36x128xbf16>
    %cst = arith.constant dense<0.000000e+00> : vector<256x128xf32>
    %54 = tpu.matmul %52, %53, %cst {dimension_numbers = #tpu.dot_dimension_numbers<[1], [0], [0], [1], [0, 0, 1, 1], [], []>} : vector<256x36xbf16>, vector<36x128xbf16>, vector<256x128xf32> -> vector<256x128xf32>
    %55 = arith.truncf %54 : vector<256x128xf32> to vector<256x128xbf16>
    %c0_57 = arith.constant 0 : index
    %c0_58 = arith.constant 0 : index
    %c0_59 = arith.constant 0 : index
    %56 = vector.load %arg5[%c0_57, %c0_58, %c0_59] : memref<1x256x128xbf16, #tpu.memory_space<vmem>>, vector<1x256x128xbf16>
    %57 = vector.shape_cast %56 : vector<1x256x128xbf16> to vector<256x128xbf16>
    %58 = vector.shape_cast %55 : vector<256x128xbf16> to vector<1x256x128xbf16>
    tpu.vector_store %arg5[%c0_57, %c0_58, %c0_59], %58 {strides = array<i32>} : memref<1x256x128xbf16, #tpu.memory_space<vmem>>, vector<1x256x128xbf16>,
    %c0_60 = arith.constant 0 : index
    %c0_61 = arith.constant 0 : index
    %c0_62 = arith.constant 0 : index
    %59 = vector.load %arg6[%c0_60, %c0_61, %c0_62] : memref<1x2x128xf32, #tpu.memory_space<vmem>>, vector<1x1x128xf32>
    %60 = vector.shape_cast %59 : vector<1x1x128xf32> to vector<1x128xf32>
    %cst_63 = arith.constant dense<0.000000e+00> : vector<128xf32>
    %61 = vector.multi_reduction <add>, %54, %cst_63 [0] : vector<256x128xf32> to vector<128xf32>
    %62 = vector.shape_cast %61 : vector<128xf32> to vector<1x128xf32>
    %63 = arith.addf %60, %62 : vector<1x128xf32>
    %c0_64 = arith.constant 0 : index
    %c0_65 = arith.constant 0 : index
    %c0_66 = arith.constant 0 : index
    %64 = vector.load %arg6[%c0_64, %c0_65, %c0_66] : memref<1x2x128xf32, #tpu.memory_space<vmem>>, vector<1x1x128xf32>
    %65 = vector.shape_cast %64 : vector<1x1x128xf32> to vector<1x128xf32>
    %66 = vector.shape_cast %63 : vector<1x128xf32> to vector<1x1x128xf32>
    tpu.vector_store %arg6[%c0_64, %c0_65, %c0_66], %66 {strides = array<i32>} : memref<1x2x128xf32, #tpu.memory_space<vmem>>, vector<1x1x128xf32>,
    %c0_67 = arith.constant 0 : index
    %c1_68 = arith.constant 1 : index
    %c0_69 = arith.constant 0 : index
    %67 = vector.load %arg6[%c0_67, %c1_68, %c0_69] : memref<1x2x128xf32, #tpu.memory_space<vmem>>, vector<1x1x128xf32>
    %68 = vector.shape_cast %67 : vector<1x1x128xf32> to vector<1x128xf32>
    %69 = arith.mulf %54, %54 : vector<256x128xf32>
    %cst_70 = arith.constant dense<0.000000e+00> : vector<128xf32>
    %70 = vector.multi_reduction <add>, %69, %cst_70 [0] : vector<256x128xf32> to vector<128xf32>
    %71 = vector.shape_cast %70 : vector<128xf32> to vector<1x128xf32>
    %72 = arith.addf %68, %71 : vector<1x128xf32>
    %c0_71 = arith.constant 0 : index
    %c1_72 = arith.constant 1 : index
    %c0_73 = arith.constant 0 : index
    %73 = vector.load %arg6[%c0_71, %c1_72, %c0_73] : memref<1x2x128xf32, #tpu.memory_space<vmem>>, vector<1x1x128xf32>
    %74 = vector.shape_cast %73 : vector<1x1x128xf32> to vector<1x128xf32>
    %75 = vector.shape_cast %72 : vector<1x128xf32> to vector<1x1x128xf32>
    tpu.vector_store %arg6[%c0_71, %c1_72, %c0_73], %75 {strides = array<i32>} : memref<1x2x128xf32, #tpu.memory_space<vmem>>, vector<1x1x128xf32>,
    return
  }
  func.func @transform_0(%arg0: i32, %arg1: i32, %arg2: i32) -> (i32, i32, i32, i32) {
    %c0_i32 = arith.constant 0 : i32
    %c0_i32_0 = arith.constant 0 : i32
    %c0_i32_1 = arith.constant 0 : i32
    %c0_i32_2 = arith.constant 0 : i32
    return %arg0, %c0_i32, %c0_i32_0, %c0_i32_1 : i32, i32, i32, i32
  }
  func.func @transform_1(%arg0: i32, %arg1: i32, %arg2: i32) -> (i32, i32) {
    %c0_i32 = arith.constant 0 : i32
    %c0_i32_0 = arith.constant 0 : i32
    return %c0_i32, %arg1 : i32, i32
  }
  func.func @transform_2(%arg0: i32, %arg1: i32, %arg2: i32) -> (i32, i32, i32) {
    %c0_i32 = arith.constant 0 : i32
    return %arg0, %arg2, %arg1 : i32, i32, i32
  }
  func.func @transform_3(%arg0: i32, %arg1: i32, %arg2: i32) -> (i32, i32, i32) {
    %c0_i32 = arith.constant 0 : i32
    %c0_i32_0 = arith.constant 0 : i32
    return %arg0, %c0_i32, %arg1 : i32, i32, i32
  }
}

module attributes {stable_mosaic.version = 11 : i64} {
  func.func @_bn_act_to_nchw_kernel(%arg0: i32, %arg1: i32, %arg2: memref<1x256x128xbf16, #tpu.memory_space<vmem>>, %arg3: memref<1x128xf32, #tpu.memory_space<vmem>>, %arg4: memref<1x128xf32, #tpu.memory_space<vmem>>, %arg5: memref<1x8x256xf32, #tpu.memory_space<vmem>>) attributes {dimension_semantics = [#tpu.dimension_semantics<parallel>, #tpu.dimension_semantics<parallel>], iteration_bounds = array<i64: 2, 1>, scalar_prefetch = 0 : i64, scratch_operands = 0 : i64, tpu.core_type = #tpu.core_type<tc>, window_params = [{transform_indices = @transform_0, window_bounds = array<i64: 1, 256, 128>}, {pipeline_mode = #tpu.pipeline_mode<synchronous>, transform_indices = @transform_1, window_bounds = array<i64: 1, 128>}, {pipeline_mode = #tpu.pipeline_mode<synchronous>, transform_indices = @transform_2, window_bounds = array<i64: 1, 128>}, {transform_indices = @transform_3, window_bounds = array<i64: 1, 8, 256>}]} {
    %c0 = arith.constant 0 : index
    %c0_0 = arith.constant 0 : index
    %c0_1 = arith.constant 0 : index
    %0 = vector.load %arg2[%c0, %c0_0, %c0_1] : memref<1x256x128xbf16, #tpu.memory_space<vmem>>, vector<1x256x128xbf16>
    %1 = vector.shape_cast %0 : vector<1x256x128xbf16> to vector<256x128xbf16>
    %2 = arith.extf %1 : vector<256x128xbf16> to vector<256x128xf32>
    %c0_2 = arith.constant 0 : index
    %c0_3 = arith.constant 0 : index
    %3 = vector.load %arg3[%c0_2, %c0_3] : memref<1x128xf32, #tpu.memory_space<vmem>>, vector<1x128xf32>
    %4 = vector.broadcast %3 : vector<1x128xf32> to vector<256x128xf32>
    %5 = arith.mulf %2, %4 : vector<256x128xf32>
    %c0_4 = arith.constant 0 : index
    %c0_5 = arith.constant 0 : index
    %6 = vector.load %arg4[%c0_4, %c0_5] : memref<1x128xf32, #tpu.memory_space<vmem>>, vector<1x128xf32>
    %7 = vector.broadcast %6 : vector<1x128xf32> to vector<256x128xf32>
    %8 = arith.addf %5, %7 : vector<256x128xf32>
    %cst = arith.constant 0.000000e+00 : f32
    %9 = vector.broadcast %cst : f32 to vector<256x128xf32>
    %10 = arith.cmpf oge, %8, %9 : vector<256x128xf32>
    %cst_6 = arith.constant 1.000000e-01 : f32
    %11 = vector.broadcast %cst_6 : f32 to vector<256x128xf32>
    %12 = arith.mulf %11, %8 : vector<256x128xf32>
    %13 = arith.select %10, %8, %12 : vector<256x128xi1>, vector<256x128xf32>
    %14 = tpu.transpose %13, [1, 0] : vector<256x128xf32> -> vector<128x256xf32>
    %15 = vector.extract_strided_slice %14 {offsets = [0, 0], sizes = [8, 256], strides = [1, 1]} : vector<128x256xf32> to vector<8x256xf32>
    %c0_7 = arith.constant 0 : index
    %c0_8 = arith.constant 0 : index
    %c0_9 = arith.constant 0 : index
    %16 = vector.load %arg5[%c0_7, %c0_8, %c0_9] : memref<1x8x256xf32, #tpu.memory_space<vmem>>, vector<1x8x256xf32>
    %17 = vector.shape_cast %16 : vector<1x8x256xf32> to vector<8x256xf32>
    %18 = vector.shape_cast %15 : vector<8x256xf32> to vector<1x8x256xf32>
    tpu.vector_store %arg5[%c0_7, %c0_8, %c0_9], %18 {strides = array<i32>} : memref<1x8x256xf32, #tpu.memory_space<vmem>>, vector<1x8x256xf32>,
    return
  }
  func.func @transform_0(%arg0: i32, %arg1: i32) -> (i32, i32, i32) {
    %c0_i32 = arith.constant 0 : i32
    %c0_i32_0 = arith.constant 0 : i32
    return %arg0, %arg1, %c0_i32 : i32, i32, i32
  }
  func.func @transform_1(%arg0: i32, %arg1: i32) -> (i32, i32) {
    %c0_i32 = arith.constant 0 : i32
    %c0_i32_0 = arith.constant 0 : i32
    %c0_i32_1 = arith.constant 0 : i32
    return %c0_i32, %c0_i32_0 : i32, i32
  }
  func.func @transform_2(%arg0: i32, %arg1: i32) -> (i32, i32) {
    %c0_i32 = arith.constant 0 : i32
    %c0_i32_0 = arith.constant 0 : i32
    %c0_i32_1 = arith.constant 0 : i32
    return %c0_i32, %c0_i32_0 : i32, i32
  }
  func.func @transform_3(%arg0: i32, %arg1: i32) -> (i32, i32, i32) {
    %c0_i32 = arith.constant 0 : i32
    %c0_i32_0 = arith.constant 0 : i32
    return %arg0, %c0_i32, %arg1 : i32, i32, i32
  }
}

</mosaic_0001>

<bundles_post_ra>
// kernel: conv_forward.3
= control target key start
LH: loop header
LB: loop body
LE: loop exit
PB: predicated region body
PF: predicated region fallthrough
CT: control target
= control target key end

     0   :  { %8 = vsyncpa [#allocation3], 0  ;;  %s1382_s0 = inlined_call_operand.hbm [shape: bf16[2,256,128], index: 0, kind: input, shape index: {}]   ;;  %s1383_s1 = inlined_call_operand.hbm [shape: f32[1,128], index: 1, kind: input, shape index: {}]   ;;  %s1384_s2 = inlined_call_operand.hbm [shape: f32[1,128], index: 2, kind: input, shape index: {}]   ;;  %s1385_s3 = inlined_call_operand.hbm [shape: f32[2,8,256], index: 3, kind: output, shape index: {}]  }
   0x1   :  { %10 = vsyncpa [#allocation3 + $0x1], 0 }
   0x2   :  { %11 = vsyncpa [#allocation6], 0 }
   0x3   :  { %12 = vsyncpa [#allocation4], 0 }
   0x4   :  { %14 = vsyncpa [#allocation4 + $0x1], 0  ;;  %s1045_s12 = smov 0   ;;  %s1047_s13 = smov 0  }
   0x5   :  { %s1049_s14 = smov 0   ;;  %s1051_s15 = smov 0  }
   0x6   :  { %s1053_s16 = smov 0   ;;  %s1055_s17 = smov 0  }
   0x7 LB: > { %s658_s18 = sadd.s32 4294967295, %s1017_s17   ;;  %s659_s19 = sadd.s32 4294967294, %s1017_s17   ;;  %s1017_s17 = sphi %s1055_s17, %s20_s17   ;;  %s1013_s16 = sphi %s1053_s16, %s1411_s16   ;;  %s1009_s15 = sphi %s1051_s15, %s1410_s15   ;;  %s1005_s14 = sphi %s1049_s14, %s1409_s14   ;;  %s1001_s13 = sphi %s1047_s13, %s1408_s13   ;;  %s997_s12 = sphi %s1045_s12, %s1407_s12  }
   0x8   : > { %s41_s20 = sadd.s32 1, %s1005_s14  ;;  %p48_p0 = scmp.ne.s32.totalorder %s1005_s14, %s1001_s13 }
   0x9   : > { %p49_p1 = scmp.eq.s32.totalorder %s1017_s17, 0  ;;  %p54_p2 = scmp.ne.s32.totalorder %s1001_s13, %s997_s12 }
   0xa   : > { %p1083_p3 = scmp.eq.s32.totalorder %s658_s18, 0  ;;  %p122_p4 = scmp.eq.s32.totalorder %s658_s18, 1 }
   0xb   : > { %p1087_p5 = por %p49_p1, %p48_p0  ;;  %p128_p6 = scmp.eq.s32.totalorder %s659_s19, 1 }
   0xc   : > { %s1392_s21 = scalar_select %p1083_p3, 1, 0 }
   0xd   : > { %p1093_p7 = por %p1083_p3, %p54_p2  ;;  %p1097_p8 = por %p122_p4, %p48_p0 }
   0xe   : > { %p1101_p9 = por %p128_p6, %p54_p2  ;;  %p660_p10 = scmp.ge.s32.totalorder %s1017_s17, 1 }
   0xf   : > { %s1394_s23 = scalar_select %p1093_p7, 1, 0 }
  0x10   : > { %s1395_s24 = scalar_select %p1097_p8, 1, 0 }
  0x11   : > { %s1396_s25 = scalar_select %p1101_p9, 1, 0 }
  0x12   : > { %p135_p11 = scmp.lt.s32.totalorder %s1017_s17, 3  ;;  %s1019_s27 = smov [#allocation5]  }
  0x13   : > { %s148_s28 = sshll.u32 %s1019_s27, 4  ;;  %p789_p1 = scmp.lt.s32.totalorder %s1017_s17, 2  ;;  %s149_s28 = int_to_ptr.vmem [resolvable:$true] %s148_s28 }
  0x14   : > { %p1108_p13 = pnand %p660_p10, %p135_p11  ;;  %s1020_s30 = smov [#allocation7]  }
  0x15   : > { %p1117_p4 = pnand %p789_p1, %p1087_p5  ;;  %s159_s4 = sshll.u32 %s1020_s30, 4  ;;  %s1127_s4 = int_to_ptr.vmem [resolvable:$true] %s159_s4 }
  0x16   : > { %s1397_s26 = scalar_select %p1108_p13, 1, 0 }
  0x17   : > { %p772_p0 = pneg %p1108_p13  ;;  %s845_s8 = scalar_lea.hbm %s1383_s1, 16 }
  0x18   : > { %s1398_s29 = scalar_select %p1117_p4, 1, 0 }
  0x19   : > { %p1123_p2 = pnand %p772_p0, %p1083_p3  ;;  %p846_p5 = scmp.ne.s32.totalorder %s1383_s1, %s845_s8 }
  0x1a   : > { %p852_p1 = scmp.lt.u32.totalorder %s845_s8, %s1383_s1 }
  0x1b   : > { %p847_p6 = pneg %p1123_p2 }
  0x1d   : > { %p848_p10 = pnand %p847_p6, %p846_p5 }
  0x1f   : > { %p849_p11 = pneg %p848_p10 }
  0x21   : > { %p854_p0 = pnand %p852_p1, %p849_p11 }
  0x23   : > { %857 = shalt.err (!%p854_p0)
}
  0x24   : > { %s858_s19 = scalar_lea.vmem %s149_s28, 16  ;;  %s865_s22 = scalar_lea.vmem %s149_s28, 32 }
  0x25   : > { %p859_p12 = scmp.ne.s32.totalorder %s149_s28, %s858_s19  ;;  %p866_p3 = scmp.lt.s32.totalorder %s149_s28, %s149_s28 }
  0x26   : > { %p867_p7 = scmp.lt.s32.totalorder %s865_s22, %s858_s19 }
  0x27   : > { %p861_p9 = pnand %p859_p12, %p847_p6 }
  0x28   : > { %p868_p13 = por %p867_p7, %p866_p3 }
  0x29   : > { %p862_p8 = pneg %p861_p9 }
  0x2b   : > { %p869_p4 = pnand %p868_p13, %p862_p8 }
  0x2d   : > { %872 = shalt.err (!%p869_p4)
}
  0x2e   : > { %775 = dma.hbm_to_vmem [thread:$0]  (!%p1123_p2), %s1383_s1, 16, %s149_s28, [#allocation6]  }
  0x2f   : > { %s873_s8 = scalar_lea.hbm %s1384_s2, 16 }
  0x30   : > { %p874_p9 = scmp.ne.s32.totalorder %s1384_s2, %s873_s8  ;;  %p880_p8 = scmp.lt.u32.totalorder %s873_s8, %s1384_s2 }
  0x32   : > { %p876_p3 = pnand %p874_p9, %p847_p6 }
  0x34   : > { %p877_p7 = pneg %p876_p3 }
  0x36   : > { %p882_p12 = pnand %p880_p8, %p877_p7 }
  0x38   : > { %885 = shalt.err (!%p882_p12)
}
  0x39   : > { %s886_s28 = scalar_lea.vmem %s1127_s4, 16  ;;  %s893_s19 = scalar_lea.vmem %s1127_s4, 32 }
  0x3a   : > { %p887_p13 = scmp.ne.s32.totalorder %s1127_s4, %s886_s28  ;;  %p894_p10 = scmp.lt.s32.totalorder %s1127_s4, %s1127_s4 }
  0x3b   : > { %p895_p11 = scmp.lt.s32.totalorder %s893_s19, %s886_s28 }
  0x3c   : > { %p889_p4 = pnand %p887_p13, %p847_p6 }
  0x3d   : > { %p896_p1 = por %p895_p11, %p894_p10 }
  0x3e   : > { %p890_p5 = pneg %p889_p4 }
  0x40   : > { %p897_p0 = pnand %p896_p1, %p890_p5 }
  0x42   : > { %900 = shalt.err (!%p897_p0)
}
  0x43   : > { %778 = dma.hbm_to_vmem [thread:$0]  (!%p1123_p2), %s1384_s2, 16, %s1127_s4, [#allocation6]  }
  0x44   : > { %s32_s30 = sadd.s32 1, %s1013_s16  ;;  %s170_s6 = sand.u32 1, %s1005_s14  }
  0x45   : > { %p34_p6 = scmp.ge.s32.totalorder %s32_s30, 2  ;;  %s664_s7 = sshll.u32 %s170_s6, 7 }
  0x46   : > { %s679_s8 = sshll.u32 %s1013_s16, 11  ;;  %s174_s4 = scalar_lea.vmem [#allocation2], %s664_s7 }
  0x47   : > { %s1413_s30 = smov (%p34_p6, %s32_s30), 0  ;;  %s1185_s10 = scalar_lea.hbm %s1382_s0, %s679_s8 }
  0x48   : > { %s36_s11 = ssub.s32 %s1013_s16, %s1413_s30  ;;  %s183_s18 = sshll.u32 %s174_s4, 4  ;;  %s1189_s18 = int_to_ptr.vmem [resolvable:$true] %s183_s18 }
  0x49   : > { %p39_p2 = scmp.eq.s32.totalorder %s36_s11, 0  ;;  %s1196_s19 = scalar_lea.sflag [#allocation3], %s170_s6 }
  0x4a   : > { %s901_s22 = scalar_lea.hbm %s1185_s10, 2048  ;;  %p1400_p3 = scmp.ne.s32.totalorder %s1398_s29, 0 }
  0x4b   : > { %s1194_s28 = scalar_select %p39_p2, %s1005_s14, %s41_s20  }
  0x4c   : > { %p902_p9 = scmp.ne.s32.totalorder %s1185_s10, %s901_s22  ;;  %p903_p7 = pneg %p1400_p3 }
  0x4d   : > { %s906_s7 = scalar_lea.hbm %s1382_s0, 4096  ;;  %p907_p13 = scmp.lt.u32.totalorder %s1185_s10, %s1382_s0 }
  0x4e   : > { %p904_p8 = pnand %p903_p7, %p902_p9  ;;  %p908_p4 = scmp.lt.u32.totalorder %s906_s7, %s901_s22 }
  0x4f   : > { %p910_p10 = scmp.lt.u32.totalorder %s901_s22, %s1185_s10 }
  0x50   : > { %p905_p12 = pneg %p904_p8  ;;  %p909_p5 = por %p908_p4, %p907_p13 }
  0x52   : > { %p911_p11 = por %p910_p10, %p909_p5 }
  0x54   : > { %p912_p1 = pnand %p911_p11, %p905_p12 }
  0x56   : > { %915 = shalt.err (!%p912_p1)
}
  0x57   : > { %s916_s20 = scalar_lea.vmem %s1189_s18, 2048  ;;  %s1021_s6 = smov [#allocation2]  }
  0x58   : > { %p917_p0 = scmp.ne.s32.totalorder %s1189_s18, %s916_s20  ;;  %s921_s11 = sshll.u32 %s1021_s6, 4  ;;  %s922_s11 = int_to_ptr.vmem [resolvable:$false] %s921_s11 }
  0x59   : > { %s923_s4 = scalar_lea.vmem %s922_s11, 4096  ;;  %p924_p9 = scmp.lt.s32.totalorder %s1189_s18, %s922_s11 }
  0x5a   : > { %p919_p6 = pnand %p917_p0, %p903_p7  ;;  %p925_p8 = scmp.lt.s32.totalorder %s923_s4, %s916_s20 }
  0x5c   : > { %p920_p2 = pneg %p919_p6  ;;  %p926_p13 = por %p925_p8, %p924_p9 }
  0x5e   : > { %p927_p4 = pnand %p926_p13, %p920_p2 }
  0x60   : > { %930 = shalt.err (!%p927_p4)
}
  0x61   : > { %s1022_s22 = smov 64   ;;  %s1023_s27 = smov 4  }
  0x62   : > { %782 = dma.hbm_to_vmem [thread:$0]  (!%p1400_p3), %s1185_s10, 2048, %s1189_s18, %s1196_s19, %s1022_s22, %s1022_s22, %s1023_s27  }
  0x63   : > { %p1401_p7 = scmp.ne.s32.totalorder %s1397_s26, 0 }
  0x64   : > { %s1227_s8 = sand.u32 (!%p1401_p7), 1, %s1001_s13   ;;  %p1402_p12 = scmp.ne.s32.totalorder (!%p1401_p7), %s1394_s23, 0 }
  0x65   : > { %195 = sbr.rel (%p1401_p7) target bundleno = 267 (0x10b), region = 32  ;;  %s668_s7 = sshll.u32 (!%p1401_p7), %s1227_s8, 7 }
  0x66   : > { %s198_s5 = scalar_lea.sflag (!%p1401_p7), [#allocation3], %s1227_s8  ;;  %s1231_s9 = scalar_lea.vmem (!%p1401_p7), [#allocation2], %s668_s7 }
  0x6c   : > { %984 = dma.done.wait (%p1402_p12), %s198_s5, 2048  }
  0x6d   : > { %986 = vsyncadd (%p1402_p12), %s198_s5, 4294965248  ;;  %p1403_p3 = scmp.ne.s32.totalorder %s1392_s21, 0 }
  0x6f   : > { %988 = dma.done.wait (%p1403_p3), [#allocation6], 32  }
  0x70   : > { %990 = vsyncadd (%p1403_p3), [#allocation6], 4294967264  ;;  %v752_v0 = vld [vmem:[%s1231_s9 + $0x40] sm:$0xff]   ;;  %v753_v5 = vld [vmem:[%s1231_s9 + $0x48] sm:$0xff]   ;;  %s671_s21 = sshll.u32 %s1227_s8, 4  ;;  %s680_s29 = sshll.u32 %s1009_s15, 8 }
  0x71   : > { %v1242_v1 = vld [vmem:[#allocation5] ss:$0 sm:$0xff]  ;;  %v715_v2 = vunpack.c.l.bf16 %v752_v0  ;;  %v716_v4 = vunpack.c.h.bf16 %v752_v0  ;;  %v745_v6 = vld [vmem:[%s1231_s9 + $0x8] sm:$0xff]   ;;  %v1247_v7 = vld [vmem:[#allocation7] ss:$0 sm:$0xff]  ;;  %v719_v10 = vunpack.c.l.bf16 %v753_v5  ;;  %v720_v14 = vunpack.c.h.bf16 %v753_v5  ;;  %s231_s23 = scalar_lea.vmem [#allocation8], %s671_s21  ;;  %s1335_s19 = scalar_lea.hbm %s1385_s3, %s680_s29 }
  0x72   : > { %v682_v3 = vld [vmem:[%s1231_s9] sm:$0xff]   ;;  %v687_v11 = vunpack.c.l.bf16 %v745_v6  ;;  %v688_v15 = vunpack.c.h.bf16 %v745_v6  ;;  %v754_v30 = vld [vmem:[%s1231_s9 + $0x50] sm:$0xff]   ;;  %v755_v46 = vld [vmem:[%s1231_s9 + $0x58] sm:$0xff]   ;;  %s555_s26 = sshll.u32 %s231_s23, 4  ;;  %s539_s20 = scalar_lea.sflag [#allocation4], %s1227_s8  ;;  %s1330_s26 = int_to_ptr.vmem [resolvable:$true] %s555_s26 }
  0x73   : > { %v683_v8 = vunpack.c.l.bf16 %v682_v3  ;;  %v684_v9 = vunpack.c.h.bf16 %v682_v3  ;;  %v321_v12 = vmul.f32 %v715_v2, %v1242_v1  ;;  %v322_v13 = vmul.f32 %v716_v4, %v1242_v1  ;;  %v746_v35 = vld [vmem:[%s1231_s9 + $0x10] sm:$0xff]   ;;  %v747_v49 = vld [vmem:[%s1231_s9 + $0x18] sm:$0xff]   ;;  %s931_s6 = scalar_lea.vmem %s1330_s26, 256  ;;  %p1404_p10 = scmp.ne.s32.totalorder %s1395_s24, 0 }
  0x74   : > { %v323_v18 = vmul.f32 %v719_v10, %v1242_v1  ;;  %v307_v19 = vmul.f32 %v687_v11, %v1242_v1  ;;  %v324_v22 = vmul.f32 %v720_v14, %v1242_v1  ;;  %v308_v29 = vmul.f32 %v688_v15, %v1242_v1  ;;  %p932_p5 = scmp.ne.s32.totalorder %s1330_s26, %s931_s6  ;;  %s1024_s15 = smov [#allocation8]  }
  0x75   : > { %v305_v16 = vmul.f32 %v683_v8, %v1242_v1  ;;  %v306_v17 = vmul.f32 %v684_v9, %v1242_v1  ;;  %v360_v20 = vadd.f32 %v1247_v7, %v321_v12  ;;  %v361_v21 = vadd.f32 %v1247_v7, %v322_v13  ;;  %v756_v8 = vld [vmem:[%s1231_s9 + $0x60] sm:$0xff]   ;;  %s935_s11 = sshll.u32 %s1024_s15, 4  ;;  %s936_s11 = int_to_ptr.vmem [resolvable:$false] %s935_s11 }
  0x76   : > { %v362_v25 = vadd.f32 %v1247_v7, %v323_v18  ;;  %v346_v26 = vadd.f32 %v1247_v7, %v307_v19  ;;  %v363_v39 = vadd.f32 %v1247_v7, %v324_v22  ;;  %v347_v40 = vadd.f32 %v1247_v7, %v308_v29  ;;  %v748_v9 = vld [vmem:[%s1231_s9 + $0x20] sm:$0xff]   ;;  %p933_p11 = pnand %p932_p5, %p1404_p10  ;;  %s937_s4 = scalar_lea.vmem %s936_s11, 512 }
  0x77   : > { %v344_v23 = vadd.f32 %v1247_v7, %v305_v16  ;;  %v345_v24 = vadd.f32 %v1247_v7, %v306_v17  ;;  %vm392_vm0 = vcmp.ge.f32.partialorder %v360_v20, 0.0  ;;  %v424_v27 = vmul.f32 0.1, %v360_v20  ;;  %p938_p0 = scmp.lt.s32.totalorder %s1330_s26, %s936_s11  ;;  %p939_p6 = scmp.lt.s32.totalorder %s937_s4, %s931_s6 }
  0x78   : > { %v425_v28 = vmul.f32 0.1, %v361_v21  ;;  %vm393_vm2 = vcmp.ge.f32.partialorder %v361_v21, 0.0  ;;  %v426_v34 = vmul.f32 0.1, %v362_v25  ;;  %vm394_vm4 = vcmp.ge.f32.partialorder %v362_v25, 0.0  ;;  %p934_p1 = pneg %p933_p11 }
  0x79   : > { %vm376_vm1 = vcmp.ge.f32.partialorder %v344_v23, 0.0  ;;  %v408_v31 = vmul.f32 0.1, %v344_v23  ;;  %v409_v32 = vmul.f32 0.1, %v345_v24  ;;  %v456_v33 = vsel %vm392_vm0, %v360_v20, %v424_v27  ;;  %p940_p2 = por %p939_p6, %p938_p0 }
  0x7a   : > { %vm377_vm3 = vcmp.ge.f32.partialorder %v345_v24, 0.0  ;;  %504 = vxpose.xlu1.b32.start [1/16] (narrow) %v456_v33, 8  ;;  %vm378_vm5 = vcmp.ge.f32.partialorder %v346_v26, 0.0  ;;  %v410_v37 = vmul.f32 0.1, %v346_v26  ;;  %v457_v38 = vsel %vm393_vm2, %v361_v21, %v425_v28 }
  0x7b   : > { %v440_v36 = vsel %vm376_vm1, %v344_v23, %v408_v31  ;;  %v723_v41 = vunpack.c.l.bf16 %v754_v30  ;;  %v441_v42 = vsel %vm377_vm3, %v345_v24, %v409_v32  ;;  %v691_v43 = vunpack.c.l.bf16 %v746_v35  ;;  %v749_v31 = vld [vmem:[%s1231_s9 + $0x28] sm:$0xff]   ;;  %p941_p9 = pnand %p940_p2, %p934_p1 }
  0x7c   : > { %472 = vxpose.xlu0.b32.start [1/16] (narrow) %v440_v36, 8  ;;  %v724_v44 = vunpack.c.h.bf16 %v754_v30  ;;  %v692_v45 = vunpack.c.h.bf16 %v746_v35  ;;  %v458_v47 = vsel %vm394_vm4, %v362_v25, %v426_v34  ;;  %v442_v48 = vsel %vm378_vm5, %v346_v26, %v410_v37  ;;  %v757_v30 = vld [vmem:[%s1231_s9 + $0x68] sm:$0xff]  }
  0x7d   : > { %vm395_vm6 = vcmp.ge.f32.partialorder %v363_v39, 0.0  ;;  %v325_v50 = vmul.f32 %v723_v41, %v1242_v1  ;;  %v309_v51 = vmul.f32 %v691_v43, %v1242_v1  ;;  %v427_v53 = vmul.f32 0.1, %v363_v39 }
  0x7e   : > { %505 = vxpose.xlu1.b32.cont [2/16] (narrow) %v457_v38, 8  ;;  %v326_v52 = vmul.f32 %v724_v44, %v1242_v1  ;;  %vm379_vm7 = vcmp.ge.f32.partialorder %v347_v40, 0.0  ;;  %v411_v54 = vmul.f32 0.1, %v347_v40  ;;  %v727_v55 = vunpack.c.l.bf16 %v755_v46 }
  0x7f   : > { %v364_v56 = vadd.f32 %v1247_v7, %v325_v50  ;;  %v348_v57 = vadd.f32 %v1247_v7, %v309_v51  ;;  %v310_v58 = vmul.f32 %v692_v45, %v1242_v1  ;;  %v695_v59 = vunpack.c.l.bf16 %v747_v49 }
  0x80   : > { %473 = vxpose.xlu0.b32.cont [2/16] (narrow) %v441_v42, 8  ;;  %v365_v60 = vadd.f32 %v1247_v7, %v326_v52  ;;  %v327_v61 = vmul.f32 %v727_v55, %v1242_v1  ;;  %v728_v62 = vunpack.c.h.bf16 %v755_v46  ;;  %v459_v63 = vsel %vm395_vm6, %v363_v39, %v427_v53  ;;  %v758_v52 = vld [vmem:[%s1231_s9 + $0x70] sm:$0xff]  }
  0x81   : > { %v443_v0 = vsel %vm379_vm7, %v347_v40, %v411_v54  ;;  %v428_v2 = vmul.f32 0.1, %v364_v56  ;;  %v696_v3 = vunpack.c.h.bf16 %v747_v49  ;;  %vm396_vm8 = vcmp.ge.f32.partialorder %v364_v56, 0.0  ;;  %v750_v53 = vld [vmem:[%s1231_s9 + $0x30] sm:$0xff]  }
  0x82   : > { %506 = vxpose.xlu1.b32.cont [3/16] (narrow) %v458_v47, 8  ;;  %v412_v4 = vmul.f32 0.1, %v348_v57  ;;  %v349_v5 = vadd.f32 %v1247_v7, %v310_v58  ;;  %v311_v6 = vmul.f32 %v695_v59, %v1242_v1  ;;  %vm380_vm9 = vcmp.ge.f32.partialorder %v348_v57, 0.0 }
  0x83   : > { %vm397_vm10 = vcmp.ge.f32.partialorder %v365_v60, 0.0  ;;  %v366_v10 = vadd.f32 %v1247_v7, %v327_v61  ;;  %v328_v11 = vmul.f32 %v728_v62, %v1242_v1  ;;  %v460_v12 = vsel %vm396_vm8, %v364_v56, %v428_v2 }
  0x84   : > { %474 = vxpose.xlu0.b32.cont [3/16] (narrow) %v442_v48, 8  ;;  %v429_v13 = vmul.f32 0.1, %v365_v60  ;;  %v312_v14 = vmul.f32 %v696_v3, %v1242_v1  ;;  %v731_v15 = vunpack.c.l.bf16 %v756_v8  ;;  %v444_v16 = vsel %vm380_vm9, %v348_v57, %v412_v4 }
  0x85   : > { %v413_v17 = vmul.f32 0.1, %v349_v5  ;;  %v350_v18 = vadd.f32 %v1247_v7, %v311_v6  ;;  %v699_v19 = vunpack.c.l.bf16 %v748_v9  ;;  %vm381_vm11 = vcmp.ge.f32.partialorder %v349_v5, 0.0 }
  0x86   : > { %507 = vxpose.xlu1.b32.cont [4/16] (narrow) %v459_v63, 8  ;;  %v430_v20 = vmul.f32 0.1, %v366_v10  ;;  %v367_v21 = vadd.f32 %v1247_v7, %v328_v11  ;;  %v732_v22 = vunpack.c.h.bf16 %v756_v8  ;;  %v461_v23 = vsel %vm397_vm10, %v365_v60, %v429_v13  ;;  %v759_v8 = vld [vmem:[%s1231_s9 + $0x78] sm:$0xff]  }
  0x87   : > { %vm398_vm12 = vcmp.ge.f32.partialorder %v366_v10, 0.0  ;;  %v351_v24 = vadd.f32 %v1247_v7, %v312_v14  ;;  %v329_v25 = vmul.f32 %v731_v15, %v1242_v1  ;;  %v445_v26 = vsel %vm381_vm11, %v349_v5, %v413_v17  ;;  %v751_v13 = vld [vmem:[%s1231_s9 + $0x38] sm:$0xff]  }
  0x88   : > { %475 = vxpose.xlu0.b32.cont [4/16] (narrow) %v443_v0, 8  ;;  %v414_v27 = vmul.f32 0.1, %v350_v18  ;;  %v313_v28 = vmul.f32 %v699_v19, %v1242_v1  ;;  %v700_v29 = vunpack.c.h.bf16 %v748_v9  ;;  %vm382_vm13 = vcmp.ge.f32.partialorder %v350_v18, 0.0 }
  0x89   : > { %v462_v32 = vsel %vm398_vm12, %v366_v10, %v430_v20  ;;  %vm399_vm14 = vcmp.ge.f32.partialorder %v367_v21, 0.0  ;;  %v431_v33 = vmul.f32 0.1, %v367_v21  ;;  %v330_v34 = vmul.f32 %v732_v22, %v1242_v1 }
  0x8a   : > { %508 = vxpose.xlu1.b32.cont [5/16] (narrow) %v460_v12, 8  ;;  %v415_v35 = vmul.f32 0.1, %v351_v24  ;;  %v368_v36 = vadd.f32 %v1247_v7, %v329_v25  ;;  %v735_v37 = vunpack.c.l.bf16 %v757_v30  ;;  %v703_v38 = vunpack.c.l.bf16 %v749_v31 }
  0x8b   : > { %v446_v39 = vsel %vm382_vm13, %v350_v18, %v414_v27  ;;  %vm383_vm15 = vcmp.ge.f32.partialorder %v351_v24, 0.0  ;;  %v352_v40 = vadd.f32 %v1247_v7, %v313_v28  ;;  %v314_v41 = vmul.f32 %v700_v29, %v1242_v1 }
  0x8c   : > { %476 = vxpose.xlu0.b32.cont [5/16] (narrow) %v444_v16, 8  ;;  %v463_v42 = vsel %vm399_vm14, %v367_v21, %v431_v33  ;;  %v369_v43 = vadd.f32 %v1247_v7, %v330_v34  ;;  %v736_v44 = vunpack.c.h.bf16 %v757_v30  ;;  %v447_v45 = vsel %vm383_vm15, %v351_v24, %v415_v35 }
  0x8d   : > { %v432_v46 = vmul.f32 0.1, %v368_v36  ;;  %v331_v47 = vmul.f32 %v735_v37, %v1242_v1  ;;  %v315_v48 = vmul.f32 %v703_v38, %v1242_v1  ;;  %vm400_vm0 = vcmp.ge.f32.partialorder %v368_v36, 0.0 }
  0x8e   : > { %509 = vxpose.xlu1.b32.cont [6/16] (narrow) %v461_v23, 8  ;;  %v416_v49 = vmul.f32 0.1, %v352_v40  ;;  %v353_v50 = vadd.f32 %v1247_v7, %v314_v41  ;;  %v704_v51 = vunpack.c.h.bf16 %v749_v31  ;;  %vm384_vm1 = vcmp.ge.f32.partialorder %v352_v40, 0.0 }
  0x8f   : > { %vm401_vm2 = vcmp.ge.f32.partialorder %v369_v43, 0.0  ;;  %v433_v54 = vmul.f32 0.1, %v369_v43  ;;  %v332_v55 = vmul.f32 %v736_v44, %v1242_v1  ;;  %v464_v56 = vsel %vm400_vm0, %v368_v36, %v432_v46 }
  0x90   : > { %477 = vxpose.xlu0.b32.cont [6/16] (narrow) %v445_v26, 8  ;;  %v370_v57 = vadd.f32 %v1247_v7, %v331_v47  ;;  %v739_v58 = vunpack.c.l.bf16 %v758_v52  ;;  %v707_v59 = vunpack.c.l.bf16 %v750_v53  ;;  %v448_v60 = vsel %vm384_vm1, %v352_v40, %v416_v49 }
  0x91   : > { %v417_v61 = vmul.f32 0.1, %v353_v50  ;;  %v354_v62 = vadd.f32 %v1247_v7, %v315_v48  ;;  %v316_v63 = vmul.f32 %v704_v51, %v1242_v1  ;;  %vm385_vm3 = vcmp.ge.f32.partialorder %v353_v50, 0.0 }
  0x92   : > { %510 = vxpose.xlu1.b32.cont [7/16] (narrow) %v462_v32, 8  ;;  %v465_v0 = vsel %vm401_vm2, %v369_v43, %v433_v54  ;;  %v371_v2 = vadd.f32 %v1247_v7, %v332_v55  ;;  %v740_v3 = vunpack.c.h.bf16 %v758_v52  ;;  %vm402_vm4 = vcmp.ge.f32.partialorder %v370_v57, 0.0 }
  0x93   : > { %v434_v4 = vmul.f32 0.1, %v370_v57  ;;  %v333_v5 = vmul.f32 %v739_v58, %v1242_v1  ;;  %v317_v6 = vmul.f32 %v707_v59, %v1242_v1  ;;  %v449_v9 = vsel %vm385_vm3, %v353_v50, %v417_v61 }
  0x94   : > { %478 = vxpose.xlu0.b32.cont [7/16] (narrow) %v446_v39, 8  ;;  %v418_v10 = vmul.f32 0.1, %v354_v62  ;;  %v355_v11 = vadd.f32 %v1247_v7, %v316_v63  ;;  %v708_v12 = vunpack.c.h.bf16 %v750_v53  ;;  %vm386_vm5 = vcmp.ge.f32.partialorder %v354_v62, 0.0 }
  0x95   : > { %v435_v14 = vmul.f32 0.1, %v371_v2  ;;  %v334_v15 = vmul.f32 %v740_v3, %v1242_v1  ;;  %v743_v16 = vunpack.c.l.bf16 %v759_v8  ;;  %v466_v17 = vsel %vm402_vm4, %v370_v57, %v434_v4 }
  0x96   : > { %511 = vxpose.xlu1.b32.cont [8/16] (narrow) %v463_v42, 8  ;;  %vm403_vm6 = vcmp.ge.f32.partialorder %v371_v2, 0.0  ;;  %v372_v18 = vadd.f32 %v1247_v7, %v333_v5  ;;  %v356_v19 = vadd.f32 %v1247_v7, %v317_v6  ;;  %v450_v20 = vsel %vm386_vm5, %v354_v62, %v418_v10 }
  0x97   : > { %v419_v21 = vmul.f32 0.1, %v355_v11  ;;  %v318_v22 = vmul.f32 %v708_v12, %v1242_v1  ;;  %v711_v23 = vunpack.c.l.bf16 %v751_v13  ;;  %vm387_vm7 = vcmp.ge.f32.partialorder %v355_v11, 0.0 }
  0x98   : > { %479 = vxpose.xlu0.b32.cont [8/16] (narrow) %v447_v45, 8  ;;  %v467_v24 = vsel %vm403_vm6, %v371_v2, %v435_v14  ;;  %v373_v25 = vadd.f32 %v1247_v7, %v334_v15  ;;  %v335_v26 = vmul.f32 %v743_v16, %v1242_v1  ;;  %vm404_vm8 = vcmp.ge.f32.partialorder %v372_v18, 0.0 }
  0x99   : > { %v436_v27 = vmul.f32 0.1, %v372_v18  ;;  %v420_v28 = vmul.f32 0.1, %v356_v19  ;;  %v744_v29 = vunpack.c.h.bf16 %v759_v8  ;;  %v451_v30 = vsel %vm387_vm7, %v355_v11, %v419_v21 }
  0x9a   : > { %512 = vxpose.xlu1.b32.cont [9/16] (narrow) %v464_v56, 8  ;;  %v357_v31 = vadd.f32 %v1247_v7, %v318_v22  ;;  %v319_v32 = vmul.f32 %v711_v23, %v1242_v1  ;;  %v712_v33 = vunpack.c.h.bf16 %v751_v13  ;;  %vm388_vm9 = vcmp.ge.f32.partialorder %v356_v19, 0.0 }
  0x9b   : > { %vm405_vm10 = vcmp.ge.f32.partialorder %v373_v25, 0.0  ;;  %v468_v34 = vsel %vm404_vm8, %v372_v18, %v436_v27  ;;  %v437_v35 = vmul.f32 0.1, %v373_v25  ;;  %v374_v36 = vadd.f32 %v1247_v7, %v335_v26 }
  0x9c   : > { %480 = vxpose.xlu0.b32.cont [9/16] (narrow) %v448_v60, 8  ;;  %v336_v37 = vmul.f32 %v744_v29, %v1242_v1  ;;  %v452_v38 = vsel %vm388_vm9, %v356_v19, %v420_v28  ;;  %v421_v39 = vmul.f32 0.1, %v357_v31  ;;  %v358_v40 = vadd.f32 %v1247_v7, %v319_v32 }
  0x9d   : > { %v320_v41 = vmul.f32 %v712_v33, %v1242_v1  ;;  %vm389_vm11 = vcmp.ge.f32.partialorder %v357_v31, 0.0  ;;  %v469_v42 = vsel %vm405_vm10, %v373_v25, %v437_v35  ;;  %v438_v43 = vmul.f32 0.1, %v374_v36 }
  0x9e   : > { %513 = vxpose.xlu1.b32.cont [10/16] (narrow) %v465_v0, 8  ;;  %v375_v44 = vadd.f32 %v1247_v7, %v336_v37  ;;  %v453_v45 = vsel %vm389_vm11, %v357_v31, %v421_v39  ;;  %vm406_vm12 = vcmp.ge.f32.partialorder %v374_v36, 0.0  ;;  %v422_v46 = vmul.f32 0.1, %v358_v40 }
  0x9f   : > { %v359_v47 = vadd.f32 %v1247_v7, %v320_v41  ;;  %vm390_vm13 = vcmp.ge.f32.partialorder %v358_v40, 0.0  ;;  %v470_v48 = vsel %vm406_vm12, %v374_v36, %v438_v43 }
  0xa0   : > { %481 = vxpose.xlu0.b32.cont [10/16] (narrow) %v449_v9, 8  ;;  %v439_v49 = vmul.f32 0.1, %v375_v44  ;;  %v454_v1 = vsel %vm390_vm13, %v358_v40, %v422_v46  ;;  %vm407_vm14 = vcmp.ge.f32.partialorder %v375_v44, 0.0 }
  0xa1   : > { %v423_v50 = vmul.f32 0.1, %v359_v47  ;;  %vm391_vm15 = vcmp.ge.f32.partialorder %v359_v47, 0.0 }
  0xa2   : > { %514 = vxpose.xlu1.b32.cont [11/16] (narrow) %v466_v17, 8  ;;  %v471_v51 = vsel %vm407_vm14, %v375_v44, %v439_v49 }
  0xa3   : > { %v455_v52 = vsel %vm391_vm15, %v359_v47, %v423_v50 }
  0xa4   : > { %482 = vxpose.xlu0.b32.cont [11/16] (narrow) %v450_v20, 8 }
  0xa6   : > { %515 = vxpose.xlu1.b32.cont [12/16] (narrow) %v467_v24, 8 }
  0xa8   : > { %483 = vxpose.xlu0.b32.cont [12/16] (narrow) %v451_v30, 8 }
  0xaa   : > { %516 = vxpose.xlu1.b32.cont [13/16] (narrow) %v468_v34, 8 }
  0xac   : > { %484 = vxpose.xlu0.b32.cont [13/16] (narrow) %v452_v38, 8 }
  0xae   : > { %517 = vxpose.xlu1.b32.cont [14/16] (narrow) %v469_v42, 8 }
  0xb0   : > { %485 = vxpose.xlu0.b32.cont [14/16] (narrow) %v453_v45, 8 }
  0xb2   : > { %518 = vxpose.xlu1.b32.cont [15/16] (narrow) %v470_v48, 8 }
  0xb4   : > { %486 = vxpose.xlu0.b32.cont [15/16] (narrow) %v454_v1, 8 }
  0xb6   : > { %519 = vxpose.xlu1.b32.end [16/16] (narrow) %v471_v51, 8 }
  0xb8   : > { %487 = vxpose.xlu0.b32.end [16/16] (narrow) %v455_v52, 8 }
  0xfa   : > { %v520_v7 = vpop.trf.xlu1 }
  0xfb   : > { %537 = vst [vmem:[%s231_s23 + $0x8] sm:$0xff] %v520_v7 }
  0xfc   : > { %v488_v53 = vpop.trf.xlu0 }
  0xfd   : > { %536 = vst [vmem:[%s231_s23] sm:$0xff] %v488_v53 }
  0xfe   : > { %944 = shalt.err (!%p941_p9)
}
  0xff   : > { %s945_s22 = scalar_lea.hbm %s1335_s19, 256  ;;  %s949_s7 = scalar_lea.hbm %s1385_s3, 512 }
 0x100   : > { %p946_p8 = scmp.ne.s32.totalorder %s1335_s19, %s945_s22  ;;  %p950_p7 = scmp.lt.u32.totalorder %s1335_s19, %s1385_s3 }
 0x101   : > { %p951_p12 = scmp.lt.u32.totalorder %s949_s7, %s945_s22  ;;  %p953_p5 = scmp.lt.u32.totalorder %s945_s22, %s1335_s19 }
 0x102   : > { %p947_p13 = pnand %p946_p8, %p1404_p10 }
 0x103   : > { %p952_p3 = por %p951_p12, %p950_p7 }
 0x104   : > { %p948_p4 = pneg %p947_p13 }
 0x105   : > { %p954_p11 = por %p953_p5, %p952_p3 }
 0x107   : > { %p955_p1 = pnand %p954_p11, %p948_p4 }
 0x109   : > { %958 = shalt.err (!%p955_p1)
}
 0x10a   : > { %770 = dma.vmem_to_hbm [thread:$0]  (%p1404_p10), %s1330_s26, 256, %s1335_s19, %s539_s20  }
 0x10b PF: > { %s567_s21 = sand.u32 1, %s997_s12   ;;  %p1405_p0 = scmp.ne.s32.totalorder %s1396_s25, 0 }
 0x10c   : > { %p1406_p6 = scmp.ge.s32.totalorder %s1017_s17, 2  ;;  %s568_s23 = scalar_lea.sflag [#allocation4], %s567_s21 }
 0x10e   : > { %p784_p2 = pnand %p1406_p6, %p1405_p0 }
 0x110   : > { %992 = dma.done.wait (!%p784_p2), %s568_s23, 256  }
 0x111   : > { %994 = vsyncadd (!%p784_p2), %s568_s23, 4294967040  ;;  %s20_s17 = sadd.s32 1, %s1017_s17   ;;  %s1407_s12 = smov %s1001_s13 }
 0x112   : > { %p17_p9 = scmp.ge.s32.totalorder %s20_s17, 4   ;;  %s1408_s13 = smov %s1005_s14 }
 0x113   : > { %s1409_s14 = smov %s1194_s28  ;;  %s1410_s15 = smov %s1013_s16 }
 0x114   : > { %s1411_s16 = smov %s1413_s30  ;;  %19 = sbr.rel (!%p17_p9) target bundleno = 7 (0x7), region = 85 }
 0x11b   :  { %573 = vsyncpa [#allocation3], 1 }
 0x11c   :  { %575 = vsyncpa [#allocation3 + $0x1], 1 }
 0x11d   :  { %576 = vsyncpa [#allocation6], 1 }
 0x11e   :  { %577 = vsyncpa [#allocation4], 1 }
 0x11f   :  { %579 = vsyncpa [#allocation4 + $0x1], 1 }

// kernel: conv_forward.2
= control target key start
LH: loop header
LB: loop body
LE: loop exit
PB: predicated region body
PF: predicated region fallthrough
CT: control target
= control target key end

     0   :  { %9 = vsyncpa [#allocation4], 0  ;;  %s5855_s0 = inlined_call_operand.hbm [shape: bf16[2,18,18,4], index: 0, kind: input, shape index: {}]   ;;  %s5856_s1 = inlined_call_operand.hbm [shape: bf16[36,128], index: 1, kind: input, shape index: {}]   ;;  %s5857_s2 = inlined_call_operand.hbm [shape: bf16[2,256,128], index: 2, kind: output, shape index: {0}]   ;;  %s5858_s3 = inlined_call_operand.hbm [shape: f32[2,2,128], index: 3, kind: output, shape index: {1}]  }
   0x1   :  { %11 = vsyncpa [#allocation4 + $0x1], 0 }
   0x2   :  { %12 = vsyncpa [#allocation7], 0 }
   0x3   :  { %13 = vsyncpa [#allocation5], 0 }
   0x4   :  { %15 = vsyncpa [#allocation5 + $0x1], 0 }
   0x5   :  { %16 = vsyncpa [#allocation10], 0 }
   0x6   :  { %18 = vsyncpa [#allocation10 + $0x1], 0  ;;  %s4941_s12 = smov 0   ;;  %s4943_s13 = smov 0  }
   0x7   :  { %s4945_s14 = smov 0   ;;  %s4947_s15 = smov 0  }
   0x8   :  { %s4949_s16 = smov 0   ;;  %s4951_s17 = smov 0  }
   0x9 LB: > { %s3634_s18 = sadd.s32 4294967295, %s4903_s17   ;;  %s3635_s19 = sadd.s32 4294967294, %s4903_s17   ;;  %s4903_s17 = sphi %s4951_s17, %s24_s17   ;;  %s4899_s16 = sphi %s4949_s16, %s5881_s16   ;;  %s4895_s15 = sphi %s4947_s15, %s5880_s15   ;;  %s4891_s14 = sphi %s4945_s14, %s5879_s14   ;;  %s4887_s13 = sphi %s4943_s13, %s5878_s13   ;;  %s4883_s12 = sphi %s4941_s12, %s5877_s12  }
   0xa   : > { %p63_p0 = scmp.ne.s32.totalorder %s4887_s13, %s4883_s12  ;;  %p4975_p1 = scmp.eq.s32.totalorder %s3634_s18, 0 }
   0xb   : > { %p4979_p2 = scmp.eq.s32.totalorder %s3634_s18, 1  ;;  %p123_p3 = scmp.eq.s32.totalorder %s3635_s19, 1 }
   0xc   : > { %s5863_s20 = scalar_select %p4975_p1, 1, 0 }
   0xd   : > { %s5864_s21 = scalar_select %p4979_p2, 1, 0 }
   0xe   : > { %p4985_p4 = por %p4975_p1, %p63_p0  ;;  %p3636_p5 = scmp.ge.s32.totalorder %s4903_s17, 1 }
   0xf   : > { %p4990_p6 = por %p123_p3, %p63_p0  ;;  %p158_p7 = scmp.lt.s32.totalorder %s4903_s17, 3 }
  0x10   : > { %s5865_s22 = scalar_select %p4985_p4, 1, 0 }
  0x11   : > { %s5866_s23 = scalar_select %p4990_p6, 1, 0 }
  0x12   : > { %p4995_p8 = pnand %p3636_p5, %p158_p7  ;;  %s4905_s25 = smov [#allocation6]  }
  0x13   : > { %s172_s26 = sshll.u32 %s4905_s25, 4  ;;  %s43_s28 = sadd.s32 1, %s4899_s16  ;;  %s173_s26 = int_to_ptr.vmem [resolvable:$true] %s172_s26 }
  0x14   : > { %s5867_s24 = scalar_select %p4995_p8, 1, 0 }
  0x15   : > { %p4404_p9 = pneg %p4995_p8  ;;  %s4727_s4 = scalar_lea.hbm %s5856_s1, 320 }
  0x16   : > { %p4728_p12 = scmp.ne.s32.totalorder %s5856_s1, %s4727_s4  ;;  %p4734_p5 = scmp.lt.u32.totalorder %s4727_s4, %s5856_s1 }
  0x17   : > { %p5004_p11 = pnand %p4404_p9, %p4975_p1 }
  0x19   : > { %p4729_p13 = pneg %p5004_p11 }
  0x1b   : > { %p4730_p0 = pnand %p4729_p13, %p4728_p12 }
  0x1d   : > { %p4731_p3 = pneg %p4730_p0 }
  0x1f   : > { %p4736_p7 = pnand %p4734_p5, %p4731_p3 }
  0x21   : > { %4739 = shalt.err (!%p4736_p7)
}
  0x22   : > { %s4740_s9 = scalar_lea.vmem %s173_s26, 320  ;;  %p4748_p1 = scmp.lt.s32.totalorder %s173_s26, %s173_s26 }
  0x23   : > { %p4741_p9 = scmp.ne.s32.totalorder %s173_s26, %s4740_s9  ;;  %p4749_p4 = scmp.lt.s32.totalorder %s4740_s9, %s4740_s9 }
  0x25   : > { %p4743_p10 = pnand %p4741_p9, %p4729_p13  ;;  %p4750_p8 = por %p4749_p4, %p4748_p1 }
  0x27   : > { %p4744_p6 = pneg %p4743_p10 }
  0x29   : > { %p4751_p2 = pnand %p4750_p8, %p4744_p6 }
  0x2b   : > { %4754 = shalt.err (!%p4751_p2)
}
  0x2c   : > { %s4906_s10 = smov 64   ;;  %s4907_s11 = smov 4  }
  0x2d   : > { %4407 = dma.hbm_to_vmem [thread:$0]  (!%p5004_p11), %s5856_s1, 320, %s173_s26, [#allocation7], %s4906_s10, %s4906_s10, %s4907_s11  }
  0x2e   : > { %p45_p1 = scmp.ge.s32.totalorder %s43_s28, 2  ;;  %s50_s25 = sadd.s32 1, %s4891_s14 }
  0x2f   : > { %p57_p2 = scmp.ne.s32.totalorder %s4891_s14, %s4887_s13  ;;  %p58_p4 = scmp.eq.s32.totalorder %s4903_s17, 0 }
  0x30   : > { %s5883_s28 = smov (%p45_p1, %s43_s28), 0  ;;  %p5869_p8 = scmp.ne.s32.totalorder %s5864_s21, 0 }
  0x31   : > { %p59_p6 = por %p58_p4, %p57_p2  ;;  %s47_s27 = ssub.s32 %s4899_s16, %s5883_s28 }
  0x32   : > { %p5036_p10 = por %p5869_p8, %p57_p2  ;;  %p4420_p12 = scmp.lt.s32.totalorder %s4903_s17, 2 }
  0x33   : > { %p48_p13 = scmp.eq.s32.totalorder %s47_s27, 0  ;;  %s186_s30 = sand.u32 1, %s4891_s14  }
  0x34   : > { %s4391_s4 = smul.u32 216, %s186_s30  ;;  %p5048_p11 = pnand %p4420_p12, %p59_p6 }
  0x35   : > { %s5045_s5 = scalar_select %p48_p13, %s4891_s14, %s50_s25  }
  0x36   : > { %s4392_s26 = smul.u32 3456, %s4899_s16  ;;  %s190_s6 = scalar_lea.vmem [#allocation3], %s4391_s4 }
  0x37   : > { %s197_s7 = sshll.u32 %s190_s6, 4  ;;  %s5059_s19 = scalar_lea.sflag [#allocation4], %s186_s30  ;;  %s5057_s7 = int_to_ptr.vmem [resolvable:$true] %s197_s7 }
  0x38   : > { %s5055_s18 = scalar_lea.hbm %s5855_s0, %s4392_s26  ;;  %p4757_p3 = pneg %p5048_p11 }
  0x39   : > { %s4755_s25 = scalar_lea.hbm %s5055_s18, 3456  ;;  %s4760_s26 = scalar_lea.hbm %s5855_s0, 6912 }
  0x3a   : > { %p4756_p0 = scmp.ne.s32.totalorder %s5055_s18, %s4755_s25  ;;  %p4761_p9 = scmp.lt.u32.totalorder %s5055_s18, %s5855_s0 }
  0x3b   : > { %p4762_p1 = scmp.lt.u32.totalorder %s4760_s26, %s4755_s25  ;;  %p4764_p4 = scmp.lt.u32.totalorder %s4755_s25, %s5055_s18 }
  0x3c   : > { %p4758_p5 = pnand %p4757_p3, %p4756_p0 }
  0x3d   : > { %p4763_p2 = por %p4762_p1, %p4761_p9 }
  0x3e   : > { %p4759_p7 = pneg %p4758_p5 }
  0x3f   : > { %p4765_p6 = por %p4764_p4, %p4763_p2 }
  0x41   : > { %p4766_p8 = pnand %p4765_p6, %p4759_p7 }
  0x43   : > { %4769 = shalt.err (!%p4766_p8)
}
  0x44   : > { %s4770_s30 = scalar_lea.vmem %s5057_s7, 3456  ;;  %s4908_s21 = smov [#allocation3]  }
  0x45   : > { %p4771_p12 = scmp.ne.s32.totalorder %s5057_s7, %s4770_s30  ;;  %s4775_s27 = sshll.u32 %s4908_s21, 4  ;;  %s4776_s27 = int_to_ptr.vmem [resolvable:$false] %s4775_s27 }
  0x46   : > { %s4777_s4 = scalar_lea.vmem %s4776_s27, 6912  ;;  %p4778_p5 = scmp.lt.s32.totalorder %s5057_s7, %s4776_s27 }
  0x47   : > { %p4773_p13 = pnand %p4771_p12, %p4757_p3  ;;  %p4779_p9 = scmp.lt.s32.totalorder %s4777_s4, %s4770_s30 }
  0x49   : > { %p4774_p0 = pneg %p4773_p13  ;;  %p4780_p1 = por %p4779_p9, %p4778_p5 }
  0x4b   : > { %p4781_p2 = pnand %p4780_p1, %p4774_p0 }
  0x4d   : > { %4784 = shalt.err (!%p4781_p2)
}
  0x4e   : > { %4411 = dma.hbm_to_vmem [thread:$0]  (!%p5048_p11), %s5055_s18, 3456, %s5057_s7, %s5059_s19, %s4906_s10, %s4906_s10, %s4907_s11  }
  0x4f   : > { %p5872_p3 = scmp.ne.s32.totalorder %s5867_s24, 0 }
  0x50   : > { %s5093_s25 = sand.u32 (!%p5872_p3), 1, %s4887_s13   ;;  %p5873_p7 = scmp.ne.s32.totalorder (!%p5872_p3), %s5865_s22, 0 }
  0x51   : > { %209 = sbr.rel (%p5872_p3) target bundleno = 734 (0x2de), region = 28  ;;  %s212_s6 = scalar_lea.sflag (!%p5872_p3), [#allocation4], %s5093_s25 }
  0x52   : > { %s4393_s26 = smul.u32 (!%p5872_p3), 216, %s5093_s25 }
  0x54   : > { %s5097_s9 = scalar_lea.vmem (!%p5872_p3), [#allocation3], %s4393_s26 }
  0x58   : > { %4866 = dma.done.wait (%p5873_p7), %s212_s6, 3456  }
  0x59   : > { %4868 = vsyncadd (%p5873_p7), %s212_s6, 4294963840  ;;  %p5874_p11 = scmp.ne.s32.totalorder %s5863_s20, 0 }
  0x5b   : > { %4870 = dma.done.wait (%p5874_p11), [#allocation7], 320  }
  0x5c   : > { %4872 = vsyncadd (%p5874_p11), [#allocation7], 4294966976  ;;  %vm1013_vm0 = vcmask 1046528   ;;  %v4484_v0 = vld [vmem:[%s5097_s9 + $0x18] sm:$0xff]   ;;  %v4485_v1 = vld [vmem:[%s5097_s9 + $0xc] sm:$0xff]   ;;  %s4909_s24 = smov 12  }
  0x5d   : > { %1245 = vrot.lane.b32.xlu1 %v4484_v0, %s4909_s24  ;;  %1243 = vrot.lane.b32.xlu0 %v4485_v1, %s4909_s24  ;;  %v4486_v2 = vld [vmem:[%s5097_s9 + $0xc] sm:$0xfe]   ;;  %v4487_v3 = vld [vmem:[%s5097_s9 + $0x14] ss:$0 sps:$4 sm:$0x11]   ;;  %s4910_s20 = smov 20  }
  0x5e   : > { %v4492_v4 = vld [vmem:[%s5097_s9] sm:$0xff]   ;;  %v1917_v5 = vrot.slane %v4486_v2, 1  ;;  %v1918_v6 = vrot.slane %v4487_v3, 1  ;;  %vm579_vm1 = vsmask.f32 7424  ;;  %s4911_s22 = smov 8  }
  0x5f   : > { %v4488_v7 = vld [vmem:[%s5097_s9] sm:$0xfe]   ;;  %v4489_v8 = vld [vmem:[%s5097_s9 + $0x8] ss:$0 sps:$4 sm:$0x11]   ;;  %v581_v9 = vshrl.u32 %v4492_v4, 16 }
  0x60   : > { %v1919_v10 = vsel %vm1013_vm0, %v1917_v5, %v1918_v6  ;;  %v1014_v11 = vrot.slane %v4488_v7, 1  ;;  %v4490_v12 = vld [vmem:[%s5097_s9 + $0xc] sm:$0xfe]   ;;  %v583_v13 = vshll.u32 %v4492_v4, 16  ;;  %v1015_v14 = vrot.slane %v4489_v8, 1  ;;  %v4498_v31 = vld [vmem:[%s5097_s9 + $0x18] sm:$0xff]  }
  0x61   : > { %1965 = vrot.lane.b32.xlu0 %v1919_v10, %s4910_s20  ;;  %v4491_v15 = vld [vmem:[%s5097_s9 + $0x14] ss:$0 sps:$4 sm:$0x11]   ;;  %v1017_v16 = vrot.slane %v4490_v12, 1  ;;  %v4494_v21 = vld [vmem:[%s5097_s9 + $0x18] sm:$0xfe]  }
  0x62   : > { %v585_v17 = vrot.slane %v583_v13, 1  ;;  %v1016_v18 = vsel %vm1013_vm0, %v1014_v11, %v1015_v14  ;;  %v1018_v19 = vrot.slane %v4491_v15, 1  ;;  %v4493_v20 = vld [vmem:[%s5097_s9 + $0x8] ss:$0 sps:$4 sm:$0x11]   ;;  %v1920_v26 = vrot.slane %v4494_v21, 1 }
  0x63   : > { %1062 = vrot.lane.b32.xlu1 %v1016_v18, %s4911_s22  ;;  %v588_v24 = vshll.u32 %v4493_v20, 16  ;;  %v4495_v25 = vld [vmem:[%s5097_s9 + $0x20] ss:$0 sps:$4 sm:$0x11]   ;;  %v4496_v27 = vld [vmem:[%s5097_s9 + $0xc] sm:$0xff]   ;;  %s4912_s10 = smov 4  }
  0x64   : > { %v1019_v22 = vsel %vm1013_vm0, %v1017_v16, %v1018_v19  ;;  %v586_v23 = vor.u32 %v585_v17, %v581_v9  ;;  %v1921_v29 = vrot.slane %v4495_v25, 1  ;;  %v4497_v30 = vld [vmem:[%s5097_s9 + $0x14] ss:$0 sps:$4 sm:$0x11]   ;;  %v593_v32 = vshrl.u32 %v4496_v27, 16  ;;  %v4500_v41 = vld [vmem:[%s5097_s9 + $0xc] sm:$0xff]  }
  0x65   : > { %v590_v28 = vrot.slane %v588_v24, 1  ;;  %v595_v33 = vshll.u32 %v4496_v27, 16  ;;  %v600_v36 = vshll.u32 %v4497_v30, 16  ;;  %v4499_v37 = vld [vmem:[%s5097_s9 + $0x20] ss:$0 sps:$4 sm:$0x11]  }
  0x66   : > { %v1922_v35 = vsel %vm1013_vm0, %v1920_v26, %v1921_v29  ;;  %v1497_v39 = vshrl.u32 %v4498_v31, 16  ;;  %v1499_v40 = vshll.u32 %v4498_v31, 16  ;;  %v1504_v43 = vshll.u32 %v4499_v37, 16  ;;  %v4501_v46 = vld [vmem:[%s5097_s9 + $0x14] ss:$0 sps:$4 sm:$0x11]  }
  0x67   : > { %1064 = vrot.lane.b32.xlu1 %v1019_v22, %s4911_s22  ;;  %v591_v34 = vsel %vm579_vm1, %v586_v23, %v590_v28  ;;  %v597_v38 = vrot.slane %v595_v33, 1  ;;  %v602_v42 = vrot.slane %v600_v36, 1  ;;  %v1485_v47 = vshrl.u32 %v4500_v41, 16  ;;  %v4503_v54 = vld [vmem:[%s5097_s9 + $0x24] sm:$0xff]   ;;  %v4504_v58 = vld [vmem:[%s5097_s9 + $0x18] sm:$0xff]   ;;  %s4913_s11 = smov 16  }
  0x68   : > { %772 = vrot.lane.b32.xlu0 %v591_v34, %s4912_s10  ;;  %v1501_v45 = vrot.slane %v1499_v40, 1  ;;  %v1487_v48 = vshll.u32 %v4500_v41, 16  ;;  %v1506_v49 = vrot.slane %v1504_v43, 1  ;;  %v1492_v53 = vshll.u32 %v4501_v46, 16  ;;  %v4502_v59 = vld [vmem:[%s5097_s9 + $0x18] sm:$0xff]   ;;  %v4506_v61 = vld [vmem:[%s5097_s9 + $0x24] sm:$0xff]  }
  0x69   : > { %v598_v44 = vor.u32 %v597_v38, %v593_v32  ;;  %v4505_v60 = vld [vmem:[%s5097_s9 + $0x20] ss:$0 sps:$4 sm:$0x11]   ;;  %v2388_v63 = vshrl.u32 %v4504_v58, 16  ;;  %v2390_v0 = vshll.u32 %v4504_v58, 16  ;;  %v2400_v3 = vshrl.u32 %v4506_v61, 16 }
  0x6a   : > { %v1502_v51 = vor.u32 %v1501_v45, %v1497_v39  ;;  %v1489_v52 = vrot.slane %v1487_v48, 1  ;;  %v1494_v57 = vrot.slane %v1492_v53, 1  ;;  %v2395_v1 = vshll.u32 %v4505_v60, 16  ;;  %v4507_v2 = vld [vmem:[%s5097_s9 + $0x2c] ss:$0 sps:$4 sm:$0x11]  }
  0x6b   : > { %1967 = vrot.lane.b32.xlu1 %v1922_v35, %s4910_s20  ;;  %v603_v50 = vsel %vm579_vm1, %v598_v44, %v602_v42  ;;  %v2402_v4 = vshll.u32 %v4506_v61, 16  ;;  %v2392_v5 = vrot.slane %v2390_v0, 1  ;;  %v4510_v6 = vld [vmem:[%s5097_s9 + $0x18] sm:$0xff]   ;;  %s4914_s7 = smov 24   ;;  %v2407_v9 = vshll.u32 %v4507_v2, 16  ;;  %v4514_v11 = vld [vmem:[%s5097_s9 + $0x24] sm:$0xff]  }
  0x6c   : > { %774 = vrot.lane.b32.xlu0 %v603_v50, %s4912_s10  ;;  %v1507_v55 = vsel %vm579_vm1, %v1502_v51, %v1506_v49  ;;  %v1490_v56 = vor.u32 %v1489_v52, %v1485_v47  ;;  %v2397_v7 = vrot.slane %v2395_v1, 1  ;;  %v4508_v10 = vld [vmem:[%s5097_s9 + $0x18] sm:$0xfe]   ;;  %v4509_v13 = vld [vmem:[%s5097_s9 + $0x20] ss:$0 sps:$4 sm:$0x11]  }
  0x6d   : > { %v2404_v8 = vrot.slane %v2402_v4, 1  ;;  %v2393_v12 = vor.u32 %v2392_v5, %v2388_v63  ;;  %v605_v14 = vshrl.u32 %v4510_v6, 16  ;;  %v2409_v16 = vrot.slane %v2407_v9, 1  ;;  %v4511_v20 = vld [vmem:[%s5097_s9 + $0x20] ss:$0 sps:$4 sm:$0x11]  }
  0x6e   : > { %v1495_v62 = vsel %vm579_vm1, %v1490_v56, %v1494_v57  ;;  %v2820_v17 = vrot.slane %v4508_v10, 1  ;;  %v2821_v19 = vrot.slane %v4509_v13, 1  ;;  %v607_v21 = vshll.u32 %v4510_v6, 16  ;;  %s4915_s8 = smov 28   ;;  %v4512_v26 = vld [vmem:[%s5097_s9 + $0x24] sm:$0xfe]  }
  0x6f   : > { %1678 = vrot.lane.b32.xlu1 %v1507_v55, %s4913_s11  ;;  %v2405_v15 = vor.u32 %v2404_v8, %v2400_v3  ;;  %v2398_v18 = vsel %vm579_vm1, %v2393_v12, %v2397_v7  ;;  %v617_v22 = vshrl.u32 %v4514_v11, 16  ;;  %v612_v25 = vshll.u32 %v4511_v20, 16  ;;  %v4513_v27 = vld [vmem:[%s5097_s9 + $0x2c] ss:$0 sps:$4 sm:$0x11]   ;;  %s4916_s18 = smov 32  }
  0x70   : > { %1676 = vrot.lane.b32.xlu0 %v1495_v62, %s4913_s11  ;;  %v609_v24 = vrot.slane %v607_v21, 1  ;;  %v619_v28 = vshll.u32 %v4514_v11, 16  ;;  %v2822_v29 = vsel %vm1013_vm0, %v2820_v17, %v2821_v19  ;;  %v2823_v32 = vrot.slane %v4512_v26, 1  ;;  %v4515_v34 = vld [vmem:[%s5097_s9 + $0x2c] ss:$0 sps:$4 sm:$0x11]  }
  0x71   : > { %v2410_v23 = vsel %vm579_vm1, %v2405_v15, %v2409_v16  ;;  %v614_v31 = vrot.slane %v612_v25, 1  ;;  %v2824_v33 = vrot.slane %v4513_v27, 1  ;;  %v4516_v37 = vld [vmem:[%s5097_s9 + $0x18] sm:$0xfe]   ;;  %v624_v39 = vshll.u32 %v4515_v34, 16  ;;  %v4522_v47 = vld [vmem:[%s5097_s9 + $0x24] sm:$0xff]  }
  0x72   : > { %v610_v30 = vor.u32 %v609_v24, %v605_v14  ;;  %v621_v35 = vrot.slane %v619_v28, 1  ;;  %v4517_v40 = vld [vmem:[%s5097_s9 + $0x20] ss:$0 sps:$4 sm:$0x11]   ;;  %v1020_v42 = vrot.slane %v4516_v37, 1  ;;  %v4524_v50 = vld [vmem:[%s5097_s9 + $0x30] sm:$0xff]  }
  0x73   : > { %2148 = vrot.lane.b32.xlu1 %v4503_v54, %s4914_s7  ;;  %v2825_v41 = vsel %vm1013_vm0, %v2823_v32, %v2824_v33  ;;  %v626_v43 = vrot.slane %v624_v39, 1  ;;  %v1021_v44 = vrot.slane %v4517_v40, 1  ;;  %v4518_v45 = vld [vmem:[%s5097_s9 + $0x24] sm:$0xfe]   ;;  %v1509_v53 = vshrl.u32 %v4522_v47, 16  ;;  %v4521_v58 = vld [vmem:[%s5097_s9 + $0x30] sm:$0xff]  }
  0x74   : > { %2146 = vrot.lane.b32.xlu0 %v4502_v59, %s4914_s7  ;;  %v615_v36 = vsel %vm579_vm1, %v610_v30, %v614_v31  ;;  %v622_v38 = vor.u32 %v621_v35, %v617_v22  ;;  %v4519_v46 = vld [vmem:[%s5097_s9 + $0x2c] ss:$0 sps:$4 sm:$0x11]   ;;  %v1023_v49 = vrot.slane %v4518_v45, 1  ;;  %v4520_v54 = vld [vmem:[%s5097_s9 + $0x24] sm:$0xff]   ;;  %v1511_v56 = vshll.u32 %v4522_v47, 16 }
  0x75   : > { %v1022_v51 = vsel %vm1013_vm0, %v1020_v42, %v1021_v44  ;;  %v1024_v52 = vrot.slane %v4519_v46, 1  ;;  %v4523_v55 = vld [vmem:[%s5097_s9 + $0x2c] ss:$0 sps:$4 sm:$0x11]   ;;  %v1521_v62 = vshrl.u32 %v4524_v50, 16  ;;  %v1523_v63 = vshll.u32 %v4524_v50, 16 }
  0x76   : > { %v627_v48 = vsel %vm579_vm1, %v622_v38, %v626_v43  ;;  %v1513_v59 = vrot.slane %v1511_v56, 1  ;;  %v1516_v60 = vshll.u32 %v4523_v55, 16  ;;  %v4525_v61 = vld [vmem:[%s5097_s9 + $0x38] ss:$0 sps:$4 sm:$0x11]   ;;  %v4532_v16 = vld [vmem:[%s5097_s9 + $0x30] sm:$0xff]  }
  0x77   : > { %2581 = vrot.lane.b32.xlu1 %v2410_v23, %s4915_s8  ;;  %v1025_v57 = vsel %vm1013_vm0, %v1023_v49, %v1024_v52  ;;  %v1528_v2 = vshll.u32 %v4525_v61, 16  ;;  %v4526_v3 = vld [vmem:[%s5097_s9 + $0x24] sm:$0xfe]   ;;  %v1525_v4 = vrot.slane %v1523_v63, 1  ;;  %v4528_v11 = vld [vmem:[%s5097_s9 + $0x30] sm:$0xfe]  }
  0x78   : > { %2579 = vrot.lane.b32.xlu0 %v2398_v18, %s4915_s8  ;;  %v1514_v0 = vor.u32 %v1513_v59, %v1509_v53  ;;  %v1518_v1 = vrot.slane %v1516_v60, 1  ;;  %v4527_v5 = vld [vmem:[%s5097_s9 + $0x2c] ss:$0 sps:$4 sm:$0x11]   ;;  %v1923_v7 = vrot.slane %v4526_v3, 1  ;;  %v1926_v14 = vrot.slane %v4528_v11, 1 }
  0x79   : > { %v1530_v6 = vrot.slane %v1528_v2, 1  ;;  %v1526_v9 = vor.u32 %v1525_v4, %v1521_v62  ;;  %v1924_v10 = vrot.slane %v4527_v5, 1  ;;  %v4529_v12 = vld [vmem:[%s5097_s9 + $0x38] ss:$0 sps:$4 sm:$0x11]   ;;  %v2412_v19 = vshrl.u32 %v4532_v16, 16 }
  0x7a   : > { %v1519_v8 = vsel %vm579_vm1, %v1514_v0, %v1518_v1  ;;  %v1927_v15 = vrot.slane %v4529_v12, 1  ;;  %v4533_v18 = vld [vmem:[%s5097_s9 + $0x38] ss:$0 sps:$4 sm:$0x11]   ;;  %v2414_v20 = vshll.u32 %v4532_v16, 16  ;;  %v4534_v21 = vld [vmem:[%s5097_s9 + $0x3c] sm:$0xff]  }
  0x7b   : > { %776 = vrot.lane.b32.xlu1 %v615_v36, %s4912_s10  ;;  %v1531_v13 = vsel %vm579_vm1, %v1526_v9, %v1530_v6  ;;  %v1925_v17 = vsel %vm1013_vm0, %v1923_v7, %v1924_v10  ;;  %v4530_v23 = vld [vmem:[%s5097_s9 + $0x30] sm:$0xff]   ;;  %v4531_v24 = vld [vmem:[%s5097_s9 + $0x3c] sm:$0xff]   ;;  %v2419_v26 = vshll.u32 %v4533_v18, 16  ;;  %v4535_v27 = vld [vmem:[%s5097_s9 + $0x44] ss:$0 sps:$4 sm:$0x11]  }
  0x7c   : > { %2868 = vrot.lane.b32.xlu0 %v2822_v29, %s4916_s18  ;;  %v1928_v22 = vsel %vm1013_vm0, %v1926_v14, %v1927_v15  ;;  %v2416_v25 = vrot.slane %v2414_v20, 1  ;;  %v2424_v28 = vshrl.u32 %v4534_v21, 16  ;;  %v2426_v29 = vshll.u32 %v4534_v21, 16  ;;  %v4538_v30 = vld [vmem:[%s5097_s9 + $0x30] sm:$0xff]   ;;  %v4542_v50 = vld [vmem:[%s5097_s9 + $0x3c] sm:$0xff]   ;;  %v4552_v10 = vld [vmem:[%s5097_s9 + $0x48] sm:$0xff]  }
  0x7d   : > { %v2421_v32 = vrot.slane %v2419_v26, 1  ;;  %v2431_v33 = vshll.u32 %v4535_v27, 16  ;;  %v4536_v34 = vld [vmem:[%s5097_s9 + $0x30] sm:$0xfe]   ;;  %v629_v42 = vshrl.u32 %v4538_v30, 16  ;;  %v631_v43 = vshll.u32 %v4538_v30, 16 }
  0x7e   : > { %v2417_v31 = vor.u32 %v2416_v25, %v2412_v19  ;;  %v2428_v35 = vrot.slane %v2426_v29, 1  ;;  %v4537_v36 = vld [vmem:[%s5097_s9 + $0x38] ss:$0 sps:$4 sm:$0x11]   ;;  %v2826_v38 = vrot.slane %v4536_v34, 1  ;;  %v4550_v7 = vld [vmem:[%s5097_s9 + $0x3c] sm:$0xff]  }
  0x7f   : > { %778 = vrot.lane.b32.xlu1 %v627_v48, %s4912_s10  ;;  %v2433_v37 = vrot.slane %v2431_v33, 1  ;;  %v2827_v40 = vrot.slane %v4537_v36, 1  ;;  %v633_v46 = vrot.slane %v631_v43, 1  ;;  %v4540_v48 = vld [vmem:[%s5097_s9 + $0x3c] sm:$0xfe]   ;;  %v1533_v12 = vshrl.u32 %v4550_v7, 16 }
  0x80   : > { %2870 = vrot.lane.b32.xlu0 %v2825_v41, %s4916_s18  ;;  %v2429_v39 = vor.u32 %v2428_v35, %v2424_v28  ;;  %v4539_v41 = vld [vmem:[%s5097_s9 + $0x38] ss:$0 sps:$4 sm:$0x11]   ;;  %v2422_v44 = vsel %vm579_vm1, %v2417_v31, %v2421_v32  ;;  %v4541_v49 = vld [vmem:[%s5097_s9 + $0x44] ss:$0 sps:$4 sm:$0x11]  }
  0x81   : > { %v636_v47 = vshll.u32 %v4539_v41, 16  ;;  %v2829_v53 = vrot.slane %v4540_v48, 1  ;;  %v2830_v55 = vrot.slane %v4541_v49, 1  ;;  %v4543_v56 = vld [vmem:[%s5097_s9 + $0x44] ss:$0 sps:$4 sm:$0x11]  }
  0x82   : > { %v2434_v45 = vsel %vm579_vm1, %v2429_v39, %v2433_v37  ;;  %v4544_v60 = vld [vmem:[%s5097_s9 + $0x30] sm:$0xfe]   ;;  %v648_v62 = vshll.u32 %v4543_v56, 16  ;;  %v4545_v63 = vld [vmem:[%s5097_s9 + $0x38] ss:$0 sps:$4 sm:$0x11]  }
  0x83   : > { %1068 = vrot.lane.b32.xlu1 %v1025_v57, %s4911_s22  ;;  %v638_v52 = vrot.slane %v636_v47, 1  ;;  %v641_v57 = vshrl.u32 %v4542_v50, 16  ;;  %v1026_v0 = vrot.slane %v4544_v60, 1  ;;  %v2831_v1 = vsel %vm1013_vm0, %v2829_v53, %v2830_v55  ;;  %v4546_v5 = vld [vmem:[%s5097_s9 + $0x3c] sm:$0xfe]   ;;  %v4549_v21 = vld [vmem:[%s5097_s9 + $0x48] sm:$0xff]  }
  0x84   : > { %1066 = vrot.lane.b32.xlu0 %v1022_v51, %s4911_s22  ;;  %v634_v51 = vor.u32 %v633_v46, %v629_v42  ;;  %v650_v3 = vrot.slane %v648_v62, 1  ;;  %v1027_v4 = vrot.slane %v4545_v63, 1  ;;  %v4547_v6 = vld [vmem:[%s5097_s9 + $0x44] ss:$0 sps:$4 sm:$0x11]   ;;  %v1029_v9 = vrot.slane %v4546_v5, 1 }
  0x85   : > { %v1030_v11 = vrot.slane %v4547_v6, 1  ;;  %v1535_v14 = vshll.u32 %v4550_v7, 16  ;;  %v1545_v15 = vshrl.u32 %v4552_v10, 16  ;;  %v1547_v18 = vshll.u32 %v4552_v10, 16  ;;  %v4548_v19 = vld [vmem:[%s5097_s9 + $0x3c] sm:$0xff]   ;;  %v4560_v31 = vld [vmem:[%s5097_s9 + $0x48] sm:$0xff]  }
  0x86   : > { %v639_v59 = vsel %vm579_vm1, %v634_v51, %v638_v52  ;;  %v4554_v29 = vld [vmem:[%s5097_s9 + $0x3c] sm:$0xfe]   ;;  %v4555_v30 = vld [vmem:[%s5097_s9 + $0x44] ss:$0 sps:$4 sm:$0x11]   ;;  %v2438_v42 = vshll.u32 %v4560_v31, 16 }
  0x87   : > { %1249 = vrot.lane.b32.xlu1 %v4521_v58, %s4909_s24  ;;  %v643_v58 = vshll.u32 %v4542_v50, 16  ;;  %v1031_v16 = vsel %vm1013_vm0, %v1029_v9, %v1030_v11  ;;  %v1537_v20 = vrot.slane %v1535_v14, 1  ;;  %v1929_v33 = vrot.slane %v4554_v29, 1  ;;  %v4556_v34 = vld [vmem:[%s5097_s9 + $0x48] sm:$0xfe]   ;;  %v4562_v48 = vld [vmem:[%s5097_s9 + $0x54] sm:$0xff]  }
  0x88   : > { %1247 = vrot.lane.b32.xlu0 %v4520_v54, %s4909_s24  ;;  %v2828_v54 = vsel %vm1013_vm0, %v2826_v38, %v2827_v40  ;;  %v1930_v36 = vrot.slane %v4555_v30, 1  ;;  %v4557_v37 = vld [vmem:[%s5097_s9 + $0x50] ss:$0 sps:$4 sm:$0x11]   ;;  %v1932_v39 = vrot.slane %v4556_v34, 1  ;;  %v2436_v40 = vshrl.u32 %v4560_v31, 16 }
  0x89   : > { %v645_v61 = vrot.slane %v643_v58, 1  ;;  %v1538_v25 = vor.u32 %v1537_v20, %v1533_v12  ;;  %v1933_v41 = vrot.slane %v4557_v37, 1  ;;  %v4558_v47 = vld [vmem:[%s5097_s9 + $0x48] sm:$0xff]   ;;  %v4563_v49 = vld [vmem:[%s5097_s9 + $0x5c] ss:$0 sps:$4 sm:$0x11]  }
  0x8a   : > { %v1931_v43 = vsel %vm1013_vm0, %v1929_v33, %v1930_v36  ;;  %v4559_v50 = vld [vmem:[%s5097_s9 + $0x54] sm:$0xff]   ;;  %v2448_v52 = vshrl.u32 %v4562_v48, 16  ;;  %v2450_v53 = vshll.u32 %v4562_v48, 16  ;;  %v4566_v55 = vld [vmem:[%s5097_s9 + $0x48] sm:$0xff]   ;;  %v4580_v33 = vld [vmem:[%s5097_s9 + $0x60] sm:$0xff]   ;;  %vm386_vm2 = vcmask 31744  }
  0x8b   : > { %1682 = vrot.lane.b32.xlu1 %v1531_v13, %s4913_s11  ;;  %v646_v2 = vor.u32 %v645_v61, %v641_v57  ;;  %v1028_v13 = vsel %vm1013_vm0, %v1026_v0, %v1027_v4  ;;  %v1934_v46 = vsel %vm1013_vm0, %v1932_v39, %v1933_v41  ;;  %v4564_v58 = vld [vmem:[%s5097_s9 + $0x48] sm:$0xfe]   ;;  %v653_v0 = vshrl.u32 %v4566_v55, 16  ;;  %v4568_v6 = vld [vmem:[%s5097_s9 + $0x54] sm:$0xfe]   ;;  %s3642_s19 = sshll.u32 %s5093_s25, 7 }
  0x8c   : > { %1680 = vrot.lane.b32.xlu0 %v1519_v8, %s4913_s11  ;;  %v2452_v60 = vrot.slane %v2450_v53, 1  ;;  %v2832_v62 = vrot.slane %v4564_v58, 1  ;;  %v655_v4 = vshll.u32 %v4566_v55, 16  ;;  %v4569_v10 = vld [vmem:[%s5097_s9 + $0x5c] ss:$0 sps:$4 sm:$0x11]  }
  0x8d   : > { %v651_v8 = vsel %vm579_vm1, %v646_v2, %v650_v3  ;;  %v4567_v3 = vld [vmem:[%s5097_s9 + $0x50] ss:$0 sps:$4 sm:$0x11]   ;;  %v2835_v12 = vrot.slane %v4568_v6, 1  ;;  %v4578_v31 = vld [vmem:[%s5097_s9 + $0x54] sm:$0xff]   ;;  %v1569_v41 = vshrl.u32 %v4580_v33, 16 }
  0x8e   : > { %v2453_v2 = vor.u32 %v2452_v60, %v2448_v52  ;;  %v660_v9 = vshll.u32 %v4567_v3, 16  ;;  %v4575_v30 = vld [vmem:[%s5097_s9 + $0x5c] ss:$0 sps:$4 sm:$0x11]   ;;  %v1557_v36 = vshrl.u32 %v4578_v31, 16  ;;  %v1559_v39 = vshll.u32 %v4578_v31, 16 }
  0x8f   : > { %1971 = vrot.lane.b32.xlu1 %v1928_v22, %s4910_s20  ;;  %v4582_v52 = vld [vmem:[%s5097_s9 + $0x54] sm:$0xfe]   ;;  %v4588_v55 = vld [vmem:[%s5097_s9 + $0x60] sm:$0xff]   ;;  %v4585_v60 = vld [vmem:[%s5097_s9 + $0x68] ss:$0 sps:$4 sm:$0x11]  }
  0x90   : > { %1969 = vrot.lane.b32.xlu0 %v1925_v17, %s4910_s20  ;;  %v4551_v17 = vld [vmem:[%s5097_s9 + $0x44] ss:$0 sps:$4 sm:$0x11]   ;;  %v4590_v3 = vld [vmem:[%s5097_s9 + $0x6c] sm:$0xff]   ;;  %vm820_vm3 = vcmask 64544   ;;  %vm1110_vm4 = vcmask 97344  }
  0x91   : > { %v1540_v22 = vshll.u32 %v4551_v17, 16  ;;  %v4596_v31 = vld [vmem:[%s5097_s9 + $0x68] ss:$0 sps:$4 sm:$0x11]   ;;  %vm1291_vm5 = vcmask 130144   ;;  %vm1724_vm6 = vcmask 162944  }
  0x92   : > { %vm2013_vm7 = vcmask 195744   ;;  %vm2194_vm8 = vcmask 228544   ;;  %vm2627_vm9 = vcmask 261344   ;;  %vm2916_vm10 = vcmask 294144   ;;  %s5735_s30 = scalar_lea.vmem [#allocation8], %s3642_s19  ;;  %s3643_s21 = sshll.u32 %s5093_s25, 1 }
  0x93   : > { %2152 = vrot.lane.b32.xlu1 %v4531_v24, %s4914_s7  ;;  %v1549_v24 = vrot.slane %v1547_v18, 1  ;;  %v1542_v26 = vrot.slane %v1540_v22, 1  ;;  %v4571_v18 = vld [vmem:[%s5097_s9 + $0x5c] ss:$0 sps:$4 sm:$0x11]   ;;  %vm3018_vm11 = vcmask 1041408  }
  0x94   : > { %2150 = vrot.lane.b32.xlu0 %v4530_v23, %s4914_s7  ;;  %v4553_v23 = vld [vmem:[%s5097_s9 + $0x50] ss:$0 sps:$4 sm:$0x11]   ;;  %vm2969_vm12 = vcmask 293888   ;;  %s5752_s27 = scalar_lea.vmem [#allocation9], %s3643_s21  ;;  %s4230_s4 = sshll.u32 %s4895_s15, 11 }
  0x95   : > { %v1550_v27 = vor.u32 %v1549_v24, %v1545_v15  ;;  %v1552_v28 = vshll.u32 %v4553_v23, 16  ;;  %v1543_v35 = vsel %vm579_vm1, %v1538_v25, %v1542_v26  ;;  %v662_v15 = vrot.slane %v660_v9, 1  ;;  %v4573_v24 = vld [vmem:[%s5097_s9 + $0x50] ss:$0 sps:$4 sm:$0x11]   ;;  %s3477_s26 = sshll.u32 %s5735_s30, 4  ;;  %s5768_s26 = int_to_ptr.vmem [resolvable:$true] %s3477_s26 }
  0x96   : > { %v672_v23 = vshll.u32 %v4571_v18, 16  ;;  %v4574_v26 = vld [vmem:[%s5097_s9 + $0x54] sm:$0xfe]   ;;  %v1033_v29 = vrot.slane %v4573_v24, 1 }
  0x97   : > { %2585 = vrot.lane.b32.xlu1 %v2434_v45, %s4915_s8  ;;  %v1554_v32 = vrot.slane %v1552_v28, 1  ;;  %v2440_v45 = vrot.slane %v2438_v42, 1  ;;  %v1571_v42 = vshll.u32 %v4580_v33, 16  ;;  %v4597_v33 = vld [vmem:[%s5097_s9 + $0xc] sm:$0xff]  }
  0x98   : > { %2583 = vrot.lane.b32.xlu0 %v2422_v44, %s4915_s8  ;;  %v4561_v44 = vld [vmem:[%s5097_s9 + $0x50] ss:$0 sps:$4 sm:$0x11]   ;;  %v674_v28 = vrot.slane %v672_v23, 1  ;;  %388 = vst.msk [vmem:[#allocation2 + $0x8] sm:$0xff] %vm386_vm2, %v4597_v33 }
  0x99   : > { %v1555_v38 = vsel %vm579_vm1, %v1550_v27, %v1554_v32  ;;  %v2443_v51 = vshll.u32 %v4561_v44, 16  ;;  %v2441_v56 = vor.u32 %v2440_v45, %v2436_v40  ;;  %v1035_v32 = vrot.slane %v4574_v26, 1 }
  0x9a   : > { %v1561_v44 = vrot.slane %v1559_v39, 1  ;;  %v1573_v48 = vrot.slane %v1571_v42, 1  ;;  %v4598_v39 = vld [vmem:[%s5097_s9 + $0x6c] sm:$0xfe]  }
  0x9b   : > { %780 = vrot.lane.b32.xlu1 %v639_v59, %s4912_s10  ;;  %v2445_v57 = vrot.slane %v2443_v51, 1  ;;  %v4565_v59 = vld [vmem:[%s5097_s9 + $0x50] ss:$0 sps:$4 sm:$0x11]  }
  0x9c   : > { %2872 = vrot.lane.b32.xlu0 %v2828_v54, %s4916_s18  ;;  %v2455_v54 = vshll.u32 %v4563_v49, 16  ;;  %v2833_v63 = vrot.slane %v4565_v59, 1  ;;  %v1562_v49 = vor.u32 %v1561_v44, %v1557_v36  ;;  %v1574_v53 = vor.u32 %v1573_v48, %v1569_v41  ;;  %v4584_v59 = vld [vmem:[%s5097_s9 + $0x60] sm:$0xfe]   ;;  %v4600_v41 = vld [vmem:[%s5097_s9 + $0x6c] sm:$0xff]  }
  0x9d   : > { %v2446_v5 = vsel %vm579_vm1, %v2441_v56, %v2445_v57  ;;  %v1935_v57 = vrot.slane %v4582_v52, 1  ;;  %v689_v48 = vshrl.u32 %v4600_v41, 16 }
  0x9e   : > { %v2457_v61 = vrot.slane %v2455_v54, 1  ;;  %v2834_v17 = vsel %vm1013_vm0, %v2832_v62, %v2833_v63  ;;  %v4583_v54 = vld [vmem:[%s5097_s9 + $0x5c] ss:$0 sps:$4 sm:$0x11]   ;;  %v1938_v63 = vrot.slane %v4584_v59, 1 }
  0x9f   : > { %782 = vrot.lane.b32.xlu1 %v651_v8, %s4912_s10  ;;  %v657_v8 = vrot.slane %v655_v4, 1  ;;  %v1936_v58 = vrot.slane %v4583_v54, 1 }
  0xa0   : > { %2874 = vrot.lane.b32.xlu0 %v2831_v1, %s4916_s18  ;;  %v4570_v1 = vld [vmem:[%s5097_s9 + $0x54] sm:$0xff]   ;;  %v2458_v7 = vsel %vm579_vm1, %v2453_v2, %v2457_v61  ;;  %v4589_v2 = vld [vmem:[%s5097_s9 + $0x68] ss:$0 sps:$4 sm:$0x11]  }
  0xa1   : > { %v665_v11 = vshrl.u32 %v4570_v1, 16  ;;  %v658_v14 = vor.u32 %v657_v8, %v653_v0  ;;  %v1939_v0 = vrot.slane %v4585_v60, 1  ;;  %v1937_v4 = vsel %vm1013_vm0, %v1935_v57, %v1936_v58 }
  0xa3   : > { %1072 = vrot.lane.b32.xlu1 %v1031_v16, %s4911_s22  ;;  %v2836_v16 = vrot.slane %v4569_v10, 1  ;;  %v663_v20 = vsel %vm579_vm1, %v658_v14, %v662_v15  ;;  %v1940_v9 = vsel %vm1013_vm0, %v1938_v63, %v1939_v0  ;;  %v4586_v10 = vld [vmem:[%s5097_s9 + $0x60] sm:$0xff]   ;;  %v2474_v14 = vshll.u32 %v4590_v3, 16  ;;  %v4587_v15 = vld [vmem:[%s5097_s9 + $0x6c] sm:$0xff]  }
  0xa4   : > { %1070 = vrot.lane.b32.xlu0 %v1028_v13, %s4911_s22  ;;  %v667_v13 = vshll.u32 %v4570_v1, 16  ;;  %v2462_v1 = vshll.u32 %v4588_v55, 16  ;;  %v4604_v63 = vld [vmem:[%s5097_s9 + $0x6c] sm:$0xfe]  }
  0xa5   : > { %v2837_v27 = vsel %vm1013_vm0, %v2835_v12, %v2836_v16  ;;  %v4591_v12 = vld [vmem:[%s5097_s9 + $0x74] ss:$0 sps:$4 sm:$0x11]   ;;  %v4592_v16 = vld [vmem:[%s5097_s9] sm:$0xff]   ;;  %v2476_v18 = vrot.slane %v2474_v14, 1 }
  0xa6   : > { %v2464_v8 = vrot.slane %v2462_v1, 1  ;;  %387 = vst.msk [vmem:[#allocation2] sm:$0xff] %vm386_vm2, %v4592_v16  ;;  %v4605_v0 = vld [vmem:[%s5097_s9 + $0x74] ss:$0 sps:$4 sm:$0x11]  }
  0xa7   : > { %1253 = vrot.lane.b32.xlu1 %v4549_v21, %s4909_s24  ;;  %v4572_v21 = vld [vmem:[%s5097_s9 + $0x48] sm:$0xfe]  }
  0xa8   : > { %1251 = vrot.lane.b32.xlu0 %v4548_v19, %s4909_s24  ;;  %v669_v19 = vrot.slane %v667_v13, 1  ;;  %v1032_v25 = vrot.slane %v4572_v21, 1  ;;  %v2472_v13 = vshrl.u32 %v4590_v3, 16  ;;  %v1041_v3 = vrot.slane %v4604_v63, 1 }
  0xaa   : > { %v670_v22 = vor.u32 %v669_v19, %v665_v11  ;;  %v1034_v37 = vsel %vm1013_vm0, %v1032_v25, %v1033_v29  ;;  %v2467_v11 = vshll.u32 %v4589_v2, 16  ;;  %v2479_v19 = vshll.u32 %v4591_v12, 16  ;;  %v4594_v25 = vld [vmem:[%s5097_s9 + $0x68] ss:$0 sps:$4 sm:$0x11]  }
  0xab   : > { %1686 = vrot.lane.b32.xlu1 %v1555_v38, %s4913_s11  ;;  %v4579_v38 = vld [vmem:[%s5097_s9 + $0x5c] ss:$0 sps:$4 sm:$0x11]   ;;  %v2477_v23 = vor.u32 %v2476_v18, %v2472_v13  ;;  %v4609_v12 = vld [vmem:[%s5097_s9 + $0x74] ss:$0 sps:$4 sm:$0x11]  }
  0xac   : > { %1684 = vrot.lane.b32.xlu0 %v1543_v35, %s4913_s11  ;;  %v675_v34 = vsel %vm579_vm1, %v670_v22, %v674_v28  ;;  %v1036_v35 = vrot.slane %v4575_v30, 1  ;;  %v1564_v45 = vshll.u32 %v4579_v38, 16  ;;  %v4593_v22 = vld [vmem:[%s5097_s9 + $0x60] sm:$0xfe]   ;;  %v2481_v24 = vrot.slane %v2479_v19, 1 }
  0xad   : > { %v2838_v28 = vrot.slane %v4593_v22, 1  ;;  %v2839_v30 = vrot.slane %v4594_v25, 1  ;;  %v1588_v16 = vshll.u32 %v4609_v12, 16  ;;  %v4612_v22 = vld [vmem:[#allocation6] sm:$0xff]  }
  0xae   : > { %v1037_v40 = vsel %vm1013_vm0, %v1035_v32, %v1036_v35  ;;  %v2482_v35 = vsel %vm579_vm1, %v2477_v23, %v2481_v24  ;;  %4345 = vmatprep.subr.bf16.mxu0 %v4612_v22  ;;  %4383 = vmatprep.subr.bf16.mxu1 %v4612_v22 }
  0xaf   : > { %1975 = vrot.lane.b32.xlu1 %v1934_v46, %s4910_s20  ;;  %v4581_v46 = vld [vmem:[%s5097_s9 + $0x68] ss:$0 sps:$4 sm:$0x11]   ;;  %v2840_v42 = vsel %vm1013_vm0, %v2838_v28, %v2839_v30  ;;  %v1590_v23 = vrot.slane %v1588_v16, 1  ;;  %4346 = vmatpush3.bf16.msra.mxu0 %v4612_v22 }
  0xb0   : > { %1973 = vrot.lane.b32.xlu0 %v1931_v43, %s4910_s20  ;;  %v4576_v43 = vld [vmem:[%s5097_s9 + $0x54] sm:$0xff]   ;;  %v1576_v51 = vshll.u32 %v4581_v46, 16  ;;  %v2841_v46 = vrot.slane %v4598_v39, 1  ;;  %4386 = vmatpush3.bf16.msra.mxu1 %v4612_v22 }
  0xb2   : > { %v1578_v56 = vrot.slane %v1576_v51, 1  ;;  %v4601_v51 = vld [vmem:[%s5097_s9 + $0x74] ss:$0 sps:$4 sm:$0x11]  }
  0xb3   : > { %2156 = vrot.lane.b32.xlu1 %v4559_v50, %s4914_s7  ;;  %v1566_v50 = vrot.slane %v1564_v45, 1  ;;  %v696_v54 = vshll.u32 %v4601_v51, 16 }
  0xb4   : > { %2154 = vrot.lane.b32.xlu0 %v4558_v47, %s4914_s7  ;;  %v4577_v47 = vld [vmem:[%s5097_s9 + $0x60] sm:$0xff]   ;;  %v1579_v62 = vsel %vm579_vm1, %v1574_v53, %v1578_v56  ;;  %v4603_v56 = vld [vmem:[%s5097_s9 + $0x68] ss:$0 sps:$4 sm:$0x11]  }
  0xb5   : > { %v1567_v61 = vsel %vm579_vm1, %v1562_v49, %v1566_v50  ;;  %v691_v49 = vshll.u32 %v4600_v41, 16  ;;  %v698_v60 = vrot.slane %v696_v54, 1  ;;  %v4617_v41 = vld [vmem:[%s5097_s9 + $0x80] ss:$0 sps:$4 sm:$0x11]  }
  0xb7   : > { %2589 = vrot.lane.b32.xlu1 %v2458_v7, %s4915_s8  ;;  %v2460_v7 = vshrl.u32 %v4588_v55, 16  ;;  %v693_v53 = vrot.slane %v691_v49, 1  ;;  %v4602_v55 = vld [vmem:[%s5097_s9 + $0x60] sm:$0xfe]  }
  0xb8   : > { %2587 = vrot.lane.b32.xlu0 %v2446_v5, %s4915_s8  ;;  %v4621_v49 = vld [vmem:[%s5097_s9 + $0x84] sm:$0xff]  }
  0xb9   : > { %v2465_v21 = vor.u32 %v2464_v8, %v2460_v7  ;;  %v694_v58 = vor.u32 %v693_v53, %v689_v48  ;;  %v4606_v8 = vld [vmem:[%s5097_s9 + $0x6c] sm:$0xff]   ;;  %v4623_v53 = vld [vmem:[%s5097_s9 + $0x78] sm:$0xff]  }
  0xbb   : > { %784 = vrot.lane.b32.xlu1 %v663_v20, %s4912_s10  ;;  %v4595_v20 = vld [vmem:[%s5097_s9 + $0x60] sm:$0xff]   ;;  %v699_v1 = vsel %vm579_vm1, %v694_v58, %v698_v60  ;;  %v2486_v58 = vshll.u32 %v4623_v53, 16  ;;  %v4626_v60 = vld [vmem:[%s5097_s9 + $0x8c] ss:$0 sps:$4 sm:$0x11]  }
  0xbc   : > { %2876 = vrot.lane.b32.xlu0 %v2834_v17, %s4916_s18  ;;  %v2469_v17 = vrot.slane %v2467_v11, 1  ;;  %v677_v29 = vshrl.u32 %v4595_v20, 16  ;;  %v679_v32 = vshll.u32 %v4595_v20, 16  ;;  %v4607_v11 = vld [vmem:[%s5097_s9 + $0x78] sm:$0xff]  }
  0xbe   : > { %v681_v36 = vrot.slane %v679_v32, 1  ;;  %v4618_v32 = vld [vmem:[#allocation6 + $0x8] sm:$0xff]  }
  0xbf   : > { %786 = vrot.lane.b32.xlu1 %v675_v34, %s4912_s10  ;;  %v2470_v34 = vsel %vm579_vm1, %v2465_v21, %v2469_v17  ;;  %v4611_v17 = vld [vmem:[%s5097_s9 + $0x80] ss:$0 sps:$4 sm:$0x11]   ;;  %4347 = vmatprep.subr.bf16.mxu0 %v4618_v32 }
  0xc0   : > { %2878 = vrot.lane.b32.xlu0 %v2837_v27, %s4916_s18  ;;  %v1600_v25 = vshll.u32 %v4611_v17, 16  ;;  %4384 = vmatprep.subr.bf16.mxu1 %v4618_v32 }
  0xc1   : > { %4348 = vmatpush3.bf16.msra.mxu0 %v4618_v32  ;;  %4387 = vmatpush3.bf16.msra.mxu1 %v4618_v32 }
  0xc2   : > { %v1602_v30 = vrot.slane %v1600_v25, 1 }
  0xc3   : > { %1076 = vrot.lane.b32.xlu1 %v1037_v40, %s4911_s22  ;;  %v4599_v40 = vld [vmem:[%s5097_s9 + $0x74] ss:$0 sps:$4 sm:$0x11]  }
  0xc4   : > { %1074 = vrot.lane.b32.xlu0 %v1034_v37, %s4911_s22  ;;  %v684_v37 = vshll.u32 %v4596_v31, 16  ;;  %v4614_v31 = vld [vmem:[%s5097_s9 + $0x6c] sm:$0xfe]  }
  0xc6   : > { %v686_v44 = vrot.slane %v684_v37, 1 }
  0xc7   : > { %1257 = vrot.lane.b32.xlu1 %v4577_v47, %s4909_s24  ;;  %v2842_v47 = vrot.slane %v4599_v40, 1  ;;  %v4616_v40 = vld [vmem:[%s5097_s9 + $0x78] sm:$0xfe]  }
  0xc8   : > { %1255 = vrot.lane.b32.xlu0 %v4576_v43, %s4909_s24  ;;  %v682_v43 = vor.u32 %v681_v36, %v677_v29  ;;  %v4619_v36 = vld [vmem:[%s5097_s9 + $0x24] sm:$0xff]  }
  0xc9   : > { %v2843_v57 = vsel %vm1013_vm0, %v2841_v46, %v2842_v47  ;;  %390 = vst.msk [vmem:[#allocation2 + $0x18] sm:$0xff] %vm386_vm2, %v4619_v36  ;;  %v1945_v46 = vrot.slane %v4617_v41, 1  ;;  %v4620_v47 = vld [vmem:[%s5097_s9 + $0x78] sm:$0xff]   ;;  %v4634_v36 = vld [vmem:[%s5097_s9 + $0x8c] ss:$0 sps:$4 sm:$0x11]  }
  0xca   : > { %v687_v50 = vsel %vm579_vm1, %v682_v43, %v686_v44  ;;  %v720_v41 = vshll.u32 %v4634_v36, 16  ;;  %v4652_v36 = vld [vmem:[%s5097_s9 + $0x9c] sm:$0xff]  }
  0xcb   : > { %1690 = vrot.lane.b32.xlu1 %v1579_v62, %s4913_s11  ;;  %v1039_v62 = vrot.slane %v4603_v56, 1  ;;  %v4625_v56 = vld [vmem:[%s5097_s9 + $0x84] sm:$0xff]  }
  0xcc   : > { %1688 = vrot.lane.b32.xlu0 %v1567_v61, %s4913_s11  ;;  %v1038_v61 = vrot.slane %v4602_v55, 1  ;;  %v4624_v55 = vld [vmem:[%s5097_s9 + $0x80] ss:$0 sps:$4 sm:$0x11]  }
  0xcf   : > { %v5311_v5 = vpop.permute.xlu1 %1245  ;;  %v5313_v6 = vpop.permute.xlu0 %1243  ;;  %1979 = vrot.lane.b32.xlu1 %v1940_v9, %s4910_s20  ;;  %v4608_v9 = vld [vmem:[%s5097_s9 + $0x6c] sm:$0xff]  }
  0xd0   : > { %1977 = vrot.lane.b32.xlu0 %v1937_v4, %s4910_s20  ;;  %v1040_v4 = vsel %vm1013_vm0, %v1038_v61, %v1039_v62  ;;  %v1581_v14 = vshrl.u32 %v4608_v9, 16  ;;  %v2496_v61 = vshrl.u32 %v4625_v56, 16  ;;  %v2498_v62 = vshll.u32 %v4625_v56, 16  ;;  %v4643_v56 = vld [vmem:[%s5097_s9 + $0x90] sm:$0xff]  }
  0xd3   : > { %v5326_v26 = vpop.permute.xlu0 %1965  ;;  %2160 = vrot.lane.b32.xlu1 %v4587_v15, %s4914_s7  ;;  %v1583_v15 = vshll.u32 %v4608_v9, 16 }
  0xd4   : > { %2158 = vrot.lane.b32.xlu0 %v4586_v10, %s4914_s7 }
  0xd5   : > { %v1063_v27 = vpop.permute.xlu1 %1062  ;;  %v1585_v21 = vrot.slane %v1583_v15, 1 }
  0xd7   : > { %2593 = vrot.lane.b32.xlu1 %v2482_v35, %s4915_s8  ;;  %v4615_v35 = vld [vmem:[%s5097_s9 + $0x74] ss:$0 sps:$4 sm:$0x11]  }
  0xd8   : > { %2591 = vrot.lane.b32.xlu0 %v2470_v34, %s4915_s8  ;;  %v1942_v39 = vrot.slane %v4615_v35, 1 }
  0xd9   : > { %v1065_v38 = vpop.permute.xlu1 %1064 }
  0xda   : > { %v773_v45 = vpop.permute.xlu0 %772 }
  0xdb   : > { %821 = vst.msk [vmem:[#allocation2] sm:$0xff] %vm820_vm3, %v773_v45  ;;  %788 = vrot.lane.b32.xlu1 %v687_v50, %s4912_s10  ;;  %v1944_v45 = vrot.slane %v4616_v40, 1  ;;  %v4622_v50 = vld [vmem:[#allocation6 + $0x10] ss:$0 sps:$4 sm:$0x33]  }
  0xdc   : > { %1111 = vst.msk [vmem:[#allocation2] sm:$0xff] %vm1110_vm4, %v1063_v27  ;;  %2880 = vrot.lane.b32.xlu0 %v2840_v42, %s4916_s18  ;;  %v1586_v27 = vor.u32 %v1585_v21, %v1581_v14  ;;  %4389 = vmatprep.subr.msk.bf16.mxu0 %vm3018_vm11, %v4622_v50 }
  0xdd   : > { %v1968_v52 = vpop.permute.xlu1 %1967  ;;  %1292 = vst.msk [vmem:[#allocation2] sm:$0xff] %vm1291_vm5, %v5313_v6  ;;  %v1042_v6 = vrot.slane %v4605_v0, 1  ;;  %v1946_v48 = vsel %vm1013_vm0, %v1944_v45, %v1945_v46  ;;  %4390 = vmatprep.subr.msk.bf16.mxu1 %vm3018_vm11, %v4622_v50  ;;  %v722_v45 = vrot.slane %v720_v41, 1 }
  0xde   : > { %v775_v59 = vpop.permute.xlu0 %774  ;;  %v1591_v34 = vsel %vm579_vm1, %v1586_v27, %v1590_v23 }
  0xdf   : > { %822 = vst.msk [vmem:[#allocation2 + $0x8] sm:$0xff] %vm820_vm3, %v775_v59  ;;  %790 = vrot.lane.b32.xlu1 %v699_v1, %s4912_s10  ;;  %v1043_v10 = vsel %vm1013_vm0, %v1041_v3, %v1042_v6  ;;  %v2491_v59 = vshll.u32 %v4624_v55, 16  ;;  %v2488_v1 = vrot.slane %v2486_v58, 1  ;;  %v2503_v6 = vshll.u32 %v4626_v60, 16  ;;  %v4639_v55 = vld [vmem:[%s5097_s9 + $0x84] sm:$0xff]  }
  0xe0   : > { %1112 = vst.msk [vmem:[#allocation2 + $0x8] sm:$0xff] %vm1110_vm4, %v1065_v38  ;;  %2882 = vrot.lane.b32.xlu0 %v2843_v57, %s4916_s18  ;;  %v1941_v38 = vrot.slane %v4614_v31, 1  ;;  %v2484_v57 = vshrl.u32 %v4623_v53, 16 }
  0xe1   : > { %v1679_v2 = vpop.permute.xlu1 %1678  ;;  %1293 = vst.msk [vmem:[#allocation2 + $0x8] sm:$0xff] %vm1291_vm5, %v5311_v5  ;;  %v4610_v5 = vld [vmem:[%s5097_s9 + $0x78] sm:$0xff]   ;;  %v2493_v3 = vrot.slane %v2491_v59, 1 }
  0xe2   : > { %1726 = vst.msk [vmem:[#allocation2 + $0x8] sm:$0xff] %vm1724_vm6, %v1679_v2  ;;  %v1677_v7 = vpop.permute.xlu0 %1676  ;;  %v1593_v18 = vshrl.u32 %v4610_v5, 16  ;;  %v1595_v19 = vshll.u32 %v4610_v5, 16  ;;  %v1943_v44 = vsel %vm1013_vm0, %v1941_v38, %v1942_v39  ;;  %v2489_v9 = vor.u32 %v2488_v1, %v2484_v57  ;;  %v4642_v1 = vld [vmem:[%s5097_s9 + $0x8c] ss:$0 sps:$4 sm:$0x11]  }
  0xe3   : > { %1725 = vst.msk [vmem:[#allocation2] sm:$0xff] %vm1724_vm6, %v1677_v7  ;;  %1080 = vrot.lane.b32.xlu1 %v1043_v10, %s4911_s22  ;;  %v4627_v7 = vld [vmem:[%s5097_s9 + $0x78] sm:$0xfe]   ;;  %v4628_v10 = vld [vmem:[%s5097_s9 + $0x80] ss:$0 sps:$4 sm:$0x11]  }
  0xe4   : > { %2015 = vst.msk [vmem:[#allocation2 + $0x8] sm:$0xff] %vm2013_vm7, %v1968_v52  ;;  %1078 = vrot.lane.b32.xlu0 %v1040_v4, %s4911_s22  ;;  %2014 = vst.msk [vmem:[#allocation2] sm:$0xff] %vm2013_vm7, %v5326_v26  ;;  %v1597_v24 = vrot.slane %v1595_v19, 1  ;;  %v4613_v26 = vld [vmem:[%s5097_s9 + $0x18] sm:$0xff]   ;;  %v3020_v52 = vsel %vm3018_vm11, %v4622_v50, 0  ;;  %v2500_v4 = vrot.slane %v2498_v62, 1  ;;  %v2494_v14 = vsel %vm579_vm1, %v2489_v9, %v2493_v3 }
  0xe5   : > { %v2149_v13 = vpop.permute.xlu1 %2148  ;;  %389 = vst.msk [vmem:[#allocation2 + $0x10] sm:$0xff] %vm386_vm2, %v4613_v26  ;;  %4350 = vmatpush3.bf16.msra.mxu0 %v3020_v52  ;;  %4388 = vmatpush3.bf16.msra.mxu1 %v3020_v52  ;;  %v2505_v5 = vrot.slane %v2503_v6, 1  ;;  %v2845_v17 = vrot.slane %v4628_v10, 1  ;;  %v4631_v26 = vld [vmem:[%s5097_s9 + $0x84] sm:$0xfe]   ;;  %v1617_v62 = vshrl.u32 %v4643_v56, 16 }
  0xe6   : > { %2196 = vst.msk [vmem:[#allocation2 + $0x8] sm:$0xff] %vm2194_vm8, %v2149_v13  ;;  %v2147_v20 = vpop.permute.xlu0 %2146  ;;  %v1598_v29 = vor.u32 %v1597_v24, %v1593_v18  ;;  %v2501_v12 = vor.u32 %v2500_v4, %v2496_v61  ;;  %v2844_v13 = vrot.slane %v4627_v7, 1  ;;  %v4630_v18 = vld [vmem:[%s5097_s9 + $0x80] ss:$0 sps:$4 sm:$0x11]   ;;  %v2847_v32 = vrot.slane %v4631_v26, 1 }
  0xe7   : > { %2195 = vst.msk [vmem:[#allocation2] sm:$0xff] %vm2194_vm8, %v2147_v20  ;;  %1261 = vrot.lane.b32.xlu1 %v4607_v11, %s4909_s24  ;;  %v4633_v11 = vld [vmem:[%s5097_s9 + $0x84] sm:$0xff]   ;;  %v708_v25 = vshll.u32 %v4630_v18, 16  ;;  %v4638_v50 = vld [vmem:[%s5097_s9 + $0x8c] ss:$0 sps:$4 sm:$0x11]  }
  0xe8   : > { %1259 = vrot.lane.b32.xlu0 %v4606_v8, %s4909_s24  ;;  %v1603_v37 = vsel %vm579_vm1, %v1598_v29, %v1602_v30  ;;  %v4629_v8 = vld [vmem:[%s5097_s9 + $0x78] sm:$0xff]   ;;  %v2506_v20 = vsel %vm579_vm1, %v2501_v12, %v2505_v5  ;;  %v713_v23 = vshrl.u32 %v4633_v11, 16  ;;  %v2846_v24 = vsel %vm1013_vm0, %v2844_v13, %v2845_v17  ;;  %v4632_v29 = vld [vmem:[%s5097_s9 + $0x8c] ss:$0 sps:$4 sm:$0x11]   ;;  %v4645_v4 = vld [vmem:[%s5097_s9 + $0x30] sm:$0xff]  }
  0xe9   : > { %v2582_v28 = vpop.permute.xlu1 %2581  ;;  %v701_v19 = vshrl.u32 %v4629_v8, 16  ;;  %v703_v22 = vshll.u32 %v4629_v8, 16  ;;  %v715_v27 = vshll.u32 %v4633_v11, 16  ;;  %v710_v30 = vrot.slane %v708_v25, 1  ;;  %v4650_v10 = vld [vmem:[%s5097_s9 + $0x3c] sm:$0xff]   ;;  %391 = vst.msk [vmem:[#allocation2 + $0x20] sm:$0xff] %vm386_vm2, %v4645_v4 }
  0xea   : > { %v2580_v33 = vpop.permute.xlu0 %2579  ;;  %2629 = vst.msk [vmem:[#allocation2 + $0x8] sm:$0xff] %vm2627_vm9, %v2582_v28  ;;  %v2848_v35 = vrot.slane %v4632_v29, 1  ;;  %v1048_v57 = vrot.slane %v4638_v50, 1  ;;  %v1612_v7 = vshll.u32 %v4642_v1, 16  ;;  %v4653_v26 = vld [vmem:[%s5097_s9 + $0x90] sm:$0xff]  }
  0xeb   : > { %2628 = vst.msk [vmem:[#allocation2] sm:$0xff] %vm2627_vm9, %v2580_v33  ;;  %1694 = vrot.lane.b32.xlu1 %v1603_v37, %s4913_s11  ;;  %v705_v28 = vrot.slane %v703_v22, 1  ;;  %v717_v37 = vrot.slane %v715_v27, 1  ;;  %v4644_v8 = vld [vmem:[%s5097_s9 + $0x98] ss:$0 sps:$4 sm:$0x11]  }
  0xec   : > { %1692 = vrot.lane.b32.xlu0 %v1591_v34, %s4913_s11  ;;  %v2849_v39 = vsel %vm1013_vm0, %v2847_v32, %v2848_v35  ;;  %v1614_v5 = vrot.slane %v1612_v7, 1  ;;  %392 = vst.msk [vmem:[#allocation2 + $0x28] sm:$0xff] %vm386_vm2, %v4650_v10  ;;  %v4649_v25 = vld [vmem:[%s5097_s9 + $0x98] ss:$0 sps:$4 sm:$0x11]   ;;  %v4651_v29 = vld [vmem:[%s5097_s9 + $0x90] sm:$0xff]  }
  0xed   : > { %v777_v43 = vpop.permute.xlu1 %776  ;;  %v706_v33 = vor.u32 %v705_v28, %v701_v19  ;;  %v718_v40 = vor.u32 %v717_v37, %v713_v23  ;;  %v4648_v23 = vld [vmem:[%s5097_s9 + $0x90] sm:$0xfe]   ;;  %v4654_v37 = vld [vmem:[%s5097_s9 + $0x98] ss:$0 sps:$4 sm:$0x11]  }
  0xee   : > { %v2869_v42 = vpop.permute.xlu0 %2868  ;;  %823 = vst.msk [vmem:[#allocation2 + $0x10] sm:$0xff] %vm820_vm3, %v777_v43  ;;  %v4636_v43 = vld [vmem:[%s5097_s9 + $0x80] ss:$0 sps:$4 sm:$0x11]   ;;  %v1950_v28 = vrot.slane %v4648_v23, 1 }
  0xef   : > { %2917 = vst.msk [vmem:[#allocation2] sm:$0xff] %vm2916_vm10, %v2869_v42  ;;  %1983 = vrot.lane.b32.xlu1 %v1946_v48, %s4910_s20  ;;  %v711_v38 = vsel %vm579_vm1, %v706_v33, %v710_v30  ;;  %v4635_v42 = vld [vmem:[%s5097_s9 + $0x78] sm:$0xfe]   ;;  %v1045_v48 = vrot.slane %v4636_v43, 1  ;;  %v723_v52 = vsel %vm579_vm1, %v718_v40, %v722_v45  ;;  %v2508_v33 = vshrl.u32 %v4653_v26, 16 }
  0xf0   : > { %1981 = vrot.lane.b32.xlu0 %v1943_v44, %s4910_s20  ;;  %v4655_v30 = vld [vmem:[%s5097_s9 + $0x9c] sm:$0xff]   ;;  %v4656_v43 = vld [vmem:[%s5097_s9 + $0xa4] ss:$0 sps:$4 sm:$0x11]   ;;  %v4657_v50 = vld [vmem:[%s5097_s9 + $0x90] sm:$0xfe]  }
  0xf1   : > { %v779_v54 = vpop.permute.xlu1 %778  ;;  %v2520_v45 = vshrl.u32 %v4655_v30, 16  ;;  %v4661_v4 = vld [vmem:[%s5097_s9 + $0x9c] sm:$0xfe]  }
  0xf2   : > { %v2871_v51 = vpop.permute.xlu0 %2870  ;;  %824 = vst.msk [vmem:[#allocation2 + $0x18] sm:$0xff] %vm820_vm3, %v779_v54 }
  0xf3   : > { %2918 = vst.msk [vmem:[#allocation2 + $0x8] sm:$0xff] %vm2916_vm10, %v2871_v51  ;;  %2164 = vrot.lane.b32.xlu1 %v4621_v49, %s4914_s7  ;;  %v4637_v49 = vld [vmem:[%s5097_s9 + $0x84] sm:$0xfe]  }
  0xf4   : > { %2162 = vrot.lane.b32.xlu0 %v4620_v47, %s4914_s7  ;;  %v1044_v47 = vrot.slane %v4635_v42, 1  ;;  %v4641_v51 = vld [vmem:[%s5097_s9 + $0x84] sm:$0xff]   ;;  %v1047_v54 = vrot.slane %v4637_v49, 1  ;;  %v2515_v42 = vshll.u32 %v4654_v37, 16  ;;  %v2527_v49 = vshll.u32 %v4656_v43, 16  ;;  %v4669_v37 = vld [vmem:[%s5097_s9 + $0x9c] sm:$0xff]  }
  0xf5   : > { %v1069_v2 = vpop.permute.xlu1 %1068  ;;  %v1605_v59 = vshrl.u32 %v4641_v51, 16  ;;  %v1607_v61 = vshll.u32 %v4641_v51, 16 }
  0xf6   : > { %v1067_v63 = vpop.permute.xlu0 %1066  ;;  %v2933_v0 = vld [vmem:[#allocation2] sm:$0xff]  ;;  %1114 = vst.msk [vmem:[#allocation2 + $0x18] sm:$0xff] %vm1110_vm4, %v1069_v2  ;;  %v1046_v53 = vsel %vm1013_vm0, %v1044_v47, %v1045_v48  ;;  %v1619_v2 = vshll.u32 %v4643_v56, 16  ;;  %v2517_v48 = vrot.slane %v2515_v42, 1 }
  0xf7   : > { %1113 = vst.msk [vmem:[#allocation2 + $0x10] sm:$0xff] %vm1110_vm4, %v1067_v63  ;;  %4351 = vmatprep.mubr.msk.bf16.mxu0 %vm2969_vm12, %v2933_v0  ;;  %2597 = vrot.lane.b32.xlu1 %v2506_v20, %s4915_s8  ;;  %v1049_v63 = vsel %vm1013_vm0, %v1047_v54, %v1048_v57  ;;  %v4640_v0 = vld [vmem:[%s5097_s9 + $0x90] sm:$0xff]   ;;  %v1609_v3 = vrot.slane %v1607_v61, 1  ;;  %v2529_v54 = vrot.slane %v2527_v49, 1  ;;  %v2850_v57 = vrot.slane %v4657_v50, 1  ;;  %v4673_v42 = vld [vmem:[%s5097_s9 + $0xa8] sm:$0xff]  }
  0xf8   : > { %2595 = vrot.lane.b32.xlu0 %v2494_v14, %s4915_s8  ;;  %v1621_v9 = vrot.slane %v1619_v2, 1  ;;  %v1624_v14 = vshll.u32 %v4644_v8, 16  ;;  %v1641_v49 = vshrl.u32 %v4673_v42, 16  ;;  %v1643_v50 = vshll.u32 %v4673_v42, 16 }
  0xf9   : > { %v1250_v21 = vpop.permute.xlu1 %1249  ;;  %v1610_v12 = vor.u32 %v1609_v3, %v1605_v59 }
  0xfa   : > { %v1248_v15 = vpop.permute.xlu0 %1247  ;;  %v2934_v16 = vld [vmem:[#allocation2 + $0x8] sm:$0xff]  ;;  %1295 = vst.msk [vmem:[#allocation2 + $0x18] sm:$0xff] %vm1291_vm5, %v1250_v21  ;;  %v1622_v13 = vor.u32 %v1621_v9, %v1617_v62  ;;  %v1626_v18 = vrot.slane %v1624_v14, 1  ;;  %v4660_v62 = vld [vmem:[%s5097_s9 + $0x98] ss:$0 sps:$4 sm:$0x11]  }
  0xfb   : > { %1294 = vst.msk [vmem:[#allocation2 + $0x10] sm:$0xff] %vm1291_vm5, %v1248_v15  ;;  %4352 = vmatmul.mubr.msk.bf16.vlgmr.msra.gmra.mrb[0].mxu0 %vm2969_vm12, %v2934_v16  ;;  %792 = vrot.lane.b32.xlu1 %v711_v38, %s4912_s10  ;;  %v4646_v15 = vld [vmem:[%s5097_s9 + $0x84] sm:$0xfe]   ;;  %v4647_v16 = vld [vmem:[%s5097_s9 + $0x8c] ss:$0 sps:$4 sm:$0x11]   ;;  %v1615_v17 = vsel %vm579_vm1, %v1610_v12, %v1614_v5 }
  0xfc   : > { %2884 = vrot.lane.b32.xlu0 %v2846_v24, %s4916_s18  ;;  %v1947_v21 = vrot.slane %v4646_v15, 1  ;;  %v1948_v22 = vrot.slane %v4647_v16, 1  ;;  %v1627_v24 = vsel %vm579_vm1, %v1622_v13, %v1626_v18  ;;  %v2510_v38 = vshll.u32 %v4653_v26, 16  ;;  %v4662_v9 = vld [vmem:[%s5097_s9 + $0xa4] ss:$0 sps:$4 sm:$0x11]  }
  0xfd   : > { %v1683_v34 = vpop.permute.xlu1 %1682  ;;  %v732_v3 = vshll.u32 %v4660_v62, 16  ;;  %v2853_v12 = vrot.slane %v4661_v4, 1  ;;  %v2854_v13 = vrot.slane %v4662_v9, 1  ;;  %v4664_v14 = vld [vmem:[%s5097_s9 + $0xa4] ss:$0 sps:$4 sm:$0x11]  }
  0xfe   : > { %v1681_v31 = vpop.permute.xlu0 %1680  ;;  %1728 = vst.msk [vmem:[#allocation2 + $0x18] sm:$0xff] %vm1724_vm6, %v1683_v34  ;;  %v1949_v27 = vsel %vm1013_vm0, %v1947_v21, %v1948_v22  ;;  %v2512_v41 = vrot.slane %v2510_v38, 1  ;;  %v4665_v22 = vld [vmem:[%s5097_s9 + $0x90] sm:$0xfe]   ;;  %v4671_v38 = vld [vmem:[%s5097_s9 + $0x9c] sm:$0xff]  }
  0xff   : > { %1727 = vst.msk [vmem:[#allocation2 + $0x10] sm:$0xff] %vm1724_vm6, %v1681_v31  ;;  %794 = vrot.lane.b32.xlu1 %v723_v52, %s4912_s10  ;;  %v1951_v31 = vrot.slane %v4649_v25, 1  ;;  %v4658_v52 = vld [vmem:[%s5097_s9 + $0x98] ss:$0 sps:$4 sm:$0x11]   ;;  %v734_v10 = vrot.slane %v732_v3, 1  ;;  %v2855_v18 = vsel %vm1013_vm0, %v2853_v12, %v2854_v13 }
 0x100   : > { %2886 = vrot.lane.b32.xlu0 %v2849_v39, %s4916_s18  ;;  %v2513_v47 = vor.u32 %v2512_v41, %v2508_v33  ;;  %v2851_v61 = vrot.slane %v4658_v52, 1  ;;  %v4672_v41 = vld [vmem:[%s5097_s9 + $0xa4] ss:$0 sps:$4 sm:$0x11]   ;;  %v4675_v52 = vld [vmem:[%s5097_s9 + $0x48] sm:$0xff]   ;;  %v4682_v13 = vld [vmem:[%s5097_s9 + $0xb4] sm:$0xff]  }
 0x101   : > { %v1972_v46 = vpop.permute.xlu1 %1971  ;;  %v1952_v35 = vsel %vm1013_vm0, %v1950_v28, %v1951_v31  ;;  %v4667_v28 = vld [vmem:[%s5097_s9 + $0x9c] sm:$0xfe]   ;;  %393 = vst.msk [vmem:[#allocation2 + $0x30] sm:$0xff] %vm386_vm2, %v4675_v52  ;;  %v4678_v4 = vld [vmem:[%s5097_s9 + $0xa8] sm:$0xfe]  }
 0x102   : > { %v1970_v44 = vpop.permute.xlu0 %1969  ;;  %2017 = vst.msk [vmem:[#allocation2 + $0x18] sm:$0xff] %vm2013_vm7, %v1972_v46  ;;  %v2522_v46 = vshll.u32 %v4655_v30, 16  ;;  %v2852_v2 = vsel %vm1013_vm0, %v2850_v57, %v2851_v61  ;;  %v4668_v30 = vld [vmem:[%s5097_s9 + $0xa4] ss:$0 sps:$4 sm:$0x11]   ;;  %v1956_v9 = vrot.slane %v4678_v4, 1 }
 0x103   : > { %2016 = vst.msk [vmem:[#allocation2 + $0x10] sm:$0xff] %vm2013_vm7, %v1970_v44  ;;  %1084 = vrot.lane.b32.xlu1 %v1049_v63, %s4911_s22  ;;  %v4681_v12 = vld [vmem:[%s5097_s9 + $0xa8] sm:$0xff]   ;;  %v4691_v52 = vld [vmem:[%s5097_s9 + $0xb4] sm:$0xfe]  }
 0x104   : > { %1082 = vrot.lane.b32.xlu0 %v1046_v53, %s4911_s22  ;;  %v2524_v51 = vrot.slane %v2522_v46, 1  ;;  %v2518_v53 = vsel %vm579_vm1, %v2513_v47, %v2517_v48  ;;  %v1636_v47 = vshll.u32 %v4672_v41, 16  ;;  %v4674_v48 = vld [vmem:[%s5097_s9 + $0xb0] ss:$0 sps:$4 sm:$0x11]  }
 0x105   : > { %v2153_v60 = vpop.permute.xlu1 %2152 }
 0x106   : > { %v2151_v58 = vpop.permute.xlu0 %2150  ;;  %2198 = vst.msk [vmem:[#allocation2 + $0x18] sm:$0xff] %vm2194_vm8, %v2153_v60  ;;  %v2525_v59 = vor.u32 %v2524_v51, %v2520_v45  ;;  %v1631_v45 = vshll.u32 %v4671_v38, 16 }
 0x107   : > { %2197 = vst.msk [vmem:[#allocation2 + $0x10] sm:$0xff] %vm2194_vm8, %v2151_v58  ;;  %1265 = vrot.lane.b32.xlu1 %v4640_v0, %s4909_s24  ;;  %v4659_v58 = vld [vmem:[%s5097_s9 + $0x90] sm:$0xff]  }
 0x108   : > { %1263 = vrot.lane.b32.xlu0 %v4639_v55, %s4909_s24  ;;  %v725_v63 = vshrl.u32 %v4659_v58, 16  ;;  %v727_v0 = vshll.u32 %v4659_v58, 16  ;;  %v2530_v1 = vsel %vm579_vm1, %v2525_v59, %v2529_v54  ;;  %v1633_v51 = vrot.slane %v1631_v45, 1  ;;  %v4676_v59 = vld [vmem:[%s5097_s9 + $0x9c] sm:$0xfe]  }
 0x109   : > { %v2586_v11 = vpop.permute.xlu1 %2585  ;;  %v1645_v54 = vrot.slane %v1643_v50, 1 }
 0x10a   : > { %v2584_v6 = vpop.permute.xlu0 %2583  ;;  %2631 = vst.msk [vmem:[#allocation2 + $0x18] sm:$0xff] %vm2627_vm9, %v2586_v11  ;;  %v729_v7 = vrot.slane %v727_v0, 1 }
 0x10b   : > { %2630 = vst.msk [vmem:[#allocation2 + $0x10] sm:$0xff] %vm2627_vm9, %v2584_v6  ;;  %1698 = vrot.lane.b32.xlu1 %v1627_v24, %s4913_s11  ;;  %v4663_v6 = vld [vmem:[%s5097_s9 + $0x9c] sm:$0xff]   ;;  %v4666_v24 = vld [vmem:[%s5097_s9 + $0x98] ss:$0 sps:$4 sm:$0x11]  }
 0x10c   : > { %1696 = vrot.lane.b32.xlu0 %v1615_v17, %s4913_s11  ;;  %v730_v5 = vor.u32 %v729_v7, %v725_v63  ;;  %v737_v15 = vshrl.u32 %v4663_v6, 16  ;;  %v739_v16 = vshll.u32 %v4663_v6, 16  ;;  %v4677_v63 = vld [vmem:[%s5097_s9 + $0xa4] ss:$0 sps:$4 sm:$0x11]  }
 0x10d   : > { %v781_v20 = vpop.permute.xlu1 %780  ;;  %v1954_v3 = vrot.slane %v4677_v63, 1  ;;  %v4679_v6 = vld [vmem:[%s5097_s9 + $0xb0] ss:$0 sps:$4 sm:$0x11]  }
 0x10e   : > { %v2873_v19 = vpop.permute.xlu0 %2872  ;;  %825 = vst.msk [vmem:[#allocation2 + $0x20] sm:$0xff] %vm820_vm3, %v781_v20  ;;  %v735_v17 = vsel %vm579_vm1, %v730_v5, %v734_v10  ;;  %v744_v20 = vshll.u32 %v4664_v14, 16  ;;  %v1957_v10 = vrot.slane %v4679_v6, 1  ;;  %v4683_v14 = vld [vmem:[%s5097_s9 + $0xa8] sm:$0xff]  }
 0x10f   : > { %2919 = vst.msk [vmem:[#allocation2 + $0x10] sm:$0xff] %vm2916_vm10, %v2873_v19  ;;  %1987 = vrot.lane.b32.xlu1 %v1952_v35, %s4910_s20  ;;  %v741_v19 = vrot.slane %v739_v16, 1  ;;  %v1054_v35 = vrot.slane %v4668_v30, 1  ;;  %v4696_v6 = vld [vmem:[%s5097_s9 + $0xb0] ss:$0 sps:$4 sm:$0x11]  }
 0x110   : > { %1985 = vrot.lane.b32.xlu0 %v1949_v27, %s4910_s20  ;;  %v746_v26 = vrot.slane %v744_v20, 1  ;;  %v1050_v27 = vrot.slane %v4665_v22, 1  ;;  %v1958_v5 = vsel %vm1013_vm0, %v1956_v9, %v1957_v10  ;;  %v2534_v20 = vshll.u32 %v4683_v14, 16  ;;  %v4685_v22 = vld [vmem:[%s5097_s9 + $0xb4] sm:$0xff]  }
 0x111   : > { %v783_v34 = vpop.permute.xlu1 %782  ;;  %v742_v25 = vor.u32 %v741_v19, %v737_v15  ;;  %v2532_v19 = vshrl.u32 %v4683_v14, 16  ;;  %v4699_v14 = vld [vmem:[%s5097_s9 + $0xb4] sm:$0xff]  }
 0x112   : > { %v2875_v32 = vpop.permute.xlu0 %2874  ;;  %826 = vst.msk [vmem:[#allocation2 + $0x28] sm:$0xff] %vm820_vm3, %v783_v34 }
 0x113   : > { %2920 = vst.msk [vmem:[#allocation2 + $0x18] sm:$0xff] %vm2916_vm10, %v2875_v32  ;;  %2168 = vrot.lane.b32.xlu1 %v4652_v36, %s4914_s7  ;;  %v747_v31 = vsel %vm579_vm1, %v742_v25, %v746_v26  ;;  %v1053_v32 = vrot.slane %v4667_v28, 1  ;;  %v4689_v25 = vld [vmem:[%s5097_s9 + $0xa8] sm:$0xff]   ;;  %v2546_v28 = vshll.u32 %v4685_v22, 16 }
 0x114   : > { %2166 = vrot.lane.b32.xlu0 %v4651_v29, %s4914_s7  ;;  %v1051_v29 = vrot.slane %v4666_v24, 1  ;;  %v2536_v24 = vrot.slane %v2534_v20, 1  ;;  %v751_v41 = vshll.u32 %v4689_v25, 16 }
 0x115   : > { %v1073_v44 = vpop.permute.xlu1 %1072 }
 0x116   : > { %v1071_v39 = vpop.permute.xlu0 %1070  ;;  %v2935_v40 = vld [vmem:[#allocation2 + $0x10] sm:$0xff]  ;;  %1116 = vst.msk [vmem:[#allocation2 + $0x28] sm:$0xff] %vm1110_vm4, %v1073_v44  ;;  %v1052_v34 = vsel %vm1013_vm0, %v1050_v27, %v1051_v29  ;;  %v1629_v44 = vshrl.u32 %v4671_v38, 16  ;;  %v2544_v27 = vshrl.u32 %v4685_v22, 16  ;;  %v749_v38 = vshrl.u32 %v4689_v25, 16  ;;  %v4703_v25 = vld [vmem:[%s5097_s9 + $0xc0] sm:$0xff]  }
 0x117   : > { %1115 = vst.msk [vmem:[#allocation2 + $0x20] sm:$0xff] %vm1110_vm4, %v1071_v39  ;;  %4355 = vmatprep.mubr.msk.bf16.mxu0 %vm2969_vm12, %v2935_v40  ;;  %2601 = vrot.lane.b32.xlu1 %v2530_v1, %s4915_s8  ;;  %v1055_v39 = vsel %vm1013_vm0, %v1053_v32, %v1054_v35  ;;  %v4670_v40 = vld [vmem:[%s5097_s9 + $0xa8] sm:$0xff]   ;;  %v1953_v1 = vrot.slane %v4676_v59, 1  ;;  %v2537_v32 = vor.u32 %v2536_v24, %v2532_v19  ;;  %v2548_v35 = vrot.slane %v2546_v28, 1  ;;  %v4705_v28 = vld [vmem:[%s5097_s9 + $0x60] sm:$0xff]  }
 0x118   : > { %2599 = vrot.lane.b32.xlu0 %v2518_v53, %s4915_s8  ;;  %v1638_v53 = vrot.slane %v1636_v47, 1  ;;  %v1634_v57 = vor.u32 %v1633_v51, %v1629_v44  ;;  %v4690_v44 = vld [vmem:[%s5097_s9 + $0xb0] ss:$0 sps:$4 sm:$0x11]   ;;  %395 = vst.msk [vmem:[#allocation2 + $0x40] sm:$0xff] %vm386_vm2, %v4705_v28 }
 0x119   : > { %v1254_v60 = vpop.permute.xlu1 %1253  ;;  %v2549_v42 = vor.u32 %v2548_v35, %v2544_v27  ;;  %v756_v51 = vshll.u32 %v4690_v44, 16  ;;  %v4702_v24 = vld [vmem:[%s5097_s9 + $0xbc] ss:$0 sps:$4 sm:$0x11]  }
 0x11a   : > { %v1252_v55 = vpop.permute.xlu0 %1251  ;;  %v2936_v56 = vld [vmem:[#allocation2 + $0x18] sm:$0xff]  ;;  %1297 = vst.msk [vmem:[#allocation2 + $0x28] sm:$0xff] %vm1291_vm5, %v1254_v60  ;;  %v1646_v60 = vor.u32 %v1645_v54, %v1641_v49  ;;  %v1639_v0 = vsel %vm579_vm1, %v1634_v57, %v1638_v53  ;;  %v4720_v28 = vld [vmem:[%s5097_s9 + $0xd4] ss:$0 sps:$4 sm:$0x11]  }
 0x11b   : > { %1296 = vst.msk [vmem:[#allocation2 + $0x20] sm:$0xff] %vm1291_vm5, %v1252_v55  ;;  %4356 = vmatmul.mubr.msk.bf16.gmra.mrb[4].mxu0 %vm2969_vm12, %v2936_v56  ;;  %796 = vrot.lane.b32.xlu1 %v735_v17, %s4912_s10  ;;  %v1648_v55 = vshll.u32 %v4674_v48, 16  ;;  %v4680_v56 = vld [vmem:[%s5097_s9 + $0x54] sm:$0xff]   ;;  %v4684_v17 = vld [vmem:[%s5097_s9 + $0xb0] ss:$0 sps:$4 sm:$0x11]  }
 0x11c   : > { %2888 = vrot.lane.b32.xlu0 %v2852_v2, %s4916_s18  ;;  %394 = vst.msk [vmem:[#allocation2 + $0x38] sm:$0xff] %vm386_vm2, %v4680_v56  ;;  %v4693_v48 = vld [vmem:[%s5097_s9 + $0xb4] sm:$0xff]   ;;  %v4692_v53 = vld [vmem:[%s5097_s9 + $0xbc] ss:$0 sps:$4 sm:$0x11]   ;;  %v2859_v56 = vrot.slane %v4691_v52, 1 }
 0x11d   : > { %v1687_v11 = vpop.permute.xlu1 %1686  ;;  %v1650_v61 = vrot.slane %v1648_v55, 1  ;;  %v758_v55 = vrot.slane %v756_v51, 1  ;;  %v2860_v57 = vrot.slane %v4692_v53, 1  ;;  %v4707_v44 = vld [vmem:[%s5097_s9 + $0xbc] ss:$0 sps:$4 sm:$0x11]  }
 0x11e   : > { %v1685_v8 = vpop.permute.xlu0 %1684  ;;  %1730 = vst.msk [vmem:[#allocation2 + $0x28] sm:$0xff] %vm1724_vm6, %v1687_v11 }
 0x11f   : > { %1729 = vst.msk [vmem:[#allocation2 + $0x20] sm:$0xff] %vm1724_vm6, %v1685_v8  ;;  %798 = vrot.lane.b32.xlu1 %v747_v31, %s4912_s10  ;;  %v1651_v2 = vsel %vm579_vm1, %v1646_v60, %v1650_v61  ;;  %v1955_v8 = vsel %vm1013_vm0, %v1953_v1, %v1954_v3  ;;  %v761_v60 = vshrl.u32 %v4693_v48, 16  ;;  %v763_v61 = vshll.u32 %v4693_v48, 16  ;;  %v4701_v3 = vld [vmem:[%s5097_s9 + $0xb4] sm:$0xff]  }
 0x120   : > { %2890 = vrot.lane.b32.xlu0 %v2855_v18, %s4916_s18  ;;  %v1653_v20 = vshrl.u32 %v4701_v3, 16  ;;  %v1960_v48 = vrot.slane %v4707_v44, 1 }
 0x121   : > { %v1976_v23 = vpop.permute.xlu1 %1975  ;;  %v765_v4 = vrot.slane %v763_v61, 1  ;;  %v4713_v61 = vld [vmem:[%s5097_s9 + $0xc0] sm:$0xff]  }
 0x122   : > { %v1974_v21 = vpop.permute.xlu0 %1973  ;;  %2019 = vst.msk [vmem:[#allocation2 + $0x28] sm:$0xff] %vm2013_vm7, %v1976_v23  ;;  %v4686_v23 = vld [vmem:[%s5097_s9 + $0xbc] ss:$0 sps:$4 sm:$0x11]  }
 0x123   : > { %2018 = vst.msk [vmem:[#allocation2 + $0x20] sm:$0xff] %vm2013_vm7, %v1974_v21  ;;  %1088 = vrot.lane.b32.xlu1 %v1055_v39, %s4911_s22  ;;  %v2539_v21 = vshll.u32 %v4684_v17, 16  ;;  %v2551_v29 = vshll.u32 %v4686_v23, 16  ;;  %v766_v10 = vor.u32 %v765_v4, %v761_v60  ;;  %v4712_v60 = vld [vmem:[%s5097_s9 + $0xcc] sm:$0xff]  }
 0x124   : > { %1086 = vrot.lane.b32.xlu0 %v1052_v34, %s4911_s22  ;;  %v4687_v34 = vld [vmem:[%s5097_s9 + $0xa8] sm:$0xfe]  }
 0x125   : > { %v2157_v36 = vpop.permute.xlu1 %2156  ;;  %v2541_v26 = vrot.slane %v2539_v21, 1  ;;  %v1655_v21 = vshll.u32 %v4701_v3, 16  ;;  %v4716_v3 = vld [vmem:[%s5097_s9 + $0xd4] ss:$0 sps:$4 sm:$0x11]  }
 0x126   : > { %v2155_v33 = vpop.permute.xlu0 %2154  ;;  %2200 = vst.msk [vmem:[#allocation2 + $0x28] sm:$0xff] %vm2194_vm8, %v2157_v36  ;;  %v2553_v36 = vrot.slane %v2551_v29, 1  ;;  %v1660_v29 = vshll.u32 %v4702_v24, 16  ;;  %v4724_v24 = vld [vmem:[%s5097_s9 + $0x9c] sm:$0xff]  }
 0x127   : > { %2199 = vst.msk [vmem:[#allocation2 + $0x20] sm:$0xff] %vm2194_vm8, %v2155_v33  ;;  %1269 = vrot.lane.b32.xlu1 %v4670_v40, %s4909_s24  ;;  %v2542_v39 = vsel %vm579_vm1, %v2537_v32, %v2541_v26  ;;  %v2856_v40 = vrot.slane %v4687_v34, 1  ;;  %v4700_v26 = vld [vmem:[%s5097_s9 + $0xc0] sm:$0xff]   ;;  %v1657_v27 = vrot.slane %v1655_v21, 1  ;;  %v1667_v32 = vshll.u32 %v4703_v25, 16 }
 0x128   : > { %1267 = vrot.lane.b32.xlu0 %v4669_v37, %s4909_s24  ;;  %v4688_v37 = vld [vmem:[%s5097_s9 + $0xb0] ss:$0 sps:$4 sm:$0x11]   ;;  %v2554_v49 = vsel %vm579_vm1, %v2549_v42, %v2553_v36  ;;  %v1662_v35 = vrot.slane %v1660_v29, 1  ;;  %400 = vst.msk [vmem:[#allocation2 + $0x68] sm:$0xff] %vm386_vm2, %v4724_v24 }
 0x129   : > { %v2590_v46 = vpop.permute.xlu1 %2589  ;;  %v1669_v36 = vrot.slane %v1667_v32, 1  ;;  %v2866_v32 = vrot.slane %v4720_v28, 1 }
 0x12a   : > { %v2588_v43 = vpop.permute.xlu0 %2587  ;;  %2633 = vst.msk [vmem:[#allocation2 + $0x28] sm:$0xff] %vm2627_vm9, %v2590_v46  ;;  %v753_v46 = vrot.slane %v751_v41, 1 }
 0x12b   : > { %2632 = vst.msk [vmem:[#allocation2 + $0x20] sm:$0xff] %vm2627_vm9, %v2588_v43  ;;  %1702 = vrot.lane.b32.xlu1 %v1651_v2, %s4913_s11  ;;  %v2857_v43 = vrot.slane %v4688_v37, 1  ;;  %v4695_v2 = vld [vmem:[%s5097_s9 + $0xa8] sm:$0xfe]  }
 0x12c   : > { %1700 = vrot.lane.b32.xlu0 %v1639_v0, %s4913_s11  ;;  %v754_v54 = vor.u32 %v753_v46, %v749_v38  ;;  %v2861_v0 = vsel %vm1013_vm0, %v2859_v56, %v2860_v57 }
 0x12d   : > { %v785_v62 = vpop.permute.xlu1 %784  ;;  %v2858_v50 = vsel %vm1013_vm0, %v2856_v40, %v2857_v43  ;;  %v4706_v40 = vld [vmem:[%s5097_s9 + $0xb4] sm:$0xfe]  }
 0x12e   : > { %v2877_v58 = vpop.permute.xlu0 %2876  ;;  %827 = vst.msk [vmem:[#allocation2 + $0x30] sm:$0xff] %vm820_vm3, %v785_v62  ;;  %v759_v63 = vsel %vm579_vm1, %v754_v54, %v758_v55  ;;  %v4711_v55 = vld [vmem:[%s5097_s9 + $0xc0] sm:$0xff]  }
 0x12f   : > { %2921 = vst.msk [vmem:[#allocation2 + $0x20] sm:$0xff] %vm2916_vm10, %v2877_v58  ;;  %1991 = vrot.lane.b32.xlu1 %v1958_v5, %s4910_s20  ;;  %v4694_v58 = vld [vmem:[%s5097_s9 + $0xbc] ss:$0 sps:$4 sm:$0x11]  }
 0x130   : > { %1989 = vrot.lane.b32.xlu0 %v1955_v8, %s4910_s20  ;;  %v768_v1 = vshll.u32 %v4694_v58, 16  ;;  %v1056_v8 = vrot.slane %v4695_v2, 1  ;;  %v4698_v5 = vld [vmem:[%s5097_s9 + $0xbc] ss:$0 sps:$4 sm:$0x11]  }
 0x131   : > { %v787_v11 = vpop.permute.xlu1 %786 }
 0x132   : > { %v2879_v7 = vpop.permute.xlu0 %2878  ;;  %828 = vst.msk [vmem:[#allocation2 + $0x38] sm:$0xff] %vm820_vm3, %v787_v11  ;;  %v1057_v11 = vrot.slane %v4696_v6, 1 }
 0x133   : > { %2922 = vst.msk [vmem:[#allocation2 + $0x28] sm:$0xff] %vm2916_vm10, %v2879_v7  ;;  %2172 = vrot.lane.b32.xlu1 %v4682_v13, %s4914_s7  ;;  %v770_v7 = vrot.slane %v768_v1, 1  ;;  %v2558_v1 = vshll.u32 %v4713_v61, 16 }
 0x134   : > { %2170 = vrot.lane.b32.xlu0 %v4681_v12, %s4914_s7  ;;  %v4697_v12 = vld [vmem:[%s5097_s9 + $0xb4] sm:$0xfe]  }
 0x135   : > { %v1077_v18 = vpop.permute.xlu1 %1076  ;;  %v1059_v17 = vrot.slane %v4697_v12, 1 }
 0x136   : > { %v1075_v15 = vpop.permute.xlu0 %1074  ;;  %v2937_v16 = vld [vmem:[#allocation2 + $0x20] sm:$0xff]  ;;  %1118 = vst.msk [vmem:[#allocation2 + $0x38] sm:$0xff] %vm1110_vm4, %v1077_v18  ;;  %v1060_v18 = vrot.slane %v4698_v5, 1  ;;  %v2575_v5 = vshll.u32 %v4716_v3, 16 }
 0x137   : > { %1117 = vst.msk [vmem:[#allocation2 + $0x30] sm:$0xff] %vm1110_vm4, %v1075_v15  ;;  %4359 = vmatprep.mubr.msk.bf16.mxu0 %vm2969_vm12, %v2937_v16  ;;  %2605 = vrot.lane.b32.xlu1 %v2554_v49, %s4915_s8  ;;  %v771_v15 = vsel %vm579_vm1, %v766_v10, %v770_v7  ;;  %v1058_v16 = vsel %vm1013_vm0, %v1056_v8, %v1057_v11  ;;  %v4708_v49 = vld [vmem:[%s5097_s9 + $0xc0] sm:$0xfe]   ;;  %v4721_v10 = vld [vmem:[%s5097_s9 + $0x78] sm:$0xff]   ;;  %v2560_v11 = vrot.slane %v2558_v1, 1 }
 0x138   : > { %2603 = vrot.lane.b32.xlu0 %v2542_v39, %s4915_s8  ;;  %v1061_v22 = vsel %vm1013_vm0, %v1059_v17, %v1060_v18  ;;  %v4710_v39 = vld [vmem:[%s5097_s9 + $0x6c] sm:$0xff]   ;;  %v1962_v53 = vrot.slane %v4708_v49, 1  ;;  %397 = vst.msk [vmem:[#allocation2 + $0x50] sm:$0xff] %vm386_vm2, %v4721_v10  ;;  %v2577_v18 = vrot.slane %v2575_v5, 1 }
 0x139   : > { %v1258_v33 = vpop.permute.xlu1 %1257  ;;  %396 = vst.msk [vmem:[#allocation2 + $0x48] sm:$0xff] %vm386_vm2, %v4710_v39 }
 0x13a   : > { %v1256_v30 = vpop.permute.xlu0 %1255  ;;  %v2938_v31 = vld [vmem:[#allocation2 + $0x28] sm:$0xff]  ;;  %1299 = vst.msk [vmem:[#allocation2 + $0x38] sm:$0xff] %vm1291_vm5, %v1258_v33  ;;  %v1658_v33 = vor.u32 %v1657_v27, %v1653_v20 }
 0x13b   : > { %1298 = vst.msk [vmem:[#allocation2 + $0x30] sm:$0xff] %vm1291_vm5, %v1256_v30  ;;  %4360 = vmatmul.mubr.msk.bf16.gmra.mrb[8].mxu0 %vm2969_vm12, %v2938_v31  ;;  %800 = vrot.lane.b32.xlu1 %v759_v63, %s4912_s10  ;;  %v4704_v30 = vld [vmem:[%s5097_s9 + $0xc8] ss:$0 sps:$4 sm:$0x11]   ;;  %v1665_v31 = vshrl.u32 %v4703_v25, 16  ;;  %v4715_v63 = vld [vmem:[%s5097_s9 + $0xcc] sm:$0xff]  }
 0x13c   : > { %2892 = vrot.lane.b32.xlu0 %v2858_v50, %s4916_s18  ;;  %v1672_v37 = vshll.u32 %v4704_v30, 16  ;;  %v1663_v41 = vsel %vm579_vm1, %v1658_v33, %v1662_v35  ;;  %v4709_v50 = vld [vmem:[%s5097_s9 + $0xc8] ss:$0 sps:$4 sm:$0x11]   ;;  %v2568_v6 = vshrl.u32 %v4715_v63, 16  ;;  %v2570_v7 = vshll.u32 %v4715_v63, 16 }
 0x13d   : > { %v1691_v47 = vpop.permute.xlu1 %1690  ;;  %v1670_v42 = vor.u32 %v1669_v36, %v1665_v31  ;;  %v1963_v54 = vrot.slane %v4709_v50, 1  ;;  %v4719_v27 = vld [vmem:[%s5097_s9 + $0xcc] sm:$0xfe]  }
 0x13e   : > { %v1689_v45 = vpop.permute.xlu0 %1688  ;;  %1732 = vst.msk [vmem:[#allocation2 + $0x38] sm:$0xff] %vm1724_vm6, %v1691_v47  ;;  %v1674_v43 = vrot.slane %v1672_v37, 1  ;;  %v2865_v31 = vrot.slane %v4719_v27, 1  ;;  %v4725_v36 = vld [vmem:[%s5097_s9 + $0xa8] sm:$0xff]   ;;  %v4726_v37 = vld [vmem:[%s5097_s9 + $0xb4] sm:$0xff]  }
 0x13f   : > { %1731 = vst.msk [vmem:[#allocation2 + $0x30] sm:$0xff] %vm1724_vm6, %v1689_v45  ;;  %802 = vrot.lane.b32.xlu1 %v771_v15, %s4912_s10  ;;  %v1959_v45 = vrot.slane %v4706_v40, 1  ;;  %v1964_v58 = vsel %vm1013_vm0, %v1962_v53, %v1963_v54  ;;  %v4717_v15 = vld [vmem:[%s5097_s9 + $0xc0] sm:$0xfe]  }
 0x140   : > { %2894 = vrot.lane.b32.xlu0 %v2861_v0, %s4916_s18  ;;  %v1675_v47 = vsel %vm579_vm1, %v1670_v42, %v1674_v43  ;;  %v2556_v0 = vshrl.u32 %v4713_v61, 16  ;;  %v2867_v35 = vsel %vm1013_vm0, %v2865_v31, %v2866_v32  ;;  %401 = vst.msk [vmem:[#allocation2 + $0x70] sm:$0xff] %vm386_vm2, %v4725_v36  ;;  %402 = vst.msk [vmem:[#allocation2 + $0x78] sm:$0xff] %vm386_vm2, %v4726_v37 }
 0x141   : > { %v1980_v62 = vpop.permute.xlu1 %1979  ;;  %v1961_v52 = vsel %vm1013_vm0, %v1959_v45, %v1960_v48 }
 0x142   : > { %v1978_v59 = vpop.permute.xlu0 %1977  ;;  %2021 = vst.msk [vmem:[#allocation2 + $0x38] sm:$0xff] %vm2013_vm7, %v1980_v62  ;;  %v4714_v62 = vld [vmem:[%s5097_s9 + $0xc8] ss:$0 sps:$4 sm:$0x11]   ;;  %v2561_v17 = vor.u32 %v2560_v11, %v2556_v0 }
 0x143   : > { %2020 = vst.msk [vmem:[#allocation2 + $0x30] sm:$0xff] %vm2013_vm7, %v1978_v59  ;;  %1092 = vrot.lane.b32.xlu1 %v1061_v22, %s4911_s22  ;;  %v2563_v2 = vshll.u32 %v4714_v62, 16  ;;  %v2862_v22 = vrot.slane %v4717_v15, 1 }
 0x144   : > { %1090 = vrot.lane.b32.xlu0 %v1058_v16, %s4911_s22  ;;  %v4723_v16 = vld [vmem:[%s5097_s9 + $0x90] sm:$0xff]   ;;  %s4785_s22 = scalar_lea.vmem %s5768_s26, 2048 }
 0x145   : > { %v2161_v13 = vpop.permute.xlu1 %2160  ;;  %v2565_v12 = vrot.slane %v2563_v2, 1  ;;  %399 = vst.msk [vmem:[#allocation2 + $0x60] sm:$0xff] %vm386_vm2, %v4723_v16  ;;  %p4786_p4 = scmp.ne.s32.totalorder %s5768_s26, %s4785_s22 }
 0x146   : > { %v2159_v9 = vpop.permute.xlu0 %2158  ;;  %2202 = vst.msk [vmem:[#allocation2 + $0x38] sm:$0xff] %vm2194_vm8, %v2161_v13  ;;  %v4722_v13 = vld [vmem:[%s5097_s9 + $0x84] sm:$0xff]  }
 0x147   : > { %2201 = vst.msk [vmem:[#allocation2 + $0x30] sm:$0xff] %vm2194_vm8, %v2159_v9  ;;  %1273 = vrot.lane.b32.xlu1 %v4700_v26, %s4909_s24  ;;  %v2566_v25 = vsel %vm579_vm1, %v2561_v17, %v2565_v12  ;;  %p4787_p6 = pnand %p4786_p4, %p5036_p10 }
 0x148   : > { %1271 = vrot.lane.b32.xlu0 %v4699_v14, %s4909_s24  ;;  %v2572_v14 = vrot.slane %v2570_v7, 1  ;;  %398 = vst.msk [vmem:[#allocation2 + $0x58] sm:$0xff] %vm386_vm2, %v4722_v13  ;;  %s5766_s24 = scalar_lea.hbm %s5857_s2, %s4230_s4 }
 0x149   : > { %v2594_v23 = vpop.permute.xlu1 %2593  ;;  %p4788_p8 = pneg %p4787_p6 }
 0x14a   : > { %v2592_v19 = vpop.permute.xlu0 %2591  ;;  %2635 = vst.msk [vmem:[#allocation2 + $0x38] sm:$0xff] %vm2627_vm9, %v2594_v23  ;;  %v2573_v21 = vor.u32 %v2572_v14, %v2568_v6 }
 0x14b   : > { %2634 = vst.msk [vmem:[#allocation2 + $0x30] sm:$0xff] %vm2627_vm9, %v2592_v19  ;;  %1706 = vrot.lane.b32.xlu1 %v1675_v47, %s4913_s11  ;;  %v4718_v19 = vld [vmem:[%s5097_s9 + $0xc8] ss:$0 sps:$4 sm:$0x11]  }
 0x14c   : > { %1704 = vrot.lane.b32.xlu0 %v1663_v41, %s4913_s11  ;;  %v2863_v26 = vrot.slane %v4718_v19, 1  ;;  %v2578_v29 = vsel %vm579_vm1, %v2573_v21, %v2577_v18  ;;  %s4918_s11 = smov [#allocation8]  }
 0x14d   : > { %v789_v38 = vpop.permute.xlu1 %788 }
 0x14e   : > { %v2881_v34 = vpop.permute.xlu0 %2880  ;;  %829 = vst.msk [vmem:[#allocation2 + $0x40] sm:$0xff] %vm820_vm3, %v789_v38  ;;  %v2864_v30 = vsel %vm1013_vm0, %v2862_v22, %v2863_v26 }
 0x14f   : > { %2923 = vst.msk [vmem:[#allocation2 + $0x30] sm:$0xff] %vm2916_vm10, %v2881_v34  ;;  %1995 = vrot.lane.b32.xlu1 %v1964_v58, %s4910_s20 }
 0x150   : > { %1993 = vrot.lane.b32.xlu0 %v1961_v52, %s4910_s20  ;;  %s3456_s20 = scalar_lea.sflag [#allocation5], %s5093_s25 }
 0x151   : > { %v791_v51 = vpop.permute.xlu1 %790 }
 0x152   : > { %v2883_v46 = vpop.permute.xlu0 %2882  ;;  %830 = vst.msk [vmem:[#allocation2 + $0x48] sm:$0xff] %vm820_vm3, %v791_v51 }
 0x153   : > { %2924 = vst.msk [vmem:[#allocation2 + $0x38] sm:$0xff] %vm2916_vm10, %v2883_v46  ;;  %2176 = vrot.lane.b32.xlu1 %v4712_v60, %s4914_s7 }
 0x154   : > { %2174 = vrot.lane.b32.xlu0 %v4711_v55, %s4914_s7  ;;  %s4789_s7 = sshll.u32 %s4918_s11, 4  ;;  %s4790_s7 = int_to_ptr.vmem [resolvable:$false] %s4789_s7 }
 0x155   : > { %v1081_v59 = vpop.permute.xlu1 %1080  ;;  %p4792_p12 = scmp.lt.s32.totalorder %s5768_s26, %s4790_s7 }
 0x156   : > { %v1079_v56 = vpop.permute.xlu0 %1078  ;;  %v2939_v57 = vld [vmem:[#allocation2 + $0x30] sm:$0xff]  ;;  %1120 = vst.msk [vmem:[#allocation2 + $0x48] sm:$0xff] %vm1110_vm4, %v1081_v59 }
 0x157   : > { %1119 = vst.msk [vmem:[#allocation2 + $0x40] sm:$0xff] %vm1110_vm4, %v1079_v56  ;;  %4363 = vmatprep.mubr.msk.bf16.mxu0 %vm2969_vm12, %v2939_v57  ;;  %2609 = vrot.lane.b32.xlu1 %v2578_v29, %s4915_s8 }
 0x158   : > { %2607 = vrot.lane.b32.xlu0 %v2566_v25, %s4915_s8  ;;  %s4791_s8 = scalar_lea.vmem %s4790_s7, 4096 }
 0x159   : > { %v1262_v8 = vpop.permute.xlu1 %1261  ;;  %p4793_p13 = scmp.lt.s32.totalorder %s4791_s8, %s4785_s22 }
 0x15a   : > { %v1260_v4 = vpop.permute.xlu0 %1259  ;;  %v2940_v9 = vld [vmem:[#allocation2 + $0x38] sm:$0xff]  ;;  %1301 = vst.msk [vmem:[#allocation2 + $0x48] sm:$0xff] %vm1291_vm5, %v1262_v8 }
 0x15b   : > { %1300 = vst.msk [vmem:[#allocation2 + $0x40] sm:$0xff] %vm1291_vm5, %v1260_v4  ;;  %4364 = vmatmul.mubr.msk.bf16.gmra.mrb[12].mxu0 %vm2969_vm12, %v2940_v9  ;;  %2898 = vrot.lane.b32.xlu1 %v2867_v35, %s4916_s18  ;;  %p4794_p0 = por %p4793_p13, %p4792_p12 }
 0x15c   : > { %2896 = vrot.lane.b32.xlu0 %v2864_v30, %s4916_s18 }
 0x15d   : > { %v1695_v23 = vpop.permute.xlu1 %1694  ;;  %p4795_p5 = pnand %p4794_p0, %p4788_p8 }
 0x15e   : > { %v1693_v20 = vpop.permute.xlu0 %1692  ;;  %1734 = vst.msk [vmem:[#allocation2 + $0x48] sm:$0xff] %vm1724_vm6, %v1695_v23 }
 0x15f   : > { %1733 = vst.msk [vmem:[#allocation2 + $0x40] sm:$0xff] %vm1724_vm6, %v1693_v20 }
 0x161   : > { %v1984_v34 = vpop.permute.xlu1 %1983 }
 0x162   : > { %v1982_v33 = vpop.permute.xlu0 %1981  ;;  %2023 = vst.msk [vmem:[#allocation2 + $0x48] sm:$0xff] %vm2013_vm7, %v1984_v34 }
 0x163   : > { %2022 = vst.msk [vmem:[#allocation2 + $0x40] sm:$0xff] %vm2013_vm7, %v1982_v33 }
 0x165   : > { %v2165_v39 = vpop.permute.xlu1 %2164 }
 0x166   : > { %v2163_v38 = vpop.permute.xlu0 %2162  ;;  %2204 = vst.msk [vmem:[#allocation2 + $0x48] sm:$0xff] %vm2194_vm8, %v2165_v39 }
 0x167   : > { %2203 = vst.msk [vmem:[#allocation2 + $0x40] sm:$0xff] %vm2194_vm8, %v2163_v38 }
 0x169   : > { %v2598_v41 = vpop.permute.xlu1 %2597 }
 0x16a   : > { %v2596_v40 = vpop.permute.xlu0 %2595  ;;  %2637 = vst.msk [vmem:[#allocation2 + $0x48] sm:$0xff] %vm2627_vm9, %v2598_v41 }
 0x16b   : > { %2636 = vst.msk [vmem:[#allocation2 + $0x40] sm:$0xff] %vm2627_vm9, %v2596_v40 }
 0x16d   : > { %v793_v43 = vpop.permute.xlu1 %792 }
 0x16e   : > { %v2885_v42 = vpop.permute.xlu0 %2884  ;;  %831 = vst.msk [vmem:[#allocation2 + $0x50] sm:$0xff] %vm820_vm3, %v793_v43 }
 0x16f   : > { %2925 = vst.msk [vmem:[#allocation2 + $0x40] sm:$0xff] %vm2916_vm10, %v2885_v42 }
 0x171   : > { %v795_v45 = vpop.permute.xlu1 %794 }
 0x172   : > { %v2887_v44 = vpop.permute.xlu0 %2886  ;;  %832 = vst.msk [vmem:[#allocation2 + $0x58] sm:$0xff] %vm820_vm3, %v795_v45 }
 0x173   : > { %2926 = vst.msk [vmem:[#allocation2 + $0x48] sm:$0xff] %vm2916_vm10, %v2887_v44 }
 0x175   : > { %v1085_v48 = vpop.permute.xlu1 %1084 }
 0x176   : > { %v1083_v46 = vpop.permute.xlu0 %1082  ;;  %v2941_v47 = vld [vmem:[#allocation2 + $0x40] sm:$0xff]  ;;  %1122 = vst.msk [vmem:[#allocation2 + $0x58] sm:$0xff] %vm1110_vm4, %v1085_v48 }
 0x177   : > { %1121 = vst.msk [vmem:[#allocation2 + $0x50] sm:$0xff] %vm1110_vm4, %v1083_v46  ;;  %4367 = vmatprep.mubr.msk.bf16.mxu1 %vm2969_vm12, %v2941_v47 }
 0x179   : > { %v1266_v51 = vpop.permute.xlu1 %1265 }
 0x17a   : > { %v1264_v49 = vpop.permute.xlu0 %1263  ;;  %v2942_v50 = vld [vmem:[#allocation2 + $0x48] sm:$0xff]  ;;  %1303 = vst.msk [vmem:[#allocation2 + $0x58] sm:$0xff] %vm1291_vm5, %v1266_v51 }
 0x17b   : > { %1302 = vst.msk [vmem:[#allocation2 + $0x50] sm:$0xff] %vm1291_vm5, %v1264_v49  ;;  %4368 = vmatmul.mubr.msk.bf16.vlgmr.msra.gmra.mrb[0].mxu1 %vm2969_vm12, %v2942_v50 }
 0x17d   : > { %v1699_v53 = vpop.permute.xlu1 %1698 }
 0x17e   : > { %v1697_v52 = vpop.permute.xlu0 %1696  ;;  %1736 = vst.msk [vmem:[#allocation2 + $0x58] sm:$0xff] %vm1724_vm6, %v1699_v53 }
 0x17f   : > { %1735 = vst.msk [vmem:[#allocation2 + $0x50] sm:$0xff] %vm1724_vm6, %v1697_v52 }
 0x181   : > { %v1988_v55 = vpop.permute.xlu1 %1987 }
 0x182   : > { %v1986_v54 = vpop.permute.xlu0 %1985  ;;  %2025 = vst.msk [vmem:[#allocation2 + $0x58] sm:$0xff] %vm2013_vm7, %v1988_v55 }
 0x183   : > { %2024 = vst.msk [vmem:[#allocation2 + $0x50] sm:$0xff] %vm2013_vm7, %v1986_v54 }
 0x185   : > { %v2169_v57 = vpop.permute.xlu1 %2168 }
 0x186   : > { %v2167_v56 = vpop.permute.xlu0 %2166  ;;  %2206 = vst.msk [vmem:[#allocation2 + $0x58] sm:$0xff] %vm2194_vm8, %v2169_v57 }
 0x187   : > { %2205 = vst.msk [vmem:[#allocation2 + $0x50] sm:$0xff] %vm2194_vm8, %v2167_v56 }
 0x189   : > { %v2602_v59 = vpop.permute.xlu1 %2601 }
 0x18a   : > { %v2600_v58 = vpop.permute.xlu0 %2599  ;;  %2639 = vst.msk [vmem:[#allocation2 + $0x58] sm:$0xff] %vm2627_vm9, %v2602_v59 }
 0x18b   : > { %2638 = vst.msk [vmem:[#allocation2 + $0x50] sm:$0xff] %vm2627_vm9, %v2600_v58 }
 0x18d   : > { %v797_v61 = vpop.permute.xlu1 %796 }
 0x18e   : > { %v2889_v60 = vpop.permute.xlu0 %2888  ;;  %833 = vst.msk [vmem:[#allocation2 + $0x60] sm:$0xff] %vm820_vm3, %v797_v61 }
 0x18f   : > { %2927 = vst.msk [vmem:[#allocation2 + $0x50] sm:$0xff] %vm2916_vm10, %v2889_v60 }
 0x191   : > { %v799_v63 = vpop.permute.xlu1 %798 }
 0x192   : > { %v2891_v62 = vpop.permute.xlu0 %2890  ;;  %834 = vst.msk [vmem:[#allocation2 + $0x68] sm:$0xff] %vm820_vm3, %v799_v63 }
 0x193   : > { %2928 = vst.msk [vmem:[#allocation2 + $0x58] sm:$0xff] %vm2916_vm10, %v2891_v62 }
 0x195   : > { %v1089_v2 = vpop.permute.xlu1 %1088 }
 0x196   : > { %v2943_v0 = vld [vmem:[#allocation2 + $0x50] sm:$0xff]  ;;  %v1087_v1 = vpop.permute.xlu0 %1086  ;;  %1124 = vst.msk [vmem:[#allocation2 + $0x68] sm:$0xff] %vm1110_vm4, %v1089_v2 }
 0x197   : > { %4371 = vmatprep.mubr.msk.bf16.mxu1 %vm2969_vm12, %v2943_v0  ;;  %1123 = vst.msk [vmem:[#allocation2 + $0x60] sm:$0xff] %vm1110_vm4, %v1087_v1 }
 0x199   : > { %v1270_v6 = vpop.permute.xlu1 %1269 }
 0x19a   : > { %v2944_v3 = vld [vmem:[#allocation2 + $0x58] sm:$0xff]  ;;  %v1268_v4 = vpop.permute.xlu0 %1267  ;;  %1305 = vst.msk [vmem:[#allocation2 + $0x68] sm:$0xff] %vm1291_vm5, %v1270_v6 }
 0x19b   : > { %4372 = vmatmul.mubr.msk.bf16.gmra.mrb[4].mxu1 %vm2969_vm12, %v2944_v3  ;;  %1304 = vst.msk [vmem:[#allocation2 + $0x60] sm:$0xff] %vm1291_vm5, %v1268_v4 }
 0x19d   : > { %v1703_v8 = vpop.permute.xlu1 %1702 }
 0x19e   : > { %v1701_v7 = vpop.permute.xlu0 %1700  ;;  %1738 = vst.msk [vmem:[#allocation2 + $0x68] sm:$0xff] %vm1724_vm6, %v1703_v8 }
 0x19f   : > { %1737 = vst.msk [vmem:[#allocation2 + $0x60] sm:$0xff] %vm1724_vm6, %v1701_v7 }
 0x1a1   : > { %v1992_v10 = vpop.permute.xlu1 %1991 }
 0x1a2   : > { %v1990_v9 = vpop.permute.xlu0 %1989  ;;  %2027 = vst.msk [vmem:[#allocation2 + $0x68] sm:$0xff] %vm2013_vm7, %v1992_v10 }
 0x1a3   : > { %2026 = vst.msk [vmem:[#allocation2 + $0x60] sm:$0xff] %vm2013_vm7, %v1990_v9 }
 0x1a5   : > { %v2173_v12 = vpop.permute.xlu1 %2172 }
 0x1a6   : > { %v2171_v11 = vpop.permute.xlu0 %2170  ;;  %2208 = vst.msk [vmem:[#allocation2 + $0x68] sm:$0xff] %vm2194_vm8, %v2173_v12 }
 0x1a7   : > { %2207 = vst.msk [vmem:[#allocation2 + $0x60] sm:$0xff] %vm2194_vm8, %v2171_v11 }
 0x1a9   : > { %v2606_v13 = vpop.permute.xlu1 %2605 }
 0x1aa   : > { %v2604_v5 = vpop.permute.xlu0 %2603  ;;  %2641 = vst.msk [vmem:[#allocation2 + $0x68] sm:$0xff] %vm2627_vm9, %v2606_v13 }
 0x1ab   : > { %2640 = vst.msk [vmem:[#allocation2 + $0x60] sm:$0xff] %vm2627_vm9, %v2604_v5 }
 0x1ad   : > { %v801_v15 = vpop.permute.xlu1 %800 }
 0x1ae   : > { %v2893_v14 = vpop.permute.xlu0 %2892  ;;  %835 = vst.msk [vmem:[#allocation2 + $0x70] sm:$0xff] %vm820_vm3, %v801_v15 }
 0x1af   : > { %2929 = vst.msk [vmem:[#allocation2 + $0x60] sm:$0xff] %vm2916_vm10, %v2893_v14 }
 0x1b1   : > { %v803_v17 = vpop.permute.xlu1 %802 }
 0x1b2   : > { %v2895_v16 = vpop.permute.xlu0 %2894  ;;  %836 = vst.msk [vmem:[#allocation2 + $0x78] sm:$0xff] %vm820_vm3, %v803_v17 }
 0x1b3   : > { %2930 = vst.msk [vmem:[#allocation2 + $0x68] sm:$0xff] %vm2916_vm10, %v2895_v16 }
 0x1b5   : > { %v1093_v20 = vpop.permute.xlu1 %1092 }
 0x1b6   : > { %v1091_v18 = vpop.permute.xlu0 %1090  ;;  %v2945_v19 = vld [vmem:[#allocation2 + $0x60] sm:$0xff]  ;;  %1126 = vst.msk [vmem:[#allocation2 + $0x78] sm:$0xff] %vm1110_vm4, %v1093_v20 }
 0x1b7   : > { %1125 = vst.msk [vmem:[#allocation2 + $0x70] sm:$0xff] %vm1110_vm4, %v1091_v18  ;;  %4375 = vmatprep.mubr.msk.bf16.mxu1 %vm2969_vm12, %v2945_v19 }
 0x1b9   : > { %v1274_v23 = vpop.permute.xlu1 %1273 }
 0x1ba   : > { %v1272_v21 = vpop.permute.xlu0 %1271  ;;  %v2946_v22 = vld [vmem:[#allocation2 + $0x68] sm:$0xff]  ;;  %1307 = vst.msk [vmem:[#allocation2 + $0x78] sm:$0xff] %vm1291_vm5, %v1274_v23 }
 0x1bb   : > { %1306 = vst.msk [vmem:[#allocation2 + $0x70] sm:$0xff] %vm1291_vm5, %v1272_v21  ;;  %4376 = vmatmul.mubr.msk.bf16.gmra.mrb[8].mxu1 %vm2969_vm12, %v2946_v22 }
 0x1bd   : > { %v1707_v25 = vpop.permute.xlu1 %1706 }
 0x1be   : > { %v1705_v24 = vpop.permute.xlu0 %1704  ;;  %1740 = vst.msk [vmem:[#allocation2 + $0x78] sm:$0xff] %vm1724_vm6, %v1707_v25 }
 0x1bf   : > { %1739 = vst.msk [vmem:[#allocation2 + $0x70] sm:$0xff] %vm1724_vm6, %v1705_v24 }
 0x1c1   : > { %v1996_v27 = vpop.permute.xlu1 %1995 }
 0x1c2   : > { %v1994_v26 = vpop.permute.xlu0 %1993  ;;  %2029 = vst.msk [vmem:[#allocation2 + $0x78] sm:$0xff] %vm2013_vm7, %v1996_v27 }
 0x1c3   : > { %2028 = vst.msk [vmem:[#allocation2 + $0x70] sm:$0xff] %vm2013_vm7, %v1994_v26 }
 0x1c5   : > { %v2177_v31 = vpop.permute.xlu1 %2176 }
 0x1c6   : > { %v2175_v28 = vpop.permute.xlu0 %2174  ;;  %2210 = vst.msk [vmem:[#allocation2 + $0x78] sm:$0xff] %vm2194_vm8, %v2177_v31 }
 0x1c7   : > { %2209 = vst.msk [vmem:[#allocation2 + $0x70] sm:$0xff] %vm2194_vm8, %v2175_v28 }
 0x1c9   : > { %v2610_v40 = vpop.permute.xlu1 %2609 }
 0x1ca   : > { %v2608_v39 = vpop.permute.xlu0 %2607  ;;  %2643 = vst.msk [vmem:[#allocation2 + $0x78] sm:$0xff] %vm2627_vm9, %v2610_v40 }
 0x1cb   : > { %2642 = vst.msk [vmem:[#allocation2 + $0x70] sm:$0xff] %vm2627_vm9, %v2608_v39 }
 0x1cd   : > { %v2899_v48 = vpop.permute.xlu1 %2898 }
 0x1ce   : > { %v4353_v29 = vpop.f32.mrb[0].mxu0  ;;  %v2897_v47 = vpop.permute.xlu0 %2896  ;;  %2932 = vst.msk [vmem:[#allocation2 + $0x78] sm:$0xff] %vm2916_vm10, %v2899_v48 }
 0x1cf   : > { %v3056_v30 = vpop.f32.mrb[1].mxu0  ;;  %v3386_v41 = vmul.f32 %v4353_v29, %v4353_v29  ;;  %2931 = vst.msk [vmem:[#allocation2 + $0x70] sm:$0xff] %vm2916_vm10, %v2897_v47 }
 0x1d0   : > { %v4354_v32 = vpop.f32.mrb[2].mxu0  ;;  %v3384_v35 = vmul.f32 %v3056_v30, %v3056_v30 }
 0x1d1   : > { %v4239_v33 = vpack.c.bf16 %v4354_v32, %v4353_v29  ;;  %v3059_v34 = vpop.f32.mrb[3].mxu0  ;;  %v3387_v44 = vmul.f32 %v4354_v32, %v4354_v32 }
 0x1d2   : > { %v4234_v36 = vpack.c.bf16 %v3059_v34, %v3056_v30  ;;  %v3344_v37 = vadd.f32 %v3059_v34, %v3056_v30  ;;  %v3385_v38 = vmul.f32 %v3059_v34, %v3059_v34 }
 0x1d3   : > { %4311 = vst [vmem:[%s5735_s30 + $0x8] sm:$0xff] %v4239_v33  }
 0x1d4   : > { %4235 = vst [vmem:[%s5735_s30] sm:$0xff] %v4234_v36   ;;  %v3345_v42 = vadd.f32 %v4353_v29, %v3344_v37  ;;  %v3416_v43 = vadd.f32 %v3385_v38, %v3384_v35 }
 0x1d5   : > { %v2948_v51 = vld [vmem:[#allocation2 + $0x78] sm:$0xff] }
 0x1d6   : > { %v3417_v45 = vadd.f32 %v3416_v43, %v3386_v41  ;;  %v3346_v46 = vadd.f32 %v4354_v32, %v3345_v42  ;;  %v2947_v50 = vld [vmem:[#allocation2 + $0x70] sm:$0xff]  ;;  %v4917_v42 = vmov 0.0  }
 0x1d7   : > { %4379 = vmatprep.mubr.msk.bf16.mxu1 %vm2969_vm12, %v2947_v50  ;;  %253 = vst [vmem:[%s5752_s27] sm:$0x3] %v4917_v42 }
 0x1d8   : > { %v3418_v49 = vadd.f32 %v3417_v45, %v3387_v44  ;;  %4380 = vmatmul.mubr.msk.bf16.gmra.mrb[12].mxu1 %vm2969_vm12, %v2948_v51 }
 0x1ee   : > { %v4357_v52 = vpop.f32.mrb[4].mxu0 }
 0x1ef   : > { %v3072_v53 = vpop.f32.mrb[5].mxu0  ;;  %v3390_v63 = vmul.f32 %v4357_v52, %v4357_v52 }
 0x1f0   : > { %v3347_v54 = vadd.f32 %v3346_v46, %v3072_v53  ;;  %v3388_v55 = vmul.f32 %v3072_v53, %v3072_v53  ;;  %v4358_v56 = vpop.f32.mrb[6].mxu0 }
 0x1f1   : > { %v4249_v57 = vpack.c.bf16 %v4358_v56, %v4357_v52  ;;  %v3075_v58 = vpop.f32.mrb[7].mxu0  ;;  %v3391_v2 = vmul.f32 %v4358_v56, %v4358_v56 }
 0x1f2   : > { %v3419_v59 = vadd.f32 %v3418_v49, %v3388_v55  ;;  %v4244_v60 = vpack.c.bf16 %v3075_v58, %v3072_v53  ;;  %v3348_v61 = vadd.f32 %v3347_v54, %v3075_v58  ;;  %v3389_v62 = vmul.f32 %v3075_v58, %v3075_v58 }
 0x1f3   : > { %4313 = vst [vmem:[%s5735_s30 + $0x18] sm:$0xff] %v4249_v57  }
 0x1f4   : > { %4312 = vst [vmem:[%s5735_s30 + $0x10] sm:$0xff] %v4244_v60   ;;  %v3349_v0 = vadd.f32 %v4357_v52, %v3348_v61  ;;  %v3420_v1 = vadd.f32 %v3419_v59, %v3389_v62 }
 0x1f6   : > { %v3421_v3 = vadd.f32 %v3420_v1, %v3390_v63  ;;  %v3350_v4 = vadd.f32 %v4358_v56, %v3349_v0 }
 0x1f8   : > { %v3422_v6 = vadd.f32 %v3421_v3, %v3391_v2 }
 0x20e   : > { %v4361_v7 = vpop.f32.mrb[8].mxu0 }
 0x20f   : > { %v3088_v8 = vpop.f32.mrb[9].mxu0  ;;  %v3394_v17 = vmul.f32 %v4361_v7, %v4361_v7 }
 0x210   : > { %v3351_v9 = vadd.f32 %v3350_v4, %v3088_v8  ;;  %v3392_v10 = vmul.f32 %v3088_v8, %v3088_v8  ;;  %v4362_v11 = vpop.f32.mrb[10].mxu0 }
 0x211   : > { %v4259_v12 = vpack.c.bf16 %v4362_v11, %v4361_v7  ;;  %v3091_v5 = vpop.f32.mrb[11].mxu0  ;;  %v3395_v20 = vmul.f32 %v4362_v11, %v4362_v11 }
 0x212   : > { %v3423_v13 = vadd.f32 %v3422_v6, %v3392_v10  ;;  %v4254_v14 = vpack.c.bf16 %v3091_v5, %v3088_v8  ;;  %v3352_v15 = vadd.f32 %v3351_v9, %v3091_v5  ;;  %v3393_v16 = vmul.f32 %v3091_v5, %v3091_v5 }
 0x213   : > { %4315 = vst [vmem:[%s5735_s30 + $0x28] sm:$0xff] %v4259_v12  }
 0x214   : > { %4314 = vst [vmem:[%s5735_s30 + $0x20] sm:$0xff] %v4254_v14   ;;  %v3353_v18 = vadd.f32 %v4361_v7, %v3352_v15  ;;  %v3424_v19 = vadd.f32 %v3423_v13, %v3393_v16 }
 0x216   : > { %v3425_v21 = vadd.f32 %v3424_v19, %v3394_v17  ;;  %v3354_v22 = vadd.f32 %v4362_v11, %v3353_v18 }
 0x218   : > { %v3426_v23 = vadd.f32 %v3425_v21, %v3395_v20 }
 0x22e   : > { %v4365_v24 = vpop.f32.mrb[12].mxu0 }
 0x22f   : > { %v3104_v25 = vpop.f32.mrb[13].mxu0  ;;  %v3398_v35 = vmul.f32 %v4365_v24, %v4365_v24 }
 0x230   : > { %v3355_v26 = vadd.f32 %v3354_v22, %v3104_v25  ;;  %v3396_v27 = vmul.f32 %v3104_v25, %v3104_v25  ;;  %v4366_v28 = vpop.f32.mrb[14].mxu0 }
 0x231   : > { %v4269_v29 = vpack.c.bf16 %v4366_v28, %v4365_v24  ;;  %v3107_v30 = vpop.f32.mrb[15].mxu0  ;;  %v3399_v38 = vmul.f32 %v4366_v28, %v4366_v28 }
 0x232   : > { %v3427_v31 = vadd.f32 %v3426_v23, %v3396_v27  ;;  %v4264_v32 = vpack.c.bf16 %v3107_v30, %v3104_v25  ;;  %v3356_v33 = vadd.f32 %v3355_v26, %v3107_v30  ;;  %v3397_v34 = vmul.f32 %v3107_v30, %v3107_v30 }
 0x233   : > { %4317 = vst [vmem:[%s5735_s30 + $0x38] sm:$0xff] %v4269_v29  }
 0x234   : > { %4316 = vst [vmem:[%s5735_s30 + $0x30] sm:$0xff] %v4264_v32   ;;  %v3357_v36 = vadd.f32 %v4365_v24, %v3356_v33  ;;  %v3428_v37 = vadd.f32 %v3427_v31, %v3397_v34 }
 0x236   : > { %v3429_v39 = vadd.f32 %v3428_v37, %v3398_v35  ;;  %v3358_v40 = vadd.f32 %v4366_v28, %v3357_v36 }
 0x238   : > { %v3430_v41 = vadd.f32 %v3429_v39, %v3399_v38 }
 0x24e   : > { %v4369_v43 = vpop.f32.mrb[0].mxu1 }
 0x24f   : > { %v3120_v44 = vpop.f32.mrb[1].mxu1  ;;  %v3402_v54 = vmul.f32 %v4369_v43, %v4369_v43 }
 0x250   : > { %v3359_v45 = vadd.f32 %v3358_v40, %v3120_v44  ;;  %v3400_v46 = vmul.f32 %v3120_v44, %v3120_v44  ;;  %v4370_v47 = vpop.f32.mrb[2].mxu1 }
 0x251   : > { %v4279_v48 = vpack.c.bf16 %v4370_v47, %v4369_v43  ;;  %v3123_v49 = vpop.f32.mrb[3].mxu1  ;;  %v3403_v57 = vmul.f32 %v4370_v47, %v4370_v47 }
 0x252   : > { %v3431_v50 = vadd.f32 %v3430_v41, %v3400_v46  ;;  %v4274_v51 = vpack.c.bf16 %v3123_v49, %v3120_v44  ;;  %v3360_v52 = vadd.f32 %v3359_v45, %v3123_v49  ;;  %v3401_v53 = vmul.f32 %v3123_v49, %v3123_v49 }
 0x253   : > { %4319 = vst [vmem:[%s5735_s30 + $0x48] sm:$0xff] %v4279_v48  }
 0x254   : > { %4318 = vst [vmem:[%s5735_s30 + $0x40] sm:$0xff] %v4274_v51   ;;  %v3361_v55 = vadd.f32 %v4369_v43, %v3360_v52  ;;  %v3432_v56 = vadd.f32 %v3431_v50, %v3401_v53 }
 0x256   : > { %v3433_v58 = vadd.f32 %v3432_v56, %v3402_v54  ;;  %v3362_v59 = vadd.f32 %v4370_v47, %v3361_v55 }
 0x258   : > { %v3434_v60 = vadd.f32 %v3433_v58, %v3403_v57 }
 0x26e   : > { %v4373_v61 = vpop.f32.mrb[4].mxu1 }
 0x26f   : > { %v3136_v62 = vpop.f32.mrb[5].mxu1  ;;  %v3406_v9 = vmul.f32 %v4373_v61, %v4373_v61 }
 0x270   : > { %v3363_v63 = vadd.f32 %v3362_v59, %v3136_v62  ;;  %v3404_v0 = vmul.f32 %v3136_v62, %v3136_v62  ;;  %v4374_v1 = vpop.f32.mrb[6].mxu1 }
 0x271   : > { %v4289_v2 = vpack.c.bf16 %v4374_v1, %v4373_v61  ;;  %v3139_v3 = vpop.f32.mrb[7].mxu1  ;;  %v3407_v12 = vmul.f32 %v4374_v1, %v4374_v1 }
 0x272   : > { %v3435_v4 = vadd.f32 %v3434_v60, %v3404_v0  ;;  %v4284_v6 = vpack.c.bf16 %v3139_v3, %v3136_v62  ;;  %v3364_v7 = vadd.f32 %v3363_v63, %v3139_v3  ;;  %v3405_v8 = vmul.f32 %v3139_v3, %v3139_v3 }
 0x273   : > { %4321 = vst [vmem:[%s5735_s30 + $0x58] sm:$0xff] %v4289_v2  }
 0x274   : > { %4320 = vst [vmem:[%s5735_s30 + $0x50] sm:$0xff] %v4284_v6   ;;  %v3365_v10 = vadd.f32 %v4373_v61, %v3364_v7  ;;  %v3436_v11 = vadd.f32 %v3435_v4, %v3405_v8 }
 0x276   : > { %v3437_v5 = vadd.f32 %v3436_v11, %v3406_v9  ;;  %v3366_v13 = vadd.f32 %v4374_v1, %v3365_v10 }
 0x278   : > { %v3438_v14 = vadd.f32 %v3437_v5, %v3407_v12 }
 0x28e   : > { %v4377_v15 = vpop.f32.mrb[8].mxu1 }
 0x28f   : > { %v3152_v16 = vpop.f32.mrb[9].mxu1  ;;  %v3410_v26 = vmul.f32 %v4377_v15, %v4377_v15 }
 0x290   : > { %v3367_v17 = vadd.f32 %v3366_v13, %v3152_v16  ;;  %v3408_v18 = vmul.f32 %v3152_v16, %v3152_v16  ;;  %v4378_v19 = vpop.f32.mrb[10].mxu1 }
 0x291   : > { %v4299_v20 = vpack.c.bf16 %v4378_v19, %v4377_v15  ;;  %v3155_v21 = vpop.f32.mrb[11].mxu1  ;;  %v3411_v29 = vmul.f32 %v4378_v19, %v4378_v19 }
 0x292   : > { %v3439_v22 = vadd.f32 %v3438_v14, %v3408_v18  ;;  %v4294_v23 = vpack.c.bf16 %v3155_v21, %v3152_v16  ;;  %v3368_v24 = vadd.f32 %v3367_v17, %v3155_v21  ;;  %v3409_v25 = vmul.f32 %v3155_v21, %v3155_v21 }
 0x293   : > { %4323 = vst [vmem:[%s5735_s30 + $0x68] sm:$0xff] %v4299_v20  }
 0x294   : > { %4322 = vst [vmem:[%s5735_s30 + $0x60] sm:$0xff] %v4294_v23   ;;  %v3369_v27 = vadd.f32 %v4377_v15, %v3368_v24  ;;  %v3440_v28 = vadd.f32 %v3439_v22, %v3409_v25 }
 0x296   : > { %v3441_v30 = vadd.f32 %v3440_v28, %v3410_v26  ;;  %v3370_v31 = vadd.f32 %v4378_v19, %v3369_v27 }
 0x298   : > { %v3442_v32 = vadd.f32 %v3441_v30, %v3411_v29 }
 0x2ab   : > { %v4381_v33 = vpop.f32.mrb[12].mxu1 }
 0x2ac   : > { %v3168_v34 = vpop.f32.mrb[13].mxu1  ;;  %v3414_v44 = vmul.f32 %v4381_v33, %v4381_v33 }
 0x2ad   : > { %v3371_v35 = vadd.f32 %v3370_v31, %v3168_v34  ;;  %v3412_v36 = vmul.f32 %v3168_v34, %v3168_v34  ;;  %v4382_v37 = vpop.f32.mrb[14].mxu1 }
 0x2ae   : > { %v4309_v38 = vpack.c.bf16 %v4382_v37, %v4381_v33  ;;  %v3171_v39 = vpop.f32.mrb[15].mxu1 }
 0x2af   : > { %v3443_v40 = vadd.f32 %v3442_v32, %v3412_v36  ;;  %v4304_v41 = vpack.c.bf16 %v3171_v39, %v3168_v34  ;;  %v3372_v42 = vadd.f32 %v3371_v35, %v3171_v39  ;;  %v3413_v43 = vmul.f32 %v3171_v39, %v3171_v39 }
 0x2b0   : > { %4325 = vst [vmem:[%s5735_s30 + $0x78] sm:$0xff] %v4309_v38  }
 0x2b1   : > { %4324 = vst [vmem:[%s5735_s30 + $0x70] sm:$0xff] %v4304_v41   ;;  %v3373_v45 = vadd.f32 %v4381_v33, %v3372_v42  ;;  %v3444_v46 = vadd.f32 %v3443_v40, %v3413_v43 }
 0x2b2   : > { %4798 = shalt.err (!%p4795_p5)
}
 0x2b3   : > { %s4799_s18 = scalar_lea.hbm %s5766_s24, 2048  ;;  %s4803_s21 = scalar_lea.hbm %s5857_s2, 4096 }
 0x2b4   : > { %p4800_p9 = scmp.ne.s32.totalorder %s5766_s24, %s4799_s18  ;;  %p4804_p3 = scmp.lt.u32.totalorder %s5766_s24, %s5857_s2 }
 0x2b5   : > { %p4805_p7 = scmp.lt.u32.totalorder %s4803_s21, %s4799_s18  ;;  %p4807_p4 = scmp.lt.u32.totalorder %s4799_s18, %s5766_s24 }
 0x2b6   : > { %p4801_p1 = pnand %p4800_p9, %p5036_p10 }
 0x2b7   : > { %p4806_p11 = por %p4805_p7, %p4804_p3 }
 0x2b8   : > { %p4802_p2 = pneg %p4801_p1 }
 0x2b9   : > { %p4808_p6 = por %p4807_p4, %p4806_p11 }
 0x2bb   : > { %p4809_p8 = pnand %p4808_p6, %p4802_p2 }
 0x2bd   : > { %4812 = shalt.err (!%p4809_p8)
}
 0x2be   : > { %s4919_s9 = smov 64   ;;  %v3415_v47 = vmul.f32 %v4382_v37, %v4382_v37  ;;  %v3374_v48 = vadd.f32 %v4382_v37, %v3373_v45  ;;  %v3445_v49 = vadd.f32 %v3444_v46, %v3414_v44  ;;  %v3343_v60 = vld [vmem:[%s5752_s27] sm:$0x1]  ;;  %v3383_v63 = vld [vmem:[%s5752_s27 + $0x1] sm:$0x1]  ;;  %s3461_s11 = scalar_lea.sflag [#allocation10], %s5093_s25 }
 0x2bf   : > { %4400 = dma.vmem_to_hbm [thread:$0]  (%p5036_p10), %s5768_s26, 2048, %s5766_s24, %s3456_s20, %s4919_s9, %s4919_s9, %s4912_s10  }
 0x2c0   : > { %v3375_v50 = vrot.slane %v3374_v48, 4  ;;  %v3446_v51 = vadd.f32 %v3445_v49, %v3415_v47  ;;  %s4195_s10 = sshll.u32 %s4895_s15, 5  ;;  %s3494_s26 = sshll.u32 %s5752_s27, 4  ;;  %s5807_s26 = int_to_ptr.vmem [resolvable:$true] %s3494_s26 }
 0x2c1   : > { %s5805_s22 = scalar_lea.hbm %s5858_s3, %s4195_s10  ;;  %s4813_s7 = scalar_lea.vmem %s5807_s26, 32 }
 0x2c2   : > { %v3376_v52 = vadd.f32 %v3375_v50, %v3374_v48  ;;  %v3447_v53 = vrot.slane %v3446_v51, 4  ;;  %p4814_p12 = scmp.ne.s32.totalorder %s5807_s26, %s4813_s7  ;;  %s4920_s15 = smov [#allocation9]  }
 0x2c3   : > { %s4817_s8 = sshll.u32 %s4920_s15, 4  ;;  %s4818_s8 = int_to_ptr.vmem [resolvable:$false] %s4817_s8 }
 0x2c4   : > { %v3377_v54 = vrot.slane %v3376_v52, 2  ;;  %v3448_v55 = vadd.f32 %v3447_v53, %v3446_v51  ;;  %p4815_p13 = pnand %p4814_p12, %p5036_p10  ;;  %s4819_s18 = scalar_lea.vmem %s4818_s8, 64 }
 0x2c5   : > { %p4820_p5 = scmp.lt.s32.totalorder %s5807_s26, %s4818_s8  ;;  %p4821_p9 = scmp.lt.s32.totalorder %s4819_s18, %s4813_s7 }
 0x2c6   : > { %v3378_v56 = vadd.f32 %v3377_v54, %v3376_v52  ;;  %v3449_v57 = vrot.slane %v3448_v55, 2  ;;  %p4816_p0 = pneg %p4815_p13 }
 0x2c7   : > { %p4822_p1 = por %p4821_p9, %p4820_p5 }
 0x2c8   : > { %v3379_v58 = vrot.slane %v3378_v56, 1  ;;  %v3450_v59 = vadd.f32 %v3449_v57, %v3448_v55 }
 0x2c9   : > { %p4823_p2 = pnand %p4822_p1, %p4816_p0 }
 0x2ca   : > { %v3380_v61 = vadd.f32 %v3379_v58, %v3378_v56  ;;  %v3451_v62 = vrot.slane %v3450_v59, 1 }
 0x2cc   : > { %v3381_v0 = vadd.f32 %v3380_v61, %v3343_v60  ;;  %v3452_v1 = vadd.f32 %v3451_v62, %v3450_v59 }
 0x2ce   : > { %3382 = vst [vmem:[%s5752_s27] sm:$0x1] %v3381_v0  ;;  %v3453_v2 = vadd.f32 %v3452_v1, %v3383_v63 }
 0x2d0   : > { %3454 = vst [vmem:[%s5752_s27 + $0x1] sm:$0x1] %v3453_v2 }
 0x2d1   : > { %4826 = shalt.err (!%p4823_p2)
}
 0x2d2   : > { %s4827_s25 = scalar_lea.hbm %s5805_s22, 32  ;;  %s4831_s30 = scalar_lea.hbm %s5858_s3, 64 }
 0x2d3   : > { %p4828_p3 = scmp.ne.s32.totalorder %s5805_s22, %s4827_s25  ;;  %p4832_p4 = scmp.lt.u32.totalorder %s5805_s22, %s5858_s3 }
 0x2d4   : > { %p4833_p6 = scmp.lt.u32.totalorder %s4831_s30, %s4827_s25  ;;  %p4835_p12 = scmp.lt.u32.totalorder %s4827_s25, %s5805_s22 }
 0x2d5   : > { %p4829_p7 = pnand %p4828_p3, %p5036_p10 }
 0x2d6   : > { %p4834_p8 = por %p4833_p6, %p4832_p4 }
 0x2d7   : > { %p4830_p11 = pneg %p4829_p7 }
 0x2d8   : > { %p4836_p13 = por %p4835_p12, %p4834_p8 }
 0x2da   : > { %p4837_p0 = pnand %p4836_p13, %p4830_p11 }
 0x2dc   : > { %4840 = shalt.err (!%p4837_p0)
}
 0x2dd   : > { %4401 = dma.vmem_to_hbm [thread:$0]  (%p5036_p10), %s5807_s26, 32, %s5805_s22, %s3461_s11  }
 0x2de PF: > { %s3506_s6 = sand.u32 1, %s4883_s12   ;;  %p5875_p5 = scmp.ne.s32.totalorder %s5866_s23, 0 }
 0x2df   : > { %p5876_p9 = scmp.ge.s32.totalorder %s4903_s17, 2  ;;  %s3507_s9 = scalar_lea.sflag [#allocation5], %s3506_s6 }
 0x2e1   : > { %p4413_p1 = pnand %p5876_p9, %p5875_p5 }
 0x2e3   : > { %4874 = dma.done.wait (!%p4413_p1), %s3507_s9, 2048  }
 0x2e4   : > { %4876 = vsyncadd (!%p4413_p1), %s3507_s9, 4294965248  ;;  %s3516_s10 = scalar_lea.sflag [#allocation10], %s3506_s6 }
 0x2e5   : > { %4878 = dma.done.wait (!%p4413_p1), %s3516_s10, 32  }
 0x2e6   : > { %4880 = vsyncadd (!%p4413_p1), %s3516_s10, 4294967264  ;;  %s24_s17 = sadd.s32 1, %s4903_s17   ;;  %s5877_s12 = smov %s4887_s13 }
 0x2e7   : > { %p21_p2 = scmp.ge.s32.totalorder %s24_s17, 4   ;;  %s5878_s13 = smov %s4891_s14 }
 0x2e8   : > { %s5879_s14 = smov %s5045_s5  ;;  %s5880_s15 = smov %s4899_s16 }
 0x2e9   : > { %s5881_s16 = smov %s5883_s28  ;;  %23 = sbr.rel (!%p21_p2) target bundleno = 9 (0x9), region = 102 }
 0x2f0   :  { %3521 = vsyncpa [#allocation4], 1 }
 0x2f1   :  { %3523 = vsyncpa [#allocation4 + $0x1], 1 }
 0x2f2   :  { %3524 = vsyncpa [#allocation7], 1 }
 0x2f3   :  { %3525 = vsyncpa [#allocation5], 1 }
 0x2f4   :  { %3527 = vsyncpa [#allocation5 + $0x1], 1 }
 0x2f5   :  { %3528 = vsyncpa [#allocation10], 1 }
 0x2f6   :  { %3530 = vsyncpa [#allocation10 + $0x1], 1 }

</bundles_post_ra>
